<compile_context>
chip_gen: v7x
topology: tpu7x:2x2x1
jax: 0.10.0
libtpu: 0.0.40
codegen_flags: <defaults>
</compile_context>

<pallas_src>
import jax
import jax.numpy as jnp
from jax.experimental import pallas as pl
from jax.experimental.pallas import tpu as pltpu


OC1 = 32          # conv1 output channels (exact, no padding)
OC2 = 64          # conv2 output channels
S2D_ROWS = 80     # 8*8 space-to-depth input rows, zero-padded for shifted views
H1_ROWS = 72      # 8*8 conv1-output rows + zero pad rows for shifted conv2 views


# ----------------------------------------------------------------------------
# Fused conv1 + relu + conv2 + relu  (one sample per grid step)
# ----------------------------------------------------------------------------
def _conv_stack_kernel(x_ref, w1_ref, b1_ref, w2_ref, b2_ref, o_ref, h_ref):
    """x_ref : (1, 80, 64)  bf16  4x4 space-to-depth input; row = Y*8+X,
                                   channel = ry*16 + rx*4 + c (c padded 3->4)
       w1_ref: (4, 64, 128) bf16  per shifted-view tap; col = (dy*2+dx)*32 + oc
       b1_ref: (1, 128)     f32
       w2_ref: (4, 128, 64) bf16  per shifted-view tap; row = (dy*2+dx)*32 + ic
       b2_ref: (1, 64)      f32
       o_ref : (1, 56, 64)  bf16  row = r*8 + s (s == 7 is junk, dropped later)
       h_ref : (72, 128)    f32   scratch: conv1 out pixel (2P+dy, 2Q+dx, oc)
                                  at [P*8+Q, (dy*2+dx)*32 + oc]; rows >= 64 zero
    """
    # ---- conv1 + relu: 4 accumulating dots over contiguous shifted views ----
    acc1 = jnp.zeros((64, 4 * OC1), jnp.float32)
    for t in range(4):                                   # t = tY*2 + tX
        tY, tX = t // 2, t % 2
        xv = x_ref[0, pl.ds(tY * 8 + tX, 64), :]         # [64, 64] bf16
        acc1 += jnp.dot(xv, w1_ref[t], preferred_element_type=jnp.float32)
    h1 = jnp.maximum(acc1 + b1_ref[...], 0.0)            # [64, 128] f32
    h_ref[pl.ds(0, 64), :] = h1
    h_ref[pl.ds(64, 8), :] = jnp.zeros((8, 4 * OC1), jnp.float32)

    # ---- conv2 + relu: 4 accumulating dots over contiguous shifted views ----
    acc2 = jnp.zeros((56, OC2), jnp.float32)
    for t in range(4):                                   # t = TY*2 + TX
        TY, TX = t // 2, t % 2
        hv = h_ref[pl.ds(TY * 8 + TX, 56), :].astype(jnp.bfloat16)   # [56, 128]
        acc2 += jnp.dot(hv, w2_ref[t], preferred_element_type=jnp.float32)
    z = jnp.maximum(acc2 + b2_ref[...], 0.0)             # [56, 64] f32
    o_ref[0] = z.astype(o_ref.dtype)


def conv_stack(x_s2d, w1, b1, w2, b2):
    B = x_s2d.shape[0]
    return pl.pallas_call(
        _conv_stack_kernel,
        out_shape=jax.ShapeDtypeStruct((B, 56, OC2), jnp.bfloat16),
        grid=(B,),
        in_specs=[
            pl.BlockSpec((1, S2D_ROWS, 64), lambda b: (b, 0, 0)),
            pl.BlockSpec((4, 64, 4 * OC1), lambda b: (0, 0, 0)),
            pl.BlockSpec((1, 4 * OC1), lambda b: (0, 0)),
            pl.BlockSpec((4, 4 * OC1, OC2), lambda b: (0, 0, 0)),
            pl.BlockSpec((1, OC2), lambda b: (0, 0)),
        ],
        out_specs=pl.BlockSpec((1, 56, OC2), lambda b: (b, 0, 0)),
        scratch_shapes=[pltpu.VMEM((H1_ROWS, 4 * OC1), jnp.float32)],
        compiler_params=pltpu.CompilerParams(
            dimension_semantics=("parallel",)),          # samples independent
    )(x_s2d, w1, b1, w2, b2)


# ----------------------------------------------------------------------------
# Fused FC head: fc1 -> relu -> dropout(id) -> fc2 -> log_softmax,
# chunked over fc1's 1024 output features (reduction grid, weight streamed).
# ----------------------------------------------------------------------------
def _fc_head_kernel(x_ref, w1_ref, b1_ref, w2_ref, b2_ref, o_ref, z_ref):
    j = pl.program_id(0)

    @pl.when(j == 0)
    def _():
        z_ref[...] = jnp.zeros_like(z_ref)

    h = jnp.dot(x_ref[...], w1_ref[...], preferred_element_type=jnp.float32)
    h = jnp.maximum(h + b1_ref[...], 0.0)
    # TODO(synk): nn.Dropout(0.5) is identity in eval mode; training-mode
    # masking (pltpu.prng_random_bits) not implemented.
    z_ref[...] += jnp.dot(h.astype(w2_ref.dtype), w2_ref[...],
                          preferred_element_type=jnp.float32)

    @pl.when(j == pl.num_programs(0) - 1)
    def _():
        z = z_ref[...] + b2_ref[...]
        m = jnp.max(z, axis=-1, keepdims=True)
        zs = z - m
        lse = jnp.log(jnp.sum(jnp.exp(zs), axis=-1, keepdims=True))
        o_ref[...] = (zs - lse).astype(o_ref.dtype)


def fc_head(x, w1, b1, w2, b2, *, block_n=256):
    B, K1 = x.shape
    K1w, N1 = w1.shape
    assert K1 == K1w and N1 % block_n == 0
    N2 = w2.shape[1]
    grid_n = N1 // block_n
    return pl.pallas_call(
        _fc_head_kernel,
        out_shape=jax.ShapeDtypeStruct((B, N2), jnp.float32),
        grid=(grid_n,),
        in_specs=[
            pl.BlockSpec((B, K1), lambda j: (0, 0)),
            pl.BlockSpec((K1, block_n), lambda j: (0, j)),   # streamed fc1 weight
            pl.BlockSpec((1, block_n), lambda j: (0, j)),
            pl.BlockSpec((block_n, N2), lambda j: (j, 0)),
            pl.BlockSpec((1, N2), lambda j: (0, 0)),
        ],
        out_specs=pl.BlockSpec((B, N2), lambda j: (0, 0)),
        scratch_shapes=[pltpu.VMEM((B, N2), jnp.float32)],
        compiler_params=pltpu.CompilerParams(
            dimension_semantics=("arbitrary",)),             # reduction over N1
    )(x, w1, b1, w2, b2)


# ----------------------------------------------------------------------------
# Parameters: torch-layout init, one-time conversion to TPU-friendly layouts.
# ----------------------------------------------------------------------------
def init_torch_params(key):
    ks = jax.random.split(key, 8)

    def uniform(k, shape, fan_in):
        bound = 1.0 / jnp.sqrt(fan_in)
        return jax.random.uniform(k, shape, jnp.float32, -bound, bound)

    return {
        "conv1_w": uniform(ks[0], (32, 3, 3, 3), 3 * 3 * 3),      # [OC, IC, kh, kw]
        "conv1_b": uniform(ks[1], (32,), 3 * 3 * 3),
        "conv2_w": uniform(ks[2], (64, 32, 3, 3), 32 * 3 * 3),
        "conv2_b": uniform(ks[3], (64,), 32 * 3 * 3),
        "fc1_w": uniform(ks[4], (1024, 64 * 7 * 7), 64 * 7 * 7),  # torch [out, in]
        "fc1_b": uniform(ks[5], (1024,), 64 * 7 * 7),
        "fc2_w": uniform(ks[6], (10, 1024), 1024),
        "fc2_b": uniform(ks[7], (10,), 1024),
    }


def prepare_params(tp):
    """One-time layout conversion (no per-forward cost)."""
    p = {}

    # conv1 -> per shifted-view MXU RHS [4(tap=tY*2+tX), 64, 128]:
    #   row k = ry*16 + rx*4 + c,  col n = (dy*2+dx)*32 + oc,
    #   entry = w1[oc, c, a, b] with a = 4*tY + ry - 2*dy, b = 4*tX + rx - 2*dx,
    #   zero when a or b falls outside the 3x3 kernel (via zero padding).
    w = jnp.transpose(tp["conv1_w"], (2, 3, 1, 0))        # [a, b, c, oc] = [3,3,3,32]
    w = jnp.pad(w, ((4, 5), (4, 5), (0, 1), (0, 0)))      # [12, 12, 4, 32]
    taps = []
    for tY in (0, 1):
        for tX in (0, 1):
            cols = []
            for dy in (0, 1):
                for dx in (0, 1):
                    blk = w[4 + 4 * tY - 2 * dy: 8 + 4 * tY - 2 * dy,
                            4 + 4 * tX - 2 * dx: 8 + 4 * tX - 2 * dx]   # [4,4,4,32]
                    cols.append(blk.reshape(64, OC1))
            taps.append(jnp.concatenate(cols, axis=1))    # [64, 128]
    p["conv1_w"] = jnp.stack(taps, 0).astype(jnp.bfloat16)          # [4, 64, 128]
    p["conv1_b"] = jnp.tile(tp["conv1_b"], 4).reshape(1, 4 * OC1).astype(jnp.float32)

    # conv2 -> per shifted-view RHS [4(tap=TY*2+TX), 128, 64]:
    #   row j = (dy*2+dx)*32 + ic, entry = w2[oc, ic, 2*TY+dy, 2*TX+dx] (zero if >2).
    w = jnp.transpose(tp["conv2_w"], (2, 3, 1, 0))        # [a, b, ic, oc] = [3,3,32,64]
    w = jnp.pad(w, ((0, 1), (0, 1), (0, 0), (0, 0)))      # [4, 4, 32, 64]
    taps = []
    for TY in (0, 1):
        for TX in (0, 1):
            blk = w[2 * TY: 2 * TY + 2, 2 * TX: 2 * TX + 2]          # [2, 2, 32, 64]
            taps.append(blk.reshape(4 * OC1, OC2))
    p["conv2_w"] = jnp.stack(taps, 0).astype(jnp.bfloat16)          # [4, 128, 64]
    p["conv2_b"] = tp["conv2_b"].reshape(1, OC2).astype(jnp.float32)

    # fc1: torch rows are (c, h, w); permute to the (h, w, c) flatten the conv
    # kernel produces, preserving PyTorch semantics.
    w = tp["fc1_w"].reshape(1024, 64, 7, 7)               # [out, c, h, w]
    w = jnp.transpose(w, (2, 3, 1, 0))                    # [h, w, c, out]
    p["fc1_w"] = w.reshape(64 * 7 * 7, 1024).astype(jnp.bfloat16)   # [K, N]
    p["fc1_b"] = tp["fc1_b"].reshape(1, 1024).astype(jnp.float32)

    # fc2: [10, 1024] -> [1024, 10]
    p["fc2_w"] = jnp.transpose(tp["fc2_w"], (1, 0)).astype(jnp.bfloat16)
    p["fc2_b"] = tp["fc2_b"].reshape(1, 10).astype(jnp.float32)
    return p


# ----------------------------------------------------------------------------
# SimpleCNN forward (inference).  Numerics: bf16 matmul operands with f32
# accumulation -> small drift vs. f32 PyTorch (inference tolerance).
# ----------------------------------------------------------------------------
def simple_cnn_forward(params, x_nchw):
    B = x_nchw.shape[0]
    # One-time layout prep on the tiny network input: NCHW -> NHWC, pad C 3->4,
    # 4x4 space-to-depth, flatten (Y, X) rows, zero-pad rows for shifted views.
    x = jnp.transpose(x_nchw, (0, 2, 3, 1))                         # [B, 32, 32, 3]
    x = jnp.pad(x, ((0, 0), (0, 0), (0, 0), (0, 1)))                # [B, 32, 32, 4]
    x = x.reshape(B, 8, 4, 8, 4, 4)
    x = jnp.transpose(x, (0, 1, 3, 2, 4, 5))                        # [B, 8, 8, 4, 4, 4]
    x = x.reshape(B, 64, 64)
    x = jnp.pad(x, ((0, 0), (0, S2D_ROWS - 64), (0, 0))).astype(jnp.bfloat16)

    # Fused conv1 -> relu -> conv2 -> relu (one pallas_call, grid over batch).
    y = conv_stack(x, params["conv1_w"], params["conv1_b"],
                   params["conv2_w"], params["conv2_b"])            # [B, 56, 64]

    # Drop the junk 8th column group and flatten in (h, w, c) order.
    y = y.reshape(B, 7, 8, OC2)[:, :, :7, :].reshape(B, 7 * 7 * OC2)  # [B, 3136]

    # Fused fc1 -> relu -> dropout(identity in eval) -> fc2 -> log_softmax.
    return fc_head(y, params["fc1_w"], params["fc1_b"],
                   params["fc2_w"], params["fc2_b"])                # [B, 10] f32


if __name__ == "__main__":
    key = jax.random.PRNGKey(0)
    pkey, xkey = jax.random.split(key)
    params = prepare_params(init_torch_params(pkey))
    # Input spatial size 32x32 is what the module implies (-> 15 -> 7 -> 64*7*7).
    x = jax.random.normal(xkey, (2, 3, 32, 32), jnp.float32)

    fwd = jax.jit(simple_cnn_forward)
    out = jax.block_until_ready(fwd(params, x))

    assert out.shape == (2, 10), out.shape
    assert bool(jnp.all(jnp.isfinite(out)))
    # log_softmax rows must exp-sum to ~1
    row_sums = jnp.exp(out).sum(axis=1)
    assert bool(jnp.all(jnp.abs(row_sums - 1.0) < 1e-3)), row_sums
    print("KERNEL_OK")
</pallas_src>

<mosaic_0001>
module attributes {stable_mosaic.version = 11 : i64} {
  func.func @_conv_stack_kernel(%arg0: i32, %arg1: memref<1x80x64xbf16, #tpu.memory_space<vmem>>, %arg2: memref<4x64x128xbf16, #tpu.memory_space<vmem>>, %arg3: memref<1x128xf32, #tpu.memory_space<vmem>>, %arg4: memref<4x128x64xbf16, #tpu.memory_space<vmem>>, %arg5: memref<1x64xf32, #tpu.memory_space<vmem>>, %arg6: memref<1x56x64xbf16, #tpu.memory_space<vmem>>, %arg7: memref<72x128xf32, #tpu.memory_space<vmem>>) attributes {dimension_semantics = [#tpu.dimension_semantics<parallel>], iteration_bounds = array<i64: 2>, scalar_prefetch = 0 : i64, scratch_operands = 1 : i64, tpu.core_type = #tpu.core_type<tc>, window_params = [{transform_indices = @transform_0, window_bounds = array<i64: 1, 80, 64>}, {pipeline_mode = #tpu.pipeline_mode<synchronous>, transform_indices = @transform_1, window_bounds = array<i64: 4, 64, 128>}, {pipeline_mode = #tpu.pipeline_mode<synchronous>, transform_indices = @transform_2, window_bounds = array<i64: 1, 128>}, {pipeline_mode = #tpu.pipeline_mode<synchronous>, transform_indices = @transform_3, window_bounds = array<i64: 4, 128, 64>}, {pipeline_mode = #tpu.pipeline_mode<synchronous>, transform_indices = @transform_4, window_bounds = array<i64: 1, 64>}, {transform_indices = @transform_5, window_bounds = array<i64: 1, 56, 64>}]} {
    %cst = arith.constant 0.000000e+00 : f32
    %0 = vector.broadcast %cst : f32 to vector<64x128xf32>
    %c0 = arith.constant 0 : index
    %c0_0 = arith.constant 0 : index
    %c0_1 = arith.constant 0 : index
    %1 = vector.load %arg1[%c0, %c0_0, %c0_1] : memref<1x80x64xbf16, #tpu.memory_space<vmem>>, vector<1x64x64xbf16>
    %2 = vector.shape_cast %1 : vector<1x64x64xbf16> to vector<64x64xbf16>
    %c0_2 = arith.constant 0 : index
    %c0_3 = arith.constant 0 : index
    %c0_4 = arith.constant 0 : index
    %3 = vector.load %arg2[%c0_2, %c0_3, %c0_4] : memref<4x64x128xbf16, #tpu.memory_space<vmem>>, vector<1x64x128xbf16>
    %4 = vector.shape_cast %3 : vector<1x64x128xbf16> to vector<64x128xbf16>
    %cst_5 = arith.constant dense<0.000000e+00> : vector<64x128xf32>
    %5 = tpu.matmul %2, %4, %cst_5 {dimension_numbers = #tpu.dot_dimension_numbers<[1], [0], [0], [1], [0, 0, 1, 1], [], []>} : vector<64x64xbf16>, vector<64x128xbf16>, vector<64x128xf32> -> vector<64x128xf32>
    %6 = arith.addf %0, %5 : vector<64x128xf32>
    %c0_6 = arith.constant 0 : index
    %c1 = arith.constant 1 : index
    %c0_7 = arith.constant 0 : index
    %7 = vector.load %arg1[%c0_6, %c1, %c0_7] : memref<1x80x64xbf16, #tpu.memory_space<vmem>>, vector<1x64x64xbf16>
    %8 = vector.shape_cast %7 : vector<1x64x64xbf16> to vector<64x64xbf16>
    %c1_8 = arith.constant 1 : index
    %c0_9 = arith.constant 0 : index
    %c0_10 = arith.constant 0 : index
    %9 = vector.load %arg2[%c1_8, %c0_9, %c0_10] : memref<4x64x128xbf16, #tpu.memory_space<vmem>>, vector<1x64x128xbf16>
    %10 = vector.shape_cast %9 : vector<1x64x128xbf16> to vector<64x128xbf16>
    %cst_11 = arith.constant dense<0.000000e+00> : vector<64x128xf32>
    %11 = tpu.matmul %8, %10, %cst_11 {dimension_numbers = #tpu.dot_dimension_numbers<[1], [0], [0], [1], [0, 0, 1, 1], [], []>} : vector<64x64xbf16>, vector<64x128xbf16>, vector<64x128xf32> -> vector<64x128xf32>
    %12 = arith.addf %6, %11 : vector<64x128xf32>
    %c0_12 = arith.constant 0 : index
    %c8 = arith.constant 8 : index
    %c0_13 = arith.constant 0 : index
    %13 = vector.load %arg1[%c0_12, %c8, %c0_13] : memref<1x80x64xbf16, #tpu.memory_space<vmem>>, vector<1x64x64xbf16>
    %14 = vector.shape_cast %13 : vector<1x64x64xbf16> to vector<64x64xbf16>
    %c2 = arith.constant 2 : index
    %c0_14 = arith.constant 0 : index
    %c0_15 = arith.constant 0 : index
    %15 = vector.load %arg2[%c2, %c0_14, %c0_15] : memref<4x64x128xbf16, #tpu.memory_space<vmem>>, vector<1x64x128xbf16>
    %16 = vector.shape_cast %15 : vector<1x64x128xbf16> to vector<64x128xbf16>
    %cst_16 = arith.constant dense<0.000000e+00> : vector<64x128xf32>
    %17 = tpu.matmul %14, %16, %cst_16 {dimension_numbers = #tpu.dot_dimension_numbers<[1], [0], [0], [1], [0, 0, 1, 1], [], []>} : vector<64x64xbf16>, vector<64x128xbf16>, vector<64x128xf32> -> vector<64x128xf32>
    %18 = arith.addf %12, %17 : vector<64x128xf32>
    %c0_17 = arith.constant 0 : index
    %c9 = arith.constant 9 : index
    %c0_18 = arith.constant 0 : index
    %19 = vector.load %arg1[%c0_17, %c9, %c0_18] : memref<1x80x64xbf16, #tpu.memory_space<vmem>>, vector<1x64x64xbf16>
    %20 = vector.shape_cast %19 : vector<1x64x64xbf16> to vector<64x64xbf16>
    %c3 = arith.constant 3 : index
    %c0_19 = arith.constant 0 : index
    %c0_20 = arith.constant 0 : index
    %21 = vector.load %arg2[%c3, %c0_19, %c0_20] : memref<4x64x128xbf16, #tpu.memory_space<vmem>>, vector<1x64x128xbf16>
    %22 = vector.shape_cast %21 : vector<1x64x128xbf16> to vector<64x128xbf16>
    %cst_21 = arith.constant dense<0.000000e+00> : vector<64x128xf32>
    %23 = tpu.matmul %20, %22, %cst_21 {dimension_numbers = #tpu.dot_dimension_numbers<[1], [0], [0], [1], [0, 0, 1, 1], [], []>} : vector<64x64xbf16>, vector<64x128xbf16>, vector<64x128xf32> -> vector<64x128xf32>
    %24 = arith.addf %18, %23 : vector<64x128xf32>
    %c0_22 = arith.constant 0 : index
    %c0_23 = arith.constant 0 : index
    %25 = vector.load %arg3[%c0_22, %c0_23] : memref<1x128xf32, #tpu.memory_space<vmem>>, vector<1x128xf32>
    %26 = vector.broadcast %25 : vector<1x128xf32> to vector<64x128xf32>
    %27 = arith.addf %24, %26 : vector<64x128xf32>
    %cst_24 = arith.constant 0.000000e+00 : f32
    %28 = vector.broadcast %cst_24 : f32 to vector<64x128xf32>
    %29 = arith.maximumf %27, %28 : vector<64x128xf32>
    %c0_25 = arith.constant 0 : index
    %c0_26 = arith.constant 0 : index
    %30 = vector.load %arg7[%c0_25, %c0_26] : memref<72x128xf32, #tpu.memory_space<vmem>>, vector<64x128xf32>
    tpu.vector_store %arg7[%c0_25, %c0_26], %29 {strides = array<i32>} : memref<72x128xf32, #tpu.memory_space<vmem>>, vector<64x128xf32>,
    %cst_27 = arith.constant 0.000000e+00 : f32
    %31 = vector.broadcast %cst_27 : f32 to vector<8x128xf32>
    %c64 = arith.constant 64 : index
    %c0_28 = arith.constant 0 : index
    %32 = vector.load %arg7[%c64, %c0_28] : memref<72x128xf32, #tpu.memory_space<vmem>>, vector<8x128xf32>
    tpu.vector_store %arg7[%c64, %c0_28], %31 {strides = array<i32>} : memref<72x128xf32, #tpu.memory_space<vmem>>, vector<8x128xf32>,
    %cst_29 = arith.constant 0.000000e+00 : f32
    %33 = vector.broadcast %cst_29 : f32 to vector<56x64xf32>
    %c0_30 = arith.constant 0 : index
    %c0_31 = arith.constant 0 : index
    %34 = vector.load %arg7[%c0_30, %c0_31] : memref<72x128xf32, #tpu.memory_space<vmem>>, vector<56x128xf32>
    %35 = arith.truncf %34 : vector<56x128xf32> to vector<56x128xbf16>
    %c0_32 = arith.constant 0 : index
    %c0_33 = arith.constant 0 : index
    %c0_34 = arith.constant 0 : index
    %36 = vector.load %arg4[%c0_32, %c0_33, %c0_34] : memref<4x128x64xbf16, #tpu.memory_space<vmem>>, vector<1x128x64xbf16>
    %37 = vector.shape_cast %36 : vector<1x128x64xbf16> to vector<128x64xbf16>
    %cst_35 = arith.constant dense<0.000000e+00> : vector<56x64xf32>
    %38 = tpu.matmul %35, %37, %cst_35 {dimension_numbers = #tpu.dot_dimension_numbers<[1], [0], [0], [1], [0, 0, 1, 1], [], []>} : vector<56x128xbf16>, vector<128x64xbf16>, vector<56x64xf32> -> vector<56x64xf32>
    %39 = arith.addf %33, %38 : vector<56x64xf32>
    %c1_36 = arith.constant 1 : index
    %c0_37 = arith.constant 0 : index
    %40 = vector.load %arg7[%c1_36, %c0_37] : memref<72x128xf32, #tpu.memory_space<vmem>>, vector<56x128xf32>
    %41 = arith.truncf %40 : vector<56x128xf32> to vector<56x128xbf16>
    %c1_38 = arith.constant 1 : index
    %c0_39 = arith.constant 0 : index
    %c0_40 = arith.constant 0 : index
    %42 = vector.load %arg4[%c1_38, %c0_39, %c0_40] : memref<4x128x64xbf16, #tpu.memory_space<vmem>>, vector<1x128x64xbf16>
    %43 = vector.shape_cast %42 : vector<1x128x64xbf16> to vector<128x64xbf16>
    %cst_41 = arith.constant dense<0.000000e+00> : vector<56x64xf32>
    %44 = tpu.matmul %41, %43, %cst_41 {dimension_numbers = #tpu.dot_dimension_numbers<[1], [0], [0], [1], [0, 0, 1, 1], [], []>} : vector<56x128xbf16>, vector<128x64xbf16>, vector<56x64xf32> -> vector<56x64xf32>
    %45 = arith.addf %39, %44 : vector<56x64xf32>
    %c8_42 = arith.constant 8 : index
    %c0_43 = arith.constant 0 : index
    %46 = vector.load %arg7[%c8_42, %c0_43] : memref<72x128xf32, #tpu.memory_space<vmem>>, vector<56x128xf32>
    %47 = arith.truncf %46 : vector<56x128xf32> to vector<56x128xbf16>
    %c2_44 = arith.constant 2 : index
    %c0_45 = arith.constant 0 : index
    %c0_46 = arith.constant 0 : index
    %48 = vector.load %arg4[%c2_44, %c0_45, %c0_46] : memref<4x128x64xbf16, #tpu.memory_space<vmem>>, vector<1x128x64xbf16>
    %49 = vector.shape_cast %48 : vector<1x128x64xbf16> to vector<128x64xbf16>
    %cst_47 = arith.constant dense<0.000000e+00> : vector<56x64xf32>
    %50 = tpu.matmul %47, %49, %cst_47 {dimension_numbers = #tpu.dot_dimension_numbers<[1], [0], [0], [1], [0, 0, 1, 1], [], []>} : vector<56x128xbf16>, vector<128x64xbf16>, vector<56x64xf32> -> vector<56x64xf32>
    %51 = arith.addf %45, %50 : vector<56x64xf32>
    %c9_48 = arith.constant 9 : index
    %c0_49 = arith.constant 0 : index
    %52 = vector.load %arg7[%c9_48, %c0_49] : memref<72x128xf32, #tpu.memory_space<vmem>>, vector<56x128xf32>
    %53 = arith.truncf %52 : vector<56x128xf32> to vector<56x128xbf16>
    %c3_50 = arith.constant 3 : index
    %c0_51 = arith.constant 0 : index
    %c0_52 = arith.constant 0 : index
    %54 = vector.load %arg4[%c3_50, %c0_51, %c0_52] : memref<4x128x64xbf16, #tpu.memory_space<vmem>>, vector<1x128x64xbf16>
    %55 = vector.shape_cast %54 : vector<1x128x64xbf16> to vector<128x64xbf16>
    %cst_53 = arith.constant dense<0.000000e+00> : vector<56x64xf32>
    %56 = tpu.matmul %53, %55, %cst_53 {dimension_numbers = #tpu.dot_dimension_numbers<[1], [0], [0], [1], [0, 0, 1, 1], [], []>} : vector<56x128xbf16>, vector<128x64xbf16>, vector<56x64xf32> -> vector<56x64xf32>
    %57 = arith.addf %51, %56 : vector<56x64xf32>
    %c0_54 = arith.constant 0 : index
    %c0_55 = arith.constant 0 : index
    %58 = vector.load %arg5[%c0_54, %c0_55] : memref<1x64xf32, #tpu.memory_space<vmem>>, vector<1x64xf32>
    %59 = vector.broadcast %58 : vector<1x64xf32> to vector<56x64xf32>
    %60 = arith.addf %57, %59 : vector<56x64xf32>
    %cst_56 = arith.constant 0.000000e+00 : f32
    %61 = vector.broadcast %cst_56 : f32 to vector<56x64xf32>
    %62 = arith.maximumf %60, %61 : vector<56x64xf32>
    %63 = arith.truncf %62 : vector<56x64xf32> to vector<56x64xbf16>
    %c0_57 = arith.constant 0 : index
    %c0_58 = arith.constant 0 : index
    %c0_59 = arith.constant 0 : index
    %64 = vector.load %arg6[%c0_57, %c0_58, %c0_59] : memref<1x56x64xbf16, #tpu.memory_space<vmem>>, vector<1x56x64xbf16>
    %65 = vector.shape_cast %64 : vector<1x56x64xbf16> to vector<56x64xbf16>
    %66 = vector.shape_cast %63 : vector<56x64xbf16> to vector<1x56x64xbf16>
    tpu.vector_store %arg6[%c0_57, %c0_58, %c0_59], %66 {strides = array<i32>} : memref<1x56x64xbf16, #tpu.memory_space<vmem>>, vector<1x56x64xbf16>,
    return
  }
  func.func @transform_0(%arg0: i32) -> (i32, i32, i32) {
    %c0_i32 = arith.constant 0 : i32
    %c0_i32_0 = arith.constant 0 : i32
    %c0_i32_1 = arith.constant 0 : i32
    return %arg0, %c0_i32, %c0_i32_0 : i32, i32, i32
  }
  func.func @transform_1(%arg0: i32) -> (i32, i32, i32) {
    %c0_i32 = arith.constant 0 : i32
    %c0_i32_0 = arith.constant 0 : i32
    %c0_i32_1 = arith.constant 0 : i32
    %c0_i32_2 = arith.constant 0 : i32
    return %c0_i32, %c0_i32_0, %c0_i32_1 : i32, i32, i32
  }
  func.func @transform_2(%arg0: i32) -> (i32, i32) {
    %c0_i32 = arith.constant 0 : i32
    %c0_i32_0 = arith.constant 0 : i32
    %c0_i32_1 = arith.constant 0 : i32
    return %c0_i32, %c0_i32_0 : i32, i32
  }
  func.func @transform_3(%arg0: i32) -> (i32, i32, i32) {
    %c0_i32 = arith.constant 0 : i32
    %c0_i32_0 = arith.constant 0 : i32
    %c0_i32_1 = arith.constant 0 : i32
    %c0_i32_2 = arith.constant 0 : i32
    return %c0_i32, %c0_i32_0, %c0_i32_1 : i32, i32, i32
  }
  func.func @transform_4(%arg0: i32) -> (i32, i32) {
    %c0_i32 = arith.constant 0 : i32
    %c0_i32_0 = arith.constant 0 : i32
    %c0_i32_1 = arith.constant 0 : i32
    return %c0_i32, %c0_i32_0 : i32, i32
  }
  func.func @transform_5(%arg0: i32) -> (i32, i32, i32) {
    %c0_i32 = arith.constant 0 : i32
    %c0_i32_0 = arith.constant 0 : i32
    %c0_i32_1 = arith.constant 0 : i32
    return %arg0, %c0_i32, %c0_i32_0 : i32, i32, i32
  }
}

module attributes {stable_mosaic.version = 11 : i64} {
  func.func @_fc_head_kernel(%arg0: i32, %arg1: memref<2x3136xbf16, #tpu.memory_space<vmem>>, %arg2: memref<3136x256xbf16, #tpu.memory_space<vmem>>, %arg3: memref<1x256xf32, #tpu.memory_space<vmem>>, %arg4: memref<256x10xbf16, #tpu.memory_space<vmem>>, %arg5: memref<1x10xf32, #tpu.memory_space<vmem>>, %arg6: memref<2x10xf32, #tpu.memory_space<vmem>>, %arg7: memref<2x10xf32, #tpu.memory_space<vmem>>) attributes {dimension_semantics = [#tpu.dimension_semantics<arbitrary>], iteration_bounds = array<i64: 4>, scalar_prefetch = 0 : i64, scratch_operands = 1 : i64, tpu.core_type = #tpu.core_type<tc>, window_params = [{pipeline_mode = #tpu.pipeline_mode<synchronous>, transform_indices = @transform_0, window_bounds = array<i64: 2, 3136>}, {transform_indices = @transform_1, window_bounds = array<i64: 3136, 256>}, {transform_indices = @transform_2, window_bounds = array<i64: 1, 256>}, {transform_indices = @transform_3, window_bounds = array<i64: 256, 10>}, {pipeline_mode = #tpu.pipeline_mode<synchronous>, transform_indices = @transform_4, window_bounds = array<i64: 1, 10>}, {pipeline_mode = #tpu.pipeline_mode<synchronous>, transform_indices = @transform_5, window_bounds = array<i64: 2, 10>}]} {
    %c0_i32 = arith.constant 0 : i32
    %0 = arith.cmpi eq, %arg0, %c0_i32 : i32
    %1 = arith.extui %0 : i1 to i32
    %c0_i32_0 = arith.constant 0 : i32
    %2 = arith.cmpi ne, %1, %c0_i32_0 : i32
    scf.if %2 {
      %cst_15 = arith.constant 0.000000e+00 : f32
      %20 = vector.broadcast %cst_15 : f32 to vector<2x10xf32>
      %c0_16 = arith.constant 0 : index
      %c0_17 = arith.constant 0 : index
      %21 = vector.load %arg7[%c0_16, %c0_17] : memref<2x10xf32, #tpu.memory_space<vmem>>, vector<2x10xf32>
      tpu.vector_store %arg7[%c0_16, %c0_17], %20 {strides = array<i32>} : memref<2x10xf32, #tpu.memory_space<vmem>>, vector<2x10xf32>,
    } else {
    }
    %c0 = arith.constant 0 : index
    %c0_1 = arith.constant 0 : index
    %3 = vector.load %arg1[%c0, %c0_1] : memref<2x3136xbf16, #tpu.memory_space<vmem>>, vector<2x3136xbf16>
    %c0_2 = arith.constant 0 : index
    %c0_3 = arith.constant 0 : index
    %4 = vector.load %arg2[%c0_2, %c0_3] : memref<3136x256xbf16, #tpu.memory_space<vmem>>, vector<3136x256xbf16>
    %cst = arith.constant dense<0.000000e+00> : vector<2x256xf32>
    %5 = tpu.matmul %3, %4, %cst {dimension_numbers = #tpu.dot_dimension_numbers<[1], [0], [0], [1], [0, 0, 1, 1], [], []>} : vector<2x3136xbf16>, vector<3136x256xbf16>, vector<2x256xf32> -> vector<2x256xf32>
    %c0_4 = arith.constant 0 : index
    %c0_5 = arith.constant 0 : index
    %6 = vector.load %arg3[%c0_4, %c0_5] : memref<1x256xf32, #tpu.memory_space<vmem>>, vector<1x256xf32>
    %7 = vector.broadcast %6 : vector<1x256xf32> to vector<2x256xf32>
    %8 = arith.addf %5, %7 : vector<2x256xf32>
    %cst_6 = arith.constant 0.000000e+00 : f32
    %9 = vector.broadcast %cst_6 : f32 to vector<2x256xf32>
    %10 = arith.maximumf %8, %9 : vector<2x256xf32>
    %c0_7 = arith.constant 0 : index
    %c0_8 = arith.constant 0 : index
    %11 = vector.load %arg7[%c0_7, %c0_8] : memref<2x10xf32, #tpu.memory_space<vmem>>, vector<2x10xf32>
    %12 = arith.truncf %10 : vector<2x256xf32> to vector<2x256xbf16>
    %c0_9 = arith.constant 0 : index
    %c0_10 = arith.constant 0 : index
    %13 = vector.load %arg4[%c0_9, %c0_10] : memref<256x10xbf16, #tpu.memory_space<vmem>>, vector<256x10xbf16>
    %cst_11 = arith.constant dense<0.000000e+00> : vector<2x10xf32>
    %14 = tpu.matmul %12, %13, %cst_11 {dimension_numbers = #tpu.dot_dimension_numbers<[1], [0], [0], [1], [0, 0, 1, 1], [], []>} : vector<2x256xbf16>, vector<256x10xbf16>, vector<2x10xf32> -> vector<2x10xf32>
    %15 = arith.addf %11, %14 : vector<2x10xf32>
    %c0_12 = arith.constant 0 : index
    %c0_13 = arith.constant 0 : index
    %16 = vector.load %arg7[%c0_12, %c0_13] : memref<2x10xf32, #tpu.memory_space<vmem>>, vector<2x10xf32>
    tpu.vector_store %arg7[%c0_12, %c0_13], %15 {strides = array<i32>} : memref<2x10xf32, #tpu.memory_space<vmem>>, vector<2x10xf32>,
    %c3_i32 = arith.constant 3 : i32
    %17 = arith.cmpi eq, %arg0, %c3_i32 : i32
    %18 = arith.extui %17 : i1 to i32
    %c0_i32_14 = arith.constant 0 : i32
    %19 = arith.cmpi ne, %18, %c0_i32_14 : i32
    scf.if %19 {
      %c0_15 = arith.constant 0 : index
      %c0_16 = arith.constant 0 : index
      %20 = vector.load %arg7[%c0_15, %c0_16] : memref<2x10xf32, #tpu.memory_space<vmem>>, vector<2x10xf32>
      %c0_17 = arith.constant 0 : index
      %c0_18 = arith.constant 0 : index
      %21 = vector.load %arg5[%c0_17, %c0_18] : memref<1x10xf32, #tpu.memory_space<vmem>>, vector<1x10xf32>
      %22 = vector.broadcast %21 : vector<1x10xf32> to vector<2x10xf32>
      %23 = arith.addf %20, %22 : vector<2x10xf32>
      %cst_19 = arith.constant dense<0xFF800000> : vector<2xf32>
      %24 = vector.multi_reduction <maximumf>, %23, %cst_19 [1] : vector<2x10xf32> to vector<2xf32>
      %25 = vector.shape_cast %24 : vector<2xf32> to vector<2x1xf32>
      %26 = vector.broadcast %25 : vector<2x1xf32> to vector<2x10xf32>
      %27 = arith.subf %23, %26 : vector<2x10xf32>
      %28 = math.exp %27 : vector<2x10xf32>
      %cst_20 = arith.constant dense<0.000000e+00> : vector<2xf32>
      %29 = vector.multi_reduction <add>, %28, %cst_20 [1] : vector<2x10xf32> to vector<2xf32>
      %30 = vector.shape_cast %29 : vector<2xf32> to vector<2x1xf32>
      %31 = math.log %30 : vector<2x1xf32>
      %32 = vector.broadcast %31 : vector<2x1xf32> to vector<2x10xf32>
      %33 = arith.subf %27, %32 : vector<2x10xf32>
      %c0_21 = arith.constant 0 : index
      %c0_22 = arith.constant 0 : index
      %34 = vector.load %arg6[%c0_21, %c0_22] : memref<2x10xf32, #tpu.memory_space<vmem>>, vector<2x10xf32>
      tpu.vector_store %arg6[%c0_21, %c0_22], %33 {strides = array<i32>} : memref<2x10xf32, #tpu.memory_space<vmem>>, vector<2x10xf32>,
    } else {
    }
    return
  }
  func.func @transform_0(%arg0: i32) -> (i32, i32) {
    %c0_i32 = arith.constant 0 : i32
    %c0_i32_0 = arith.constant 0 : i32
    %c0_i32_1 = arith.constant 0 : i32
    return %c0_i32, %c0_i32_0 : i32, i32
  }
  func.func @transform_1(%arg0: i32) -> (i32, i32) {
    %c0_i32 = arith.constant 0 : i32
    %c0_i32_0 = arith.constant 0 : i32
    return %c0_i32, %arg0 : i32, i32
  }
  func.func @transform_2(%arg0: i32) -> (i32, i32) {
    %c0_i32 = arith.constant 0 : i32
    %c0_i32_0 = arith.constant 0 : i32
    return %c0_i32, %arg0 : i32, i32
  }
  func.func @transform_3(%arg0: i32) -> (i32, i32) {
    %c0_i32 = arith.constant 0 : i32
    %c0_i32_0 = arith.constant 0 : i32
    return %arg0, %c0_i32 : i32, i32
  }
  func.func @transform_4(%arg0: i32) -> (i32, i32) {
    %c0_i32 = arith.constant 0 : i32
    %c0_i32_0 = arith.constant 0 : i32
    %c0_i32_1 = arith.constant 0 : i32
    return %c0_i32, %c0_i32_0 : i32, i32
  }
  func.func @transform_5(%arg0: i32) -> (i32, i32) {
    %c0_i32 = arith.constant 0 : i32
    %c0_i32_0 = arith.constant 0 : i32
    %c0_i32_1 = arith.constant 0 : i32
    return %c0_i32, %c0_i32_0 : i32, i32
  }
}

</mosaic_0001>

<bundles_post_ra>
// kernel: simple_cnn_forward.2
= control target key start
LH: loop header
LB: loop body
LE: loop exit
PB: predicated region body
PF: predicated region fallthrough
CT: control target
= control target key end

     0   :  { %10 = vsyncpa [#allocation4], 0  ;;  %s2610_s0 = inlined_call_operand.vmem [shape: bf16[2,80,64], index: 0, kind: input, shape index: {}]   ;;  %s2611_s1 = inlined_call_operand.hbm [shape: bf16[4,64,128], index: 1, kind: input, shape index: {}]   ;;  %s2612_s2 = inlined_call_operand.hbm [shape: f32[1,128], index: 2, kind: input, shape index: {}]   ;;  %s2613_s3 = inlined_call_operand.vmem [shape: bf16[4,128,64], index: 3, kind: input, shape index: {}]   ;;  %s2614_s4 = inlined_call_operand.hbm [shape: f32[1,64], index: 4, kind: input, shape index: {}]   ;;  %s2615_s5 = inlined_call_operand.vmem [shape: bf16[2,56,64], index: 5, kind: output, shape index: {}]  }
   0x1   :  { %11 = vsyncpa [#allocation6], 0  ;;  %s2286_s18 = smov 0  }
   0x2 LB: > { %s2250_s19 = smov [#allocation5]   ;;  %s2292_s21 = sadd.s32 4294967295, %s2248_s18   ;;  %s2248_s18 = sphi %s2286_s18, %s17_s18  }
   0x3   : > { %s184_s20 = sshll.u32 %s2250_s19, 4  ;;  %p1613_p0 = scmp.ge.s32.totalorder %s2248_s18, 1  ;;  %s185_s20 = int_to_ptr.vmem [resolvable:$true] %s184_s20 }
   0x4   : > { %p158_p1 = scmp.lt.s32.totalorder %s2248_s18, 3  ;;  %p2616_p2 = scmp.eq.s32.totalorder %s2292_s21, 0 }
   0x5   : > { %s2251_s23 = smov [#allocation3]   ;;  %s2252_s26 = smov [#allocation7]  }
   0x6   : > { %p2297_p3 = pnand %p1613_p0, %p158_p1  ;;  %s170_s24 = sshll.u32 %s2251_s23, 4  ;;  %s2309_s24 = int_to_ptr.vmem [resolvable:$true] %s170_s24 }
   0x7   : > { %s198_s27 = sshll.u32 %s2252_s26, 4  ;;  %s2150_s30 = scalar_lea.hbm %s2612_s2, 16  ;;  %s2311_s27 = int_to_ptr.vmem [resolvable:$true] %s198_s27 }
   0x8   : > { %s2618_s22 = scalar_select %p2297_p3, 1, 0 }
   0x9   : > { %p2058_p4 = pneg %p2297_p3  ;;  %p2151_p6 = scmp.ne.s32.totalorder %s2612_s2, %s2150_s30 }
   0xa   : > { %p2157_p10 = scmp.lt.u32.totalorder %s2150_s30, %s2612_s2 }
   0xb   : > { %p2305_p5 = pnand %p2616_p2, %p2058_p4 }
   0xd   : > { %p2321_p7 = pneg %p2305_p5 }
   0xf   : > { %p2153_p8 = pnand %p2321_p7, %p2151_p6 }
  0x11   : > { %p2154_p9 = pneg %p2153_p8 }
  0x13   : > { %p2159_p11 = pnand %p2157_p10, %p2154_p9 }
  0x15   : > { %2162 = shalt.err (!%p2159_p11)
}
  0x16   : > { %s2163_s11 = scalar_lea.vmem %s185_s20, 16  ;;  %s2170_s12 = scalar_lea.vmem %s185_s20, 32 }
  0x17   : > { %p2164_p12 = scmp.ne.s32.totalorder %s185_s20, %s2163_s11  ;;  %p2171_p1 = scmp.lt.s32.totalorder %s185_s20, %s185_s20 }
  0x18   : > { %p2172_p4 = scmp.lt.s32.totalorder %s2170_s12, %s2163_s11 }
  0x19   : > { %p2166_p13 = pnand %p2164_p12, %p2321_p7 }
  0x1a   : > { %p2173_p2 = por %p2172_p4, %p2171_p1 }
  0x1b   : > { %p2167_p0 = pneg %p2166_p13 }
  0x1d   : > { %p2174_p3 = pnand %p2173_p2, %p2167_p0 }
  0x1f   : > { %2177 = shalt.err (!%p2174_p3)
}
  0x20   : > { %2064 = dma.hbm_to_vmem [thread:$0]  (!%p2305_p5), %s2612_s2, 16, %s185_s20, [#allocation6]  }
  0x21   : > { %s2178_s17 = scalar_lea.hbm %s2611_s1, 2048 }
  0x22   : > { %p2179_p6 = scmp.ne.s32.totalorder %s2611_s1, %s2178_s17  ;;  %p2185_p2 = scmp.lt.u32.totalorder %s2178_s17, %s2611_s1 }
  0x24   : > { %p2181_p8 = pnand %p2179_p6, %p2321_p7 }
  0x26   : > { %p2182_p9 = pneg %p2181_p8 }
  0x28   : > { %p2187_p3 = pnand %p2185_p2, %p2182_p9 }
  0x2a   : > { %2190 = shalt.err (!%p2187_p3)
}
  0x2b   : > { %s2191_s20 = scalar_lea.vmem %s2309_s24, 2048  ;;  %p2199_p13 = scmp.lt.s32.totalorder %s2309_s24, %s2309_s24 }
  0x2c   : > { %p2192_p10 = scmp.ne.s32.totalorder %s2309_s24, %s2191_s20  ;;  %p2200_p0 = scmp.lt.s32.totalorder %s2191_s20, %s2191_s20 }
  0x2e   : > { %p2194_p11 = pnand %p2192_p10, %p2321_p7  ;;  %p2201_p1 = por %p2200_p0, %p2199_p13 }
  0x30   : > { %p2195_p12 = pneg %p2194_p11 }
  0x32   : > { %p2202_p4 = pnand %p2201_p1, %p2195_p12 }
  0x34   : > { %2205 = shalt.err (!%p2202_p4)
}
  0x35   : > { %s2253_s29 = smov 64   ;;  %s2254_s30 = smov 4  }
  0x36   : > { %2061 = dma.hbm_to_vmem [thread:$0]  (!%p2305_p5), %s2611_s1, 2048, %s2309_s24, [#allocation4], %s2253_s29, %s2253_s29, %s2254_s30  }
  0x37   : > { %s2206_s11 = scalar_lea.hbm %s2614_s4, 16 }
  0x38   : > { %p2207_p6 = scmp.ne.s32.totalorder %s2614_s4, %s2206_s11  ;;  %p2213_p2 = scmp.lt.u32.totalorder %s2206_s11, %s2614_s4 }
  0x3a   : > { %p2209_p8 = pnand %p2207_p6, %p2321_p7 }
  0x3c   : > { %p2210_p9 = pneg %p2209_p8 }
  0x3e   : > { %p2215_p3 = pnand %p2213_p2, %p2210_p9 }
  0x40   : > { %2218 = shalt.err (!%p2215_p3)
}
  0x41   : > { %s2219_s24 = scalar_lea.vmem %s2311_s27, 16  ;;  %s2226_s16 = scalar_lea.vmem %s2311_s27, 32 }
  0x42   : > { %p2220_p10 = scmp.ne.s32.totalorder %s2311_s27, %s2219_s24  ;;  %p2227_p13 = scmp.lt.s32.totalorder %s2311_s27, %s2311_s27 }
  0x43   : > { %p2228_p0 = scmp.lt.s32.totalorder %s2226_s16, %s2219_s24 }
  0x44   : > { %p2222_p11 = pnand %p2220_p10, %p2321_p7 }
  0x45   : > { %p2229_p1 = por %p2228_p0, %p2227_p13 }
  0x46   : > { %p2223_p12 = pneg %p2222_p11 }
  0x48   : > { %p2230_p4 = pnand %p2229_p1, %p2223_p12 }
  0x4a   : > { %2233 = shalt.err (!%p2230_p4)
}
  0x4b   : > { %2067 = dma.hbm_to_vmem [thread:$0]  (!%p2305_p5), %s2614_s4, 16, %s2311_s27, [#allocation6]  }
  0x4c   : > { %p2621_p6 = scmp.ne.s32.totalorder %s2618_s22, 0 }
  0x4d   : > { %p2622_p7 = scmp.eq.s32.totalorder (!%p2621_p6), %s2292_s21, 0 }
  0x4e   : > { %219 = sbr.rel (%p2621_p6) target bundleno = 672 (0x2a0), region = 40 }
  0x55   : > { %2239 = dma.done.wait (%p2622_p7), [#allocation4], 2048   ;;  %p2623_p8 = pmov %p2622_p7 }
  0x56   : > { %p2624_p9 = pmov %p2622_p7 }
  0x57   : > { %2241 = vsyncadd (%p2623_p8), [#allocation4], 4294965248 }
  0x58   : > { %2243 = dma.done.wait (%p2624_p9), [#allocation6], 32   ;;  %p2625_p2 = pmov %p2622_p7 }
  0x59   : > { %p255_p3 = scmp.lt.s32.totalorder %s2292_s21, 1  ;;  %v2088_v0 = vld [vmem:[#allocation3 + $0x20] sm:$0xff]   ;;  %v2089_v1 = vld [vmem:[#allocation3 + $0x28] sm:$0xff]   ;;  %v2090_v2 = vld [vmem:[#allocation3 + $0x30] sm:$0xff]   ;;  %vm315_vm0 = vsmask.f32 7424 }
  0x5a   : > { %2245 = vsyncadd (%p2625_p2), [#allocation6], 4294967264  ;;  %1848 = vmatprep.subr.bf16.mxu0 %v2088_v0  ;;  %v2091_v14 = vld [vmem:[#allocation3 + $0x38] sm:$0xff]   ;;  %vm376_vm1 = vcmask 523264   ;;  %v2096_v28 = vld [vmem:[#allocation3] sm:$0xff]   ;;  %vm1517_vm2 = vcmask 519168  }
  0x5b   : > { %s2627_s21 = smov (!%p255_p3, %s2292_s21), 1  ;;  %1849 = vmatpush3.bf16.msra.mxu0 %v2088_v0  ;;  %v2097_v32 = vld [vmem:[#allocation3 + $0x8] sm:$0xff]   ;;  %v2100_v40 = vld [vmem:[#allocation3 + $0x10] sm:$0xff]   ;;  %v2101_v42 = vld [vmem:[#allocation3 + $0x18] sm:$0xff]  }
  0x5c   : > { %s2044_s22 = smul.u32 40, %s2627_s21  ;;  %1850 = vmatprep.subr.bf16.mxu0 %v2089_v1  ;;  %v2118_v44 = vld [vmem:[%s2613_s3] sm:$0xff]   ;;  %v2102_v45 = vld [vmem:[#allocation3 + $0x40] sm:$0xff]   ;;  %v2103_v49 = vld [vmem:[#allocation3 + $0x48] sm:$0xff]  }
  0x5d   : > { %1936 = vmatprep.subr.bf16.mxu1 %v2118_v44  ;;  %v2119_v48 = vld [vmem:[%s2613_s3 + $0x8] sm:$0xff]   ;;  %v2121_v50 = vld [vmem:[%s2613_s3 + $0x10] sm:$0xff]   ;;  %v2123_v54 = vld [vmem:[%s2613_s3 + $0x18] sm:$0xff]   ;;  %s2045_s19 = smul.u32 28, %s2627_s21 }
  0x5e   : > { %s2402_s8 = scalar_lea.vmem %s2610_s0, %s2044_s22  ;;  %1937 = vmatpush3.bf16.msra.mxu1 %v2118_v44  ;;  %v2104_v55 = vld [vmem:[#allocation3 + $0x50] sm:$0xff]   ;;  %v2105_v56 = vld [vmem:[#allocation3 + $0x58] sm:$0xff]   ;;  %v2107_v58 = vld [vmem:[#allocation3 + $0x60] sm:$0xff]  }
  0x5f   : > { %v266_v3 = vld [vmem:[%s2402_s8] sm:$0xf]  ;;  %v2406_v4 = vld [vmem:[%s2402_s8 + $0x4] sm:$0xf]  ;;  %v2409_v5 = vld [vmem:[%s2402_s8 + $0x8] sm:$0xf]  ;;  %1851 = vmatpush3.bf16.msra.mxu0 %v2089_v1  ;;  %1938 = vmatprep.subr.bf16.mxu1 %v2119_v48  ;;  %s2591_s27 = scalar_lea.vmem %s2615_s5, %s2045_s19 }
  0x60   : > { %v2412_v6 = vld [vmem:[%s2402_s8 + $0xc] sm:$0xf]  ;;  %v2415_v7 = vld [vmem:[%s2402_s8 + $0x10] sm:$0xf]  ;;  %v1624_v8 = vcombine.low %v266_v3, %v2406_v4  ;;  %v2419_v9 = vld [vmem:[%s2402_s8 + $0x14] sm:$0xf]  ;;  %1852 = vmatprep.subr.bf16.mxu0 %v2090_v2  ;;  %v1645_v57 = vcombine.low %v2406_v4, %v2409_v5 }
  0x61   : > { %v2423_v10 = vcombine.low %v2409_v5, %v2412_v6  ;;  %v2427_v11 = vcombine.low %v2415_v7, %v2419_v9  ;;  %v2433_v18 = vld [vmem:[%s2402_s8 + $0x18] sm:$0xf]  ;;  %v2436_v20 = vld [vmem:[%s2402_s8 + $0x1c] sm:$0xf]  ;;  %v2113_v43 = vld [vmem:[%s2402_s8 + $0x4] sm:$0xff]   ;;  %v1646_v59 = vcombine.low %v2412_v6, %v2415_v7 }
  0x62   : > { %v317_v12 = vshrl.u32 %v1624_v8, 16  ;;  %v319_v13 = vshll.u32 %v1624_v8, 16  ;;  %v2441_v24 = vcombine.low %v2433_v18, %v2436_v20  ;;  %v2099_v25 = vld [vmem:[%s2402_s8 + $0x20] ss:$0 sps:$4 sm:$0x11]   ;;  %v2114_v46 = vld [vmem:[%s2402_s8 + $0xc] sm:$0xff]   ;;  %1939 = vmatpush3.bf16.msra.mxu1 %v2119_v48  ;;  %v1647_v61 = vcombine.low %v2419_v9, %v2433_v18 }
  0x63   : > { %v324_v15 = vshll.u32 %v2423_v10, 16  ;;  %v328_v16 = vshrl.u32 %v2423_v10, 16  ;;  %v332_v17 = vshll.u32 %v2427_v11, 16  ;;  %v336_v21 = vshrl.u32 %v2427_v11, 16  ;;  %1853 = vmatpush3.bf16.msra.mxu0 %v2090_v2  ;;  %1940 = vmatprep.subr.bf16.mxu1 %v2121_v50  ;;  %v2108_v60 = vld [vmem:[#allocation3 + $0x68] sm:$0xff]   ;;  %v2111_v0 = vld [vmem:[#allocation3 + $0x70] sm:$0xff]  }
  0x64   : > { %v321_v19 = vrot.slane %v319_v13, 1  ;;  %1854 = vmatprep.subr.bf16.mxu0 %v2091_v14  ;;  %v340_v30 = vshll.u32 %v2441_v24, 16  ;;  %v344_v35 = vshrl.u32 %v2441_v24, 16  ;;  %v348_v36 = vshll.u32 %v2099_v25, 16  ;;  %v2115_v62 = vld [vmem:[%s2402_s8 + $0x14] sm:$0xff]   ;;  %v2116_v3 = vld [vmem:[%s2402_s8 + $0x1c] sm:$0xff]  }
  0x65   : > { %v326_v22 = vrot.slane %v324_v15, 1  ;;  %v334_v23 = vrot.slane %v332_v17, 1  ;;  %v720_v47 = vshll.u32 %v2113_v43, 16  ;;  %v718_v51 = vshrl.u32 %v2113_v43, 16  ;;  %v551_v63 = vld [vmem:[%s2402_s8 + $0x20] sm:$0xf] }
  0x66   : > { %v322_v26 = vor.u32 %v321_v19, %v317_v12  ;;  %v342_v33 = vrot.slane %v340_v30, 1  ;;  %v350_v39 = vrot.slane %v348_v36, 1  ;;  %v725_v52 = vshll.u32 %v2114_v46, 16  ;;  %1941 = vmatpush3.bf16.msra.mxu1 %v2121_v50  ;;  %v2112_v7 = vld [vmem:[#allocation3 + $0x78] sm:$0xff]   ;;  %v2131_v30 = vld [vmem:[%s2613_s3 + $0x38] sm:$0xff]  }
  0x67   : > { %v330_v27 = vor.u32 %v328_v16, %v326_v22  ;;  %v338_v29 = vor.u32 %v336_v21, %v334_v23  ;;  %1855 = vmatpush3.bf16.msra.mxu0 %v2091_v14  ;;  %v722_v53 = vrot.slane %v720_v47, 1  ;;  %1942 = vmatprep.subr.bf16.mxu1 %v2123_v54  ;;  %v1648_v4 = vcombine.low %v2436_v20, %v551_v63  ;;  %v2117_v13 = vld [vmem:[%s2402_s8 + $0x24] ss:$0 sps:$4 sm:$0x11]   ;;  %v2122_v21 = vld [vmem:[%s2613_s3 + $0x48] sm:$0xff]   ;;  %v2134_v36 = vld [vmem:[%s2613_s3 + $0x78] sm:$0xff]  }
  0x68   : > { %v327_v31 = vsel %vm315_vm0, %v322_v26, %v326_v22  ;;  %1864 = vmatprep.subr.bf16.mxu0 %v2096_v28  ;;  %v346_v38 = vor.u32 %v344_v35, %v342_v33  ;;  %v727_v2 = vrot.slane %v725_v52, 1  ;;  %v733_v5 = vshll.u32 %v2115_v62, 16  ;;  %v2120_v16 = vld [vmem:[%s2613_s3 + $0x40] sm:$0xff]   ;;  %v2127_v26 = vld [vmem:[%s2613_s3 + $0x28] sm:$0xff]  }
  0x69   : > { %1856 = vmatprep.mubr.msk.bf16.mxu0 %vm376_vm1, %v327_v31  ;;  %v335_v34 = vsel %vm315_vm0, %v330_v27, %v334_v23  ;;  %v343_v37 = vsel %vm315_vm0, %v338_v29, %v342_v33  ;;  %v723_v1 = vor.u32 %v722_v53, %v718_v51  ;;  %v729_v6 = vshrl.u32 %v2114_v46, 16  ;;  %v2125_v25 = vld [vmem:[%s2613_s3 + $0x20] sm:$0xff]   ;;  %v2124_v27 = vld [vmem:[%s2613_s3 + $0x50] sm:$0xff]   ;;  %v2126_v29 = vld [vmem:[%s2613_s3 + $0x58] sm:$0xff]  }
  0x6a   : > { %1857 = vmatmul.mubr.msk.bf16.vlgmr.msra.gmra.mrb[0].mxu0 %vm376_vm1, %v335_v34  ;;  %v351_v41 = vsel %vm315_vm0, %v346_v38, %v350_v39  ;;  %1943 = vmatpush3.bf16.msra.mxu1 %v2123_v54  ;;  %v737_v9 = vshrl.u32 %v2115_v62, 16  ;;  %v745_v18 = vshrl.u32 %v2116_v3, 16  ;;  %v749_v19 = vshll.u32 %v2117_v13, 16  ;;  %v2128_v31 = vld [vmem:[%s2613_s3 + $0x60] sm:$0xff]   ;;  %v2130_v33 = vld [vmem:[%s2613_s3 + $0x68] sm:$0xff]   ;;  %v2132_v34 = vld [vmem:[%s2613_s3 + $0x70] sm:$0xff]  }
  0x6b   : > { %1865 = vmatpush3.bf16.msra.mxu0 %v2096_v28  ;;  %1860 = vmatprep.mubr.msk.bf16.mxu0 %vm376_vm1, %v343_v37  ;;  %v731_v12 = vor.u32 %v729_v6, %v727_v2  ;;  %v2129_v28 = vld [vmem:[%s2613_s3 + $0x30] sm:$0xff]   ;;  %v2255_v35 = vmov 0.0   ;;  %v1670_v37 = vld [vmem:[#allocation5] ss:$0 sm:$0xff]  ;;  %v2138_v13 = vld [vmem:[%s2613_s3 + $0xa0] sm:$0xff]  }
  0x6c   : > { %1866 = vmatprep.subr.bf16.mxu0 %v2097_v32  ;;  %v751_v23 = vrot.slane %v749_v19, 1  ;;  %1944 = vmatprep.subr.bf16.mxu1 %v2125_v25  ;;  %893 = vst [vmem:[#allocation2 + $0x40] sm:$0xff] %v2255_v35 }
  0x6e   : > { %1945 = vmatpush3.bf16.msra.mxu1 %v2125_v25  ;;  %v2144_v25 = vld [vmem:[%s2613_s3 + $0xd0] sm:$0xff]  }
  0x6f   : > { %1867 = vmatpush3.bf16.msra.mxu0 %v2097_v32  ;;  %1946 = vmatprep.subr.bf16.mxu1 %v2127_v26  ;;  %v2133_v32 = vld [vmem:[%s2613_s3 + $0x80] sm:$0xff]  }
  0x70   : > { %1868 = vmatprep.subr.bf16.mxu0 %v2100_v40 }
  0x72   : > { %1861 = vmatmul.mubr.msk.bf16.gmra.mrb[4].mxu0 %vm376_vm1, %v351_v41  ;;  %1947 = vmatpush3.bf16.msra.mxu1 %v2127_v26 }
  0x73   : > { %1869 = vmatpush3.bf16.msra.mxu0 %v2100_v40  ;;  %1872 = vmatprep.mubr.msk.bf16.mxu0 %vm376_vm1, %v1624_v8  ;;  %v728_v8 = vsel %vm315_vm0, %v723_v1, %v727_v2  ;;  %v2136_v1 = vld [vmem:[%s2613_s3 + $0x90] sm:$0xff]  }
  0x74   : > { %1870 = vmatprep.subr.bf16.mxu0 %v2101_v42  ;;  %1948 = vmatprep.subr.bf16.mxu1 %v2129_v28 }
  0x76   : > { %1949 = vmatpush3.bf16.msra.mxu1 %v2129_v28 }
  0x77   : > { %1871 = vmatpush3.bf16.msra.mxu0 %v2101_v42  ;;  %1950 = vmatprep.subr.bf16.mxu1 %v2131_v30 }
  0x78   : > { %1880 = vmatprep.subr.bf16.mxu0 %v2102_v45 }
  0x7a   : > { %1873 = vmatmul.mubr.msk.bf16.vlgmr.msra.gmra.mrb[0].mxu0 %vm376_vm1, %v2423_v10  ;;  %v741_v10 = vshll.u32 %v2116_v3, 16  ;;  %1951 = vmatpush3.bf16.msra.mxu1 %v2131_v30  ;;  %v2147_v30 = vld [vmem:[%s2613_s3 + $0xe8] sm:$0xff]  }
  0x7b   : > { %1881 = vmatpush3.bf16.msra.mxu0 %v2102_v45  ;;  %1876 = vmatprep.mubr.msk.bf16.mxu0 %vm376_vm1, %v2427_v11  ;;  %v735_v11 = vrot.slane %v733_v5, 1 }
  0x7c   : > { %1882 = vmatprep.subr.bf16.mxu0 %v2103_v49  ;;  %v743_v15 = vrot.slane %v741_v10, 1  ;;  %1960 = vmatprep.subr.bf16.mxu1 %v2133_v32  ;;  %v2137_v10 = vld [vmem:[%s2613_s3 + $0x98] sm:$0xff]  }
  0x7d   : > { %v739_v14 = vor.u32 %v737_v9, %v735_v11  ;;  %v736_v17 = vsel %vm315_vm0, %v731_v12, %v735_v11 }
  0x7e   : > { %v747_v22 = vor.u32 %v745_v18, %v743_v15  ;;  %v2139_v18 = vld [vmem:[%s2613_s3 + $0xa8] sm:$0xff]  }
  0x7f   : > { %1883 = vmatpush3.bf16.msra.mxu0 %v2103_v49  ;;  %v744_v20 = vsel %vm315_vm0, %v739_v14, %v743_v15 }
  0x80   : > { %1884 = vmatprep.subr.bf16.mxu0 %v2104_v55 }
  0x82   : > { %1877 = vmatmul.mubr.msk.bf16.gmra.mrb[4].mxu0 %vm376_vm1, %v2441_v24  ;;  %v752_v24 = vsel %vm315_vm0, %v747_v22, %v751_v23  ;;  %v2141_v22 = vld [vmem:[%s2613_s3 + $0xb8] sm:$0xff]   ;;  %v2142_v23 = vld [vmem:[%s2613_s3 + $0xc0] sm:$0xff]  }
  0x83   : > { %1885 = vmatpush3.bf16.msra.mxu0 %v2104_v55  ;;  %1888 = vmatprep.mubr.msk.bf16.mxu0 %vm376_vm1, %v1645_v57 }
  0x84   : > { %1886 = vmatprep.subr.bf16.mxu0 %v2105_v56 }
  0x87   : > { %1887 = vmatpush3.bf16.msra.mxu0 %v2105_v56  ;;  %v2135_v56 = vld [vmem:[%s2613_s3 + $0x88] sm:$0xff]  }
  0x88   : > { %1896 = vmatprep.subr.bf16.mxu0 %v2107_v58 }
  0x8a   : > { %1889 = vmatmul.mubr.msk.bf16.vlgmr.msra.gmra.mrb[0].mxu0 %vm376_vm1, %v1646_v59 }
  0x8b   : > { %1897 = vmatpush3.bf16.msra.mxu0 %v2107_v58  ;;  %1892 = vmatprep.mubr.msk.bf16.mxu0 %vm376_vm1, %v1647_v61 }
  0x8c   : > { %1898 = vmatprep.subr.bf16.mxu0 %v2108_v60 }
  0x8f   : > { %1899 = vmatpush3.bf16.msra.mxu0 %v2108_v60 }
  0x90   : > { %1900 = vmatprep.subr.bf16.mxu0 %v2111_v0 }
  0x92   : > { %1893 = vmatmul.mubr.msk.bf16.gmra.mrb[4].mxu0 %vm376_vm1, %v1648_v4 }
  0x93   : > { %1901 = vmatpush3.bf16.msra.mxu0 %v2111_v0  ;;  %1904 = vmatprep.mubr.msk.bf16.mxu0 %vm376_vm1, %v728_v8 }
  0x94   : > { %1902 = vmatprep.subr.bf16.mxu0 %v2112_v7 }
  0x97   : > { %1903 = vmatpush3.bf16.msra.mxu0 %v2112_v7 }
  0x98   : > { %1912 = vmatprep.subr.bf16.mxu0 %v2120_v16 }
  0x9a   : > { %1905 = vmatmul.mubr.msk.bf16.vlgmr.msra.gmra.mrb[0].mxu0 %vm376_vm1, %v736_v17 }
  0x9b   : > { %1908 = vmatprep.mubr.msk.bf16.mxu0 %vm376_vm1, %v744_v20  ;;  %1913 = vmatpush3.bf16.msra.mxu0 %v2120_v16  ;;  %v2140_v20 = vld [vmem:[%s2613_s3 + $0xb0] sm:$0xff]  }
  0x9c   : > { %1914 = vmatprep.subr.bf16.mxu0 %v2122_v21 }
  0x9f   : > { %1915 = vmatpush3.bf16.msra.mxu0 %v2122_v21 }
  0xa0   : > { %1916 = vmatprep.subr.bf16.mxu0 %v2124_v27 }
  0xa2   : > { %1909 = vmatmul.mubr.msk.bf16.gmra.mrb[4].mxu0 %vm376_vm1, %v752_v24  ;;  %v2143_v24 = vld [vmem:[%s2613_s3 + $0xc8] sm:$0xff]  }
  0xa3   : > { %1917 = vmatpush3.bf16.msra.mxu0 %v2124_v27  ;;  %v2145_v27 = vld [vmem:[%s2613_s3 + $0xd8] sm:$0xff]  }
  0xa4   : > { %1918 = vmatprep.subr.bf16.mxu0 %v2126_v29 }
  0xa7   : > { %1919 = vmatpush3.bf16.msra.mxu0 %v2126_v29  ;;  %v2146_v29 = vld [vmem:[%s2613_s3 + $0xe0] sm:$0xff]  }
  0xa8   : > { %1920 = vmatprep.subr.bf16.mxu0 %v2128_v31 }
  0xab   : > { %1921 = vmatpush3.bf16.msra.mxu0 %v2128_v31  ;;  %v2148_v31 = vld [vmem:[%s2613_s3 + $0xf0] sm:$0xff]  }
  0xac   : > { %1922 = vmatprep.subr.bf16.mxu0 %v2130_v33 }
  0xaf   : > { %1923 = vmatpush3.bf16.msra.mxu0 %v2130_v33 }
  0xb0   : > { %1924 = vmatprep.subr.bf16.mxu0 %v2132_v34 }
  0xb3   : > { %1925 = vmatpush3.bf16.msra.mxu0 %v2132_v34 }
  0xb4   : > { %1926 = vmatprep.subr.bf16.mxu0 %v2134_v36 }
  0xb7   : > { %1927 = vmatpush3.bf16.msra.mxu0 %v2134_v36 }
 0x16d   : > { %v1906_v38 = vpop.f32.mrb[0].mxu0 }
 0x16e   : > { %v871_v39 = vadd.f32 %v1906_v38, %v1670_v37  ;;  %v823_v40 = vpop.f32.mrb[1].mxu0 }
 0x16f   : > { %v869_v41 = vadd.f32 %v1670_v37, %v823_v40  ;;  %v1907_v42 = vpop.f32.mrb[2].mxu0 }
 0x170   : > { %v879_v43 = vmax.f32 %v871_v39, 0.0  ;;  %v872_v44 = vadd.f32 %v1907_v42, %v1670_v37  ;;  %v826_v45 = vpop.f32.mrb[3].mxu0 }
 0x171   : > { %v877_v46 = vmax.f32 %v869_v41, 0.0  ;;  %v870_v47 = vadd.f32 %v1670_v37, %v826_v45 }
 0x172   : > { %887 = vst [vmem:[#allocation2 + $0x10] sm:$0xff] %v879_v43  ;;  %v2537_v48 = vmax.f32 %v872_v44, 0.0 }
 0x173   : > { %885 = vst [vmem:[#allocation2] sm:$0xff] %v877_v46  ;;  %v878_v49 = vmax.f32 %v870_v47, 0.0 }
 0x174   : > { %888 = vst [vmem:[#allocation2 + $0x18] sm:$0xff] %v2537_v48  ;;  %v902_v50 = vpack.c.bf16 %v2537_v48, %v879_v43 }
 0x175   : > { %886 = vst [vmem:[#allocation2 + $0x8] sm:$0xff] %v878_v49  ;;  %v1910_v51 = vpop.f32.mrb[4].mxu0  ;;  %v901_v52 = vpack.c.bf16 %v878_v49, %v877_v46  ;;  %v1180_v53 = vpack.c.bf16 %v879_v43, %v878_v49 }
 0x176   : > { %v875_v54 = vadd.f32 %v1910_v51, %v1670_v37  ;;  %v839_v55 = vpop.f32.mrb[5].mxu0 }
 0x177   : > { %v873_v57 = vadd.f32 %v1670_v37, %v839_v55  ;;  %v1911_v58 = vpop.f32.mrb[6].mxu0  ;;  %1952 = vmatprep.mubr.bf16.mxu1 %v901_v52 }
 0x178   : > { %v883_v59 = vmax.f32 %v875_v54, 0.0  ;;  %v876_v60 = vadd.f32 %v1911_v58, %v1670_v37  ;;  %v842_v61 = vpop.f32.mrb[7].mxu0  ;;  %1953 = vmatmul.mubr.bf16.vlgmr.msra.gmra.mrb[0].mxu1 %v902_v50 }
 0x179   : > { %v881_v62 = vmax.f32 %v873_v57, 0.0  ;;  %v874_v63 = vadd.f32 %v1670_v37, %v842_v61  ;;  %1961 = vmatpush3.bf16.msra.mxu1 %v2133_v32  ;;  %v2149_v32 = vld [vmem:[%s2613_s3 + $0xf8] sm:$0xff]  }
 0x17a   : > { %891 = vst [vmem:[#allocation2 + $0x30] sm:$0xff] %v883_v59  ;;  %v884_v0 = vmax.f32 %v876_v60, 0.0  ;;  %1962 = vmatprep.subr.bf16.mxu1 %v2135_v56  ;;  %v904_v9 = vpack.c.bf16 %v883_v59, %v883_v59  ;;  %v1751_v60 = vld [vmem:[#allocation7] ss:$0 sm:$0xff] }
 0x17b   : > { %889 = vst [vmem:[#allocation2 + $0x20] sm:$0xff] %v881_v62  ;;  %v882_v2 = vmax.f32 %v874_v63, 0.0  ;;  %v1181_v3 = vpack.c.bf16 %v881_v62, %v2537_v48  ;;  %v923_v11 = vld [vmem:[#allocation2 + $0x11] sm:$0xff] }
 0x17c   : > { %892 = vst [vmem:[#allocation2 + $0x38] sm:$0xff] %v884_v0  ;;  %v921_v4 = vld [vmem:[#allocation2 + $0x1] sm:$0xff]  ;;  %v922_v5 = vld [vmem:[#allocation2 + $0x9] sm:$0xff]  ;;  %v1183_v26 = vpack.c.bf16 %v884_v0, %v884_v0 }
 0x17d   : > { %890 = vst [vmem:[#allocation2 + $0x28] sm:$0xff] %v882_v2  ;;  %v928_v6 = vpack.c.bf16 %v922_v5, %v921_v4  ;;  %1963 = vmatpush3.bf16.msra.mxu1 %v2135_v56  ;;  %v903_v7 = vpack.c.bf16 %v882_v2, %v881_v62  ;;  %v1182_v8 = vpack.c.bf16 %v883_v59, %v882_v2 }
 0x17e   : > { %1964 = vmatprep.subr.bf16.mxu1 %v2136_v1  ;;  %v1327_v28 = vpack.c.bf16 %v923_v11, %v922_v5 }
 0x17f   : > { %1928 = vmatprep.mubr.bf16.mxu0 %v928_v6  ;;  %1956 = vmatprep.mubr.bf16.mxu1 %v903_v7 }
 0x180   : > { %1957 = vmatmul.mubr.bf16.gmra.mrb[4].mxu1 %v904_v9 }
 0x181   : > { %1965 = vmatpush3.bf16.msra.mxu1 %v2136_v1  ;;  %1976 = vmatprep.mubr.bf16.mxu1 %v1180_v53 }
 0x182   : > { %v924_v12 = vld [vmem:[#allocation2 + $0x19] sm:$0xff]  ;;  %1966 = vmatprep.subr.bf16.mxu1 %v2137_v10 }
 0x183   : > { %v929_v14 = vpack.c.bf16 %v924_v12, %v923_v11  ;;  %v927_v19 = vld [vmem:[#allocation2 + $0x31] sm:$0xff]  ;;  %v1326_v35 = vld [vmem:[#allocation2 + $0x39] sm:$0xff] }
 0x184   : > { %v925_v15 = vld [vmem:[#allocation2 + $0x21] sm:$0xff]  ;;  %v926_v16 = vld [vmem:[#allocation2 + $0x29] sm:$0xff]  ;;  %v931_v21 = vpack.c.bf16 %v927_v19, %v927_v19  ;;  %v1330_v36 = vpack.c.bf16 %v1326_v35, %v1326_v35 }
 0x185   : > { %1929 = vmatmul.mubr.bf16.vlgmr.msra.gmra.mrb[8].mxu0 %v929_v14  ;;  %v930_v17 = vpack.c.bf16 %v926_v16, %v925_v15  ;;  %1967 = vmatpush3.bf16.msra.mxu1 %v2137_v10  ;;  %v1328_v33 = vpack.c.bf16 %v925_v15, %v924_v12  ;;  %v1329_v34 = vpack.c.bf16 %v927_v19, %v926_v16 }
 0x186   : > { %1968 = vmatprep.subr.bf16.mxu1 %v2138_v13 }
 0x187   : > { %1932 = vmatprep.mubr.bf16.mxu0 %v930_v17 }
 0x189   : > { %1969 = vmatpush3.bf16.msra.mxu1 %v2138_v13 }
 0x18a   : > { %1970 = vmatprep.subr.bf16.mxu1 %v2139_v18 }
 0x18d   : > { %1933 = vmatmul.mubr.bf16.gmra.mrb[12].mxu0 %v931_v21  ;;  %1971 = vmatpush3.bf16.msra.mxu1 %v2139_v18 }
 0x18e   : > { %1972 = vmatprep.subr.bf16.mxu1 %v2140_v20 }
 0x191   : > { %1973 = vmatpush3.bf16.msra.mxu1 %v2140_v20 }
 0x192   : > { %1974 = vmatprep.subr.bf16.mxu1 %v2141_v22 }
 0x195   : > { %1975 = vmatpush3.bf16.msra.mxu1 %v2141_v22 }
 0x196   : > { %1984 = vmatprep.subr.bf16.mxu1 %v2142_v23 }
 0x198   : > { %1977 = vmatmul.mubr.bf16.vlgmr.msra.gmra.mrb[0].mxu1 %v1181_v3 }
 0x199   : > { %1980 = vmatprep.mubr.bf16.mxu1 %v1182_v8  ;;  %1985 = vmatpush3.bf16.msra.mxu1 %v2142_v23 }
 0x19a   : > { %1986 = vmatprep.subr.bf16.mxu1 %v2143_v24 }
 0x19d   : > { %1987 = vmatpush3.bf16.msra.mxu1 %v2143_v24 }
 0x19e   : > { %1988 = vmatprep.subr.bf16.mxu1 %v2144_v25 }
 0x1a0   : > { %1981 = vmatmul.mubr.bf16.gmra.mrb[8].mxu1 %v1183_v26 }
 0x1a1   : > { %1989 = vmatpush3.bf16.msra.mxu1 %v2144_v25  ;;  %2000 = vmatprep.mubr.bf16.mxu1 %v1327_v28 }
 0x1a2   : > { %1990 = vmatprep.subr.bf16.mxu1 %v2145_v27 }
 0x1a5   : > { %1991 = vmatpush3.bf16.msra.mxu1 %v2145_v27 }
 0x1a6   : > { %1992 = vmatprep.subr.bf16.mxu1 %v2146_v29 }
 0x1a9   : > { %1993 = vmatpush3.bf16.msra.mxu1 %v2146_v29 }
 0x1aa   : > { %1994 = vmatprep.subr.bf16.mxu1 %v2147_v30 }
 0x1ad   : > { %1995 = vmatpush3.bf16.msra.mxu1 %v2147_v30 }
 0x1ae   : > { %1996 = vmatprep.subr.bf16.mxu1 %v2148_v31 }
 0x1b1   : > { %1997 = vmatpush3.bf16.msra.mxu1 %v2148_v31 }
 0x1b2   : > { %1998 = vmatprep.subr.bf16.mxu1 %v2149_v32 }
 0x1b5   : > { %1999 = vmatpush3.bf16.msra.mxu1 %v2149_v32 }
 0x1b8   : > { %2001 = vmatmul.mubr.bf16.vlgmr.msra.gmra.mrb[0].mxu1 %v1328_v33 }
 0x1b9   : > { %2004 = vmatprep.mubr.bf16.mxu1 %v1329_v34 }
 0x1c0   : > { %2005 = vmatmul.mubr.bf16.gmra.mrb[12].mxu1 %v1330_v36 }
 0x253   : > { %v1958_v37 = vpop.f32.mrb[4].mxu1 }
 0x254   : > { %v1159_v38 = vpop.f32.mrb[5].mxu1 }
 0x255   : > { %v1959_v39 = vpop.f32.mrb[6].mxu1 }
 0x256   : > { %v1162_v40 = vpop.f32.mrb[7].mxu1 }
 0x258   : > { %v1930_v41 = vpop.f32.mrb[8].mxu0 }
 0x259   : > { %v1031_v42 = vpop.f32.mrb[9].mxu0 }
 0x25a   : > { %v1931_v43 = vpop.f32.mrb[10].mxu0 }
 0x25b   : > { %v1034_v44 = vpop.f32.mrb[11].mxu0 }
 0x260   : > { %v1934_v45 = vpop.f32.mrb[12].mxu0 }
 0x261   : > { %v1168_v46 = vadd.f32 %v1958_v37, %v1934_v45  ;;  %v1047_v47 = vpop.f32.mrb[13].mxu0 }
 0x262   : > { %v1160_v48 = vadd.f32 %v1159_v38, %v1047_v47  ;;  %v1935_v49 = vpop.f32.mrb[14].mxu0 }
 0x263   : > { %v1050_v50 = vpop.f32.mrb[15].mxu0 }
 0x264   : > { %v1163_v51 = vadd.f32 %v1162_v40, %v1050_v50 }
 0x273   : > { %v1982_v52 = vpop.f32.mrb[8].mxu1 }
 0x274   : > { %v1319_v53 = vadd.f32 %v1982_v52, %v1168_v46  ;;  %v1299_v54 = vpop.f32.mrb[9].mxu1 }
 0x275   : > { %v1317_v55 = vadd.f32 %v1299_v54, %v1160_v48  ;;  %v1983_v56 = vpop.f32.mrb[10].mxu1 }
 0x276   : > { %v1302_v57 = vpop.f32.mrb[11].mxu1 }
 0x277   : > { %v1318_v58 = vadd.f32 %v1302_v57, %v1163_v51 }
 0x28b   : > { %v2002_v59 = vpop.f32.mrb[0].mxu1 }
 0x28c   : > { %v2008_v61 = vadd.f32 %v2002_v59, %v1930_v41  ;;  %v1430_v62 = vpop.f32.mrb[1].mxu1 }
 0x28d   : > { %v2009_v63 = vadd.f32 %v1430_v62, %v1031_v42  ;;  %v2003_v0 = vpop.f32.mrb[2].mxu1 }
 0x28e   : > { %v1476_v1 = vadd.f32 %v2008_v61, %v1751_v60  ;;  %v2010_v2 = vadd.f32 %v2003_v0, %v1931_v43  ;;  %v1433_v3 = vpop.f32.mrb[3].mxu1 }
 0x28f   : > { %v1474_v4 = vadd.f32 %v2009_v63, %v1751_v60  ;;  %v2011_v5 = vadd.f32 %v1433_v3, %v1034_v44 }
 0x290   : > { %v1483_v6 = vmax.f32 %v1476_v1, 0.0  ;;  %v1477_v7 = vadd.f32 %v2010_v2, %v1751_v60 }
 0x291   : > { %v1481_v8 = vmax.f32 %v1474_v4, 0.0  ;;  %v1475_v9 = vadd.f32 %v2011_v5, %v1751_v60 }
 0x292   : > { %v1763_v10 = vpack.c.bf16 %v1483_v6, %v1483_v6  ;;  %v1484_v11 = vmax.f32 %v1477_v7, 0.0 }
 0x293   : > { %v1761_v12 = vpack.c.bf16 %v1481_v8, %v1481_v8  ;;  %v1482_v13 = vmax.f32 %v1475_v9, 0.0  ;;  %v2006_v14 = vpop.f32.mrb[12].mxu1 }
 0x294   : > { %1520 = vst.msk [vmem:[%s2591_s27 + $0x8] sm:$0xf] %vm1517_vm2, %v1763_v10  ;;  %v1764_v15 = vpack.c.bf16 %v1484_v11, %v1484_v11  ;;  %v1466_v16 = vadd.f32 %v2006_v14, %v1319_v53  ;;  %v1446_v17 = vpop.f32.mrb[13].mxu1 }
 0x295   : > { %1518 = vst.msk [vmem:[%s2591_s27] sm:$0xf] %vm1517_vm2, %v1761_v12  ;;  %v1762_v18 = vpack.c.bf16 %v1482_v13, %v1482_v13  ;;  %v1464_v19 = vadd.f32 %v1446_v17, %v1317_v55  ;;  %v2007_v20 = vpop.f32.mrb[14].mxu1 }
 0x296   : > { %1521 = vst.msk [vmem:[%s2591_s27 + $0xc] sm:$0xf] %vm1517_vm2, %v1764_v15  ;;  %v1480_v21 = vadd.f32 %v1751_v60, %v1466_v16  ;;  %v1449_v22 = vpop.f32.mrb[15].mxu1 }
 0x297   : > { %1519 = vst.msk [vmem:[%s2591_s27 + $0x4] sm:$0xf] %vm1517_vm2, %v1762_v18  ;;  %v1478_v23 = vadd.f32 %v1751_v60, %v1464_v19  ;;  %v1465_v24 = vadd.f32 %v1449_v22, %v1318_v58 }
 0x298   : > { %v1487_v25 = vmax.f32 %v1480_v21, 0.0 }
 0x299   : > { %v1485_v26 = vmax.f32 %v1478_v23, 0.0  ;;  %v1479_v27 = vadd.f32 %v1751_v60, %v1465_v24 }
 0x29a   : > { %v1767_v28 = vpack.c.bf16 %v1487_v25, %v1487_v25 }
 0x29b   : > { %v1765_v29 = vpack.c.bf16 %v1485_v26, %v1485_v26  ;;  %v1486_v30 = vmax.f32 %v1479_v27, 0.0 }
 0x29c   : > { %1524 = vst.msk [vmem:[%s2591_s27 + $0x18] sm:$0xf] %vm1517_vm2, %v1767_v28 }
 0x29d   : > { %1522 = vst.msk [vmem:[%s2591_s27 + $0x10] sm:$0xf] %vm1517_vm2, %v1765_v29  ;;  %v1766_v31 = vpack.c.bf16 %v1486_v30, %v1486_v30 }
 0x29f   : > { %1523 = vst.msk [vmem:[%s2591_s27 + $0x14] sm:$0xf] %vm1517_vm2, %v1766_v31 }
 0x2a0 PF: > { %s17_s18 = sadd.s32 1, %s2248_s18  }
 0x2a1   : > { %p14_p5 = scmp.ge.s32.totalorder %s17_s18, 4  }
 0x2a3   :  { %16 = sbr.rel (!%p14_p5) target bundleno = 2 (0x2), region = 89 }
 0x2aa   :  { %1546 = vsyncpa [#allocation4], 1 }
 0x2ab   :  { %1548 = vsyncpa [#allocation4 + $0x1], 1 }
 0x2ac   :  { %1549 = vsyncpa [#allocation6], 1 }

// kernel: simple_cnn_forward.3
= control target key start
LH: loop header
LB: loop body
LE: loop exit
PB: predicated region body
PF: predicated region fallthrough
CT: control target
= control target key end

     0   :  { %s5845_s0 = inlined_call_operand.vmem [shape: bf16[2,3136], index: 0, kind: input, shape index: {}]   ;;  %s5846_s1 = inlined_call_operand.hbm [shape: bf16[3136,1024], index: 1, kind: input, shape index: {}]   ;;  %s5847_s2 = inlined_call_operand.hbm [shape: f32[1,1024], index: 2, kind: input, shape index: {}]   ;;  %s5848_s3 = inlined_call_operand.vmem [shape: bf16[1024,10], index: 3, kind: input, shape index: {}]   ;;  %s5849_s4 = inlined_call_operand.hbm [shape: f32[1,10], index: 4, kind: input, shape index: {}]   ;;  %s5850_s5 = inlined_call_operand.hbm [shape: f32[2,10], index: 5, kind: output, shape index: {}]  }
   0x1   :  { %5855 = sst [smem:[#allocation14_spill]] %s5846_s1 }
   0x2   :  { %10 = vsyncpa [#allocation4], 0 }
   0x3   :  { %12 = vsyncpa [#allocation4 + $0x1], 0 }
   0x4   :  { %13 = vsyncpa [#allocation7], 0 }
   0x5   :  { %15 = vsyncpa [#allocation7 + $0x1], 0 }
   0x6   :  { %16 = vsyncpa [#allocation5], 0  ;;  %s5097_s18 = smov 0   ;;  %s5099_s19 = smov 0  }
   0x7   :  { %s5101_s20 = smov 0   ;;  %s5103_s21 = smov 0  }
   0x8 LB: > { %s5116_s22 = sadd.s32 4294967295, %s5055_s21   ;;  %s5119_s23 = sadd.s32 1, %s5055_s21   ;;  %s5055_s21 = sphi %s5103_s21, %s5871_s21   ;;  %s5051_s20 = sphi %s5101_s20, %s5870_s20   ;;  %s5047_s19 = sphi %s5099_s19, %s5869_s19   ;;  %s5043_s18 = sphi %s5097_s18, %s5868_s18  }
   0x9   : > { %s47_s24 = ssub.s32 %s5055_s21, %s5119_s23  ;;  %s50_s25 = sadd.s32 1, %s5051_s20 }
   0xa   : > { %p48_p0 = scmp.eq.s32.totalorder %s47_s24, 0  ;;  %p57_p1 = scmp.ne.s32.totalorder %s5051_s20, %s5047_s19 }
   0xb   : > { %p58_p2 = scmp.eq.s32.totalorder %s5055_s21, 0  ;;  %p63_p3 = scmp.ne.s32.totalorder %s5047_s19, %s5043_s18 }
   0xc   : > { %s5129_s26 = scalar_select %p48_p0, %s5051_s20, %s50_s25  }
   0xd   : > { %p5131_p4 = por %p58_p2, %p57_p1  ;;  %p5851_p5 = scmp.eq.s32.totalorder %s5116_s22, 0 }
   0xe   : > { %p3710_p6 = scmp.ge.s32.totalorder %s5055_s21, 1  ;;  %p168_p7 = scmp.lt.s32.totalorder %s5055_s21, 5 }
   0xf   : > { %p5140_p8 = por %p5851_p5, %p63_p3  ;;  %s5057_s30 = smov [#allocation8]  }
  0x10   : > { %p5145_p10 = pnand %p3710_p6, %p168_p7  ;;  %s184_s6 = sshll.u32 %s5057_s30, 4  ;;  %s185_s6 = int_to_ptr.vmem [resolvable:$true] %s184_s6 }
  0x11   : > { %s5857_s28 = scalar_select %p5140_p8, 1, 0 }
  0x12   : > { %s5858_s29 = scalar_select %p5145_p10, 1, 0 }
  0x13   : > { %p4226_p11 = pneg %p5145_p10  ;;  %p4238_p12 = scmp.lt.s32.totalorder %s5055_s21, 4 }
  0x14   : > { %s5153_s7 = sand.u32 1, %s5051_s20   ;;  %s4140_s11 = sshll.u32 %s5055_s21, 7 }
  0x15   : > { %p5157_p13 = pnand %p4226_p11, %p5851_p5  ;;  %p5163_p0 = pnand %p4238_p12, %p5131_p4 }
  0x16   : > { %s4212_s10 = smul.u32 3136, %s5153_s7  ;;  %s4895_s14 = scalar_lea.hbm %s5849_s4, 16 }
  0x17   : > { %s5860_s9 = scalar_select %p5163_p0, 1, 0 }
  0x18   : > { %p4896_p1 = scmp.ne.s32.totalorder %s5849_s4, %s4895_s14  ;;  %p4897_p2 = pneg %p5157_p13 }
  0x19   : > { %p4902_p4 = scmp.lt.u32.totalorder %s4895_s14, %s5849_s4 }
  0x1a   : > { %p4898_p3 = pnand %p4897_p2, %p4896_p1 }
  0x1c   : > { %p4899_p6 = pneg %p4898_p3 }
  0x1e   : > { %p4904_p7 = pnand %p4902_p4, %p4899_p6 }
  0x20   : > { %4907 = shalt.err (!%p4904_p7)
}
  0x21   : > { %s4908_s24 = scalar_lea.vmem %s185_s6, 16  ;;  %s4915_s25 = scalar_lea.vmem %s185_s6, 32 }
  0x22   : > { %p4909_p11 = scmp.ne.s32.totalorder %s185_s6, %s4908_s24  ;;  %p4916_p5 = scmp.lt.s32.totalorder %s185_s6, %s185_s6 }
  0x23   : > { %p4917_p8 = scmp.lt.s32.totalorder %s4915_s25, %s4908_s24 }
  0x24   : > { %p4911_p12 = pnand %p4909_p11, %p4897_p2 }
  0x25   : > { %p4918_p10 = por %p4917_p8, %p4916_p5 }
  0x26   : > { %p4912_p9 = pneg %p4911_p12 }
  0x28   : > { %p4919_p0 = pnand %p4918_p10, %p4912_p9 }
  0x2a   : > { %4922 = shalt.err (!%p4919_p0)
}
  0x2b   : > { %4229 = dma.hbm_to_vmem [thread:$0]  (!%p5157_p13), %s5849_s4, 16, %s185_s6, [#allocation7]  }
  0x2c   : > { %s5861_s1 = sld [smem:[#allocation14_spill]]  ;;  %s199_s15 = scalar_lea.vmem [#allocation3], %s4212_s10 }
  0x2d   : > { %s206_s16 = sshll.u32 %s199_s15, 4  ;;  %s196_s8 = scalar_lea.sflag [#allocation4], %s5153_s7  ;;  %s5190_s16 = int_to_ptr.vmem [resolvable:$true] %s206_s16 }
  0x2e   : > { %p5862_p8 = scmp.ne.s32.totalorder %s5860_s9, 0 }
  0x30   : > { %p4925_p9 = pneg %p5862_p8 }
  0x32   : > { %s5188_s14 = scalar_lea.hbm %s5861_s1, %s4140_s11  ;;  %s4928_s18 = scalar_lea.hbm %s5861_s1, 200704 }
  0x33   : > { %s4923_s17 = scalar_lea.hbm %s5188_s14, 50176  ;;  %p4929_p0 = scmp.lt.u32.totalorder %s5188_s14, %s5861_s1 }
  0x34   : > { %p4924_p5 = scmp.ne.s32.totalorder %s5188_s14, %s4923_s17  ;;  %p4930_p1 = scmp.lt.u32.totalorder %s4928_s18, %s4923_s17 }
  0x35   : > { %p4932_p3 = scmp.lt.u32.totalorder %s4923_s17, %s5188_s14 }
  0x36   : > { %p4926_p10 = pnand %p4925_p9, %p4924_p5  ;;  %p4931_p2 = por %p4930_p1, %p4929_p0 }
  0x38   : > { %p4927_p13 = pneg %p4926_p10  ;;  %p4933_p6 = por %p4932_p3, %p4931_p2 }
  0x3a   : > { %p4934_p4 = pnand %p4933_p6, %p4927_p13 }
  0x3c   : > { %4937 = shalt.err (!%p4934_p4)
}
  0x3d   : > { %s4938_s10 = scalar_lea.vmem %s5190_s16, 50176  ;;  %s5058_s27 = smov [#allocation3]  }
  0x3e   : > { %p4939_p7 = scmp.ne.s32.totalorder %s5190_s16, %s4938_s10  ;;  %s4943_s30 = sshll.u32 %s5058_s27, 4  ;;  %s4944_s30 = int_to_ptr.vmem [resolvable:$false] %s4943_s30 }
  0x3f   : > { %s4945_s12 = scalar_lea.vmem %s4944_s30, 100352  ;;  %p4946_p5 = scmp.lt.s32.totalorder %s5190_s16, %s4944_s30 }
  0x40   : > { %p4941_p11 = pnand %p4939_p7, %p4925_p9  ;;  %p4947_p10 = scmp.lt.s32.totalorder %s4945_s12, %s4938_s10 }
  0x42   : > { %p4942_p12 = pneg %p4941_p11  ;;  %p4948_p0 = por %p4947_p10, %p4946_p5 }
  0x44   : > { %p4949_p1 = pnand %p4948_p0, %p4942_p12 }
  0x46   : > { %4952 = shalt.err (!%p4949_p1)
}
  0x47   : > { %s5059_s13 = smov 512   ;;  %s5060_s15 = smov 128  }
  0x48   : > { %s5061_s17 = smov 8   ;;  %s216_s6 = sand.u32 1, %s5055_s21  }
  0x49   : > { %4233 = dma.hbm_to_vmem [thread:$0]  (!%p5862_p8), %s5188_s14, 50176, %s5190_s16, %s196_s8, %s5059_s13, %s5060_s15, %s5061_s17  }
  0x4a   : > { %s3715_s11 = sshll.u32 %s5153_s7, 1  ;;  %s4141_s18 = sshll.u32 %s5055_s21, 5 }
  0x4b   : > { %s220_s24 = scalar_lea.vmem [#allocation6], %s3715_s11  ;;  %s5226_s30 = scalar_lea.hbm %s5847_s2, %s4141_s18 }
  0x4c   : > { %s228_s25 = sshll.u32 %s220_s24, 4  ;;  %s217_s12 = scalar_lea.sflag [#allocation7], %s216_s6  ;;  %s229_s25 = int_to_ptr.vmem [resolvable:$true] %s228_s25 }
  0x4d   : > { %s4953_s1 = scalar_lea.hbm %s5226_s30, 32  ;;  %s4958_s14 = scalar_lea.hbm %s5847_s2, 128 }
  0x4e   : > { %p4954_p13 = scmp.ne.s32.totalorder %s5226_s30, %s4953_s1  ;;  %p4959_p6 = scmp.lt.u32.totalorder %s5226_s30, %s5847_s2 }
  0x4f   : > { %p4960_p4 = scmp.lt.u32.totalorder %s4958_s14, %s4953_s1  ;;  %p4962_p11 = scmp.lt.u32.totalorder %s4953_s1, %s5226_s30 }
  0x50   : > { %p4956_p2 = pnand %p4954_p13, %p4925_p9 }
  0x51   : > { %p4961_p7 = por %p4960_p4, %p4959_p6 }
  0x52   : > { %p4957_p3 = pneg %p4956_p2 }
  0x53   : > { %p4963_p12 = por %p4962_p11, %p4961_p7 }
  0x55   : > { %p4964_p5 = pnand %p4963_p12, %p4957_p3 }
  0x57   : > { %4967 = shalt.err (!%p4964_p5)
}
  0x58   : > { %s4968_s13 = scalar_lea.vmem %s229_s25, 32  ;;  %s5062_s15 = smov [#allocation6]  }
  0x59   : > { %p4969_p10 = scmp.ne.s32.totalorder %s229_s25, %s4968_s13  ;;  %s4973_s17 = sshll.u32 %s5062_s15, 4  ;;  %s4974_s17 = int_to_ptr.vmem [resolvable:$false] %s4973_s17 }
  0x5a   : > { %s4975_s6 = scalar_lea.vmem %s4974_s17, 64  ;;  %p4976_p13 = scmp.lt.s32.totalorder %s229_s25, %s4974_s17 }
  0x5b   : > { %p4971_p0 = pnand %p4969_p10, %p4925_p9  ;;  %p4977_p2 = scmp.lt.s32.totalorder %s4975_s6, %s4968_s13 }
  0x5d   : > { %p4972_p1 = pneg %p4971_p0  ;;  %p4978_p4 = por %p4977_p2, %p4976_p13 }
  0x5f   : > { %p4979_p6 = pnand %p4978_p4, %p4972_p1 }
  0x61   : > { %4982 = shalt.err (!%p4979_p6)
}
  0x62   : > { %4236 = dma.hbm_to_vmem [thread:$0]  (!%p5862_p8), %s5226_s30, 32, %s229_s25, %s217_s12  }
  0x63   : > { %p5863_p3 = scmp.ne.s32.totalorder %s5858_s29, 0 }
  0x64   : > { %s248_s1 = sand.u32 (!%p5863_p3), 1, %s5047_s19   ;;  %p5864_p9 = scmp.ne.s32.totalorder (!%p5863_p3), %s5857_s28, 0 }
  0x65   : > { %246 = sbr.rel (%p5863_p3) target bundleno = 1315 (0x523), region = 40  ;;  %s249_s18 = scalar_lea.sflag (!%p5863_p3), [#allocation4], %s248_s1 }
  0x66   : > { %s4213_s11 = smul.u32 (!%p5863_p3), 3136, %s248_s1 }
  0x68   : > { %s5250_s24 = scalar_lea.vmem (!%p5863_p3), [#allocation3], %s4213_s11 }
  0x6c   : > { %5026 = dma.done.wait (%p5864_p9), %s249_s18, 50176  }
  0x6d   : > { %5028 = vsyncadd (%p5864_p9), %s249_s18, 4294917120  ;;  %s257_s9 = sand.u32 1, %s5116_s22   ;;  %s3719_s10 = sshll.u32 %s248_s1, 1 }
  0x6e   : > { %s258_s25 = scalar_lea.sflag [#allocation7], %s257_s9  ;;  %s5257_s27 = scalar_lea.vmem [#allocation6], %s3719_s10 }
  0x6f   : > { %5030 = dma.done.wait (%p5864_p9), %s258_s25, 32  }
  0x70   : > { %5032 = vsyncadd (%p5864_p9), %s258_s25, 4294967264  ;;  %p5865_p8 = scmp.eq.s32.totalorder %s5116_s22, 0 }
  0x72   : > { %5034 = dma.done.wait (%p5865_p8), [#allocation7], 16   ;;  %p5866_p7 = pmov %p5865_p8 }
  0x73   : > { %s3721_s29 = sshll.u32 %s5116_s22, 5  ;;  %p5867_p12 = scmp.ne.s32.totalorder %s5116_s22, 0 }
  0x74   : > { %5036 = vsyncadd (%p5866_p7), [#allocation7], 4294967280  ;;  %p300_p11 = scmp.lt.s32.totalorder %s3721_s29, 127  ;;  %vm310_vm0 = vcmask (!%p5867_p12), 74752   ;;  %v5063_v0 = vmov (!%p5867_p12), 0.0  }
  0x75   : > { %309 = sbr.rel (%p5867_p12) target bundleno = 124 (0x7c), region = 56  ;;  %311 = vst.msk [vmem:[#allocation2] sm:$0x3] (!%p5867_p12), %vm310_vm0, %v5063_v0 }
  0x76   : > { %s5873_s29 = smov (!%p300_p11, %s3721_s29), 127 }
  0x77   : > { %s3722_s30 = sshll.u32 %s5873_s29, 2 }
  0x78   : > { %s5271_s7 = scalar_lea.vmem %s5848_s3, %s3722_s30 }
  0x7c PF: > { %v4282_v1 = vld [vmem:[%s5250_s24 + $0x4] ss:$8 sps:$4 sm:$0xff]   ;;  %v4286_v3 = vld [vmem:[%s5250_s24] ss:$8 sps:$4 sm:$0xff]   ;;  %v4288_v5 = vld [vmem:[%s5250_s24 + $0x14] ss:$8 sps:$4 sm:$0xff]   ;;  %v710_v37 = vlaneseq }
  0x7d   : > { %v4284_v2 = vld [vmem:[%s5250_s24 + $0x604] ss:$8 sps:$4 sm:$0xff]   ;;  %2873 = vmatprep.subr.bf16.mxu1 %v4282_v1  ;;  %v4287_v4 = vld [vmem:[%s5250_s24 + $0x600] ss:$8 sps:$4 sm:$0xff]   ;;  %v4290_v6 = vld [vmem:[%s5250_s24 + $0x614] ss:$8 sps:$4 sm:$0xff]  }
  0x7e   : > { %3119 = vmatprep.subr.bf16.mxu0 %v4284_v2  ;;  %2874 = vmatpush1.bf16.msra.mxu1 %v4286_v3  ;;  %v4292_v7 = vld [vmem:[%s5250_s24 + $0x10] ss:$8 sps:$4 sm:$0xff]   ;;  %v4294_v9 = vld [vmem:[%s5250_s24 + $0x24] ss:$8 sps:$4 sm:$0xff]   ;;  %v4298_v11 = vld [vmem:[%s5250_s24 + $0x20] ss:$8 sps:$4 sm:$0xff]  }
  0x7f   : > { %3120 = vmatpush1.bf16.msra.mxu0 %v4287_v4  ;;  %2875 = vmatprep.subr.bf16.mxu1 %v4288_v5  ;;  %v4293_v8 = vld [vmem:[%s5250_s24 + $0x610] ss:$8 sps:$4 sm:$0xff]   ;;  %v4296_v10 = vld [vmem:[%s5250_s24 + $0x624] ss:$8 sps:$4 sm:$0xff]   ;;  %v4299_v12 = vld [vmem:[%s5250_s24 + $0x620] ss:$8 sps:$4 sm:$0xff]  }
  0x80   : > { %3121 = vmatprep.subr.bf16.mxu0 %v4290_v6  ;;  %v4300_v13 = vld [vmem:[%s5250_s24 + $0x34] ss:$8 sps:$4 sm:$0xff]   ;;  %v4304_v15 = vld [vmem:[%s5250_s24 + $0x30] ss:$8 sps:$4 sm:$0xff]   ;;  %v4306_v17 = vld [vmem:[%s5250_s24 + $0x44] ss:$8 sps:$4 sm:$0xff]  }
  0x81   : > { %v4302_v14 = vld [vmem:[%s5250_s24 + $0x634] ss:$8 sps:$4 sm:$0xff]   ;;  %v4305_v16 = vld [vmem:[%s5250_s24 + $0x630] ss:$8 sps:$4 sm:$0xff]   ;;  %v4308_v18 = vld [vmem:[%s5250_s24 + $0x644] ss:$8 sps:$4 sm:$0xff]  }
  0x82   : > { %2876 = vmatpush1.bf16.msra.mxu1 %v4292_v7  ;;  %v4310_v19 = vld [vmem:[%s5250_s24 + $0x40] ss:$8 sps:$4 sm:$0xff]   ;;  %v4312_v21 = vld [vmem:[%s5250_s24 + $0x54] ss:$8 sps:$4 sm:$0xff]   ;;  %v4316_v23 = vld [vmem:[%s5250_s24 + $0x50] ss:$8 sps:$4 sm:$0xff]  }
  0x83   : > { %3122 = vmatpush1.bf16.msra.mxu0 %v4293_v8  ;;  %2877 = vmatprep.subr.bf16.mxu1 %v4294_v9  ;;  %v4311_v20 = vld [vmem:[%s5250_s24 + $0x640] ss:$8 sps:$4 sm:$0xff]   ;;  %v4314_v22 = vld [vmem:[%s5250_s24 + $0x654] ss:$8 sps:$4 sm:$0xff]   ;;  %v4317_v24 = vld [vmem:[%s5250_s24 + $0x650] ss:$8 sps:$4 sm:$0xff]  }
  0x84   : > { %3123 = vmatprep.subr.bf16.mxu0 %v4296_v10  ;;  %v4318_v25 = vld [vmem:[%s5250_s24 + $0x64] ss:$8 sps:$4 sm:$0xff]   ;;  %v4322_v27 = vld [vmem:[%s5250_s24 + $0x60] ss:$8 sps:$4 sm:$0xff]   ;;  %v4324_v29 = vld [vmem:[%s5250_s24 + $0x74] ss:$8 sps:$4 sm:$0xff]  }
  0x85   : > { %v4320_v26 = vld [vmem:[%s5250_s24 + $0x664] ss:$8 sps:$4 sm:$0xff]   ;;  %v4323_v28 = vld [vmem:[%s5250_s24 + $0x660] ss:$8 sps:$4 sm:$0xff]   ;;  %v4326_v30 = vld [vmem:[%s5250_s24 + $0x674] ss:$8 sps:$4 sm:$0xff]  }
  0x86   : > { %2878 = vmatpush1.bf16.msra.mxu1 %v4298_v11  ;;  %v4328_v31 = vld [vmem:[%s5250_s24 + $0x70] ss:$8 sps:$4 sm:$0xff]   ;;  %v4330_v33 = vld [vmem:[%s5250_s24 + $0x84] ss:$8 sps:$4 sm:$0xff]   ;;  %v4334_v35 = vld [vmem:[%s5250_s24 + $0x80] ss:$8 sps:$4 sm:$0xff]  }
  0x87   : > { %3124 = vmatpush1.bf16.msra.mxu0 %v4299_v12  ;;  %2879 = vmatprep.subr.bf16.mxu1 %v4300_v13  ;;  %v4329_v32 = vld [vmem:[%s5250_s24 + $0x670] ss:$8 sps:$4 sm:$0xff]   ;;  %v4332_v34 = vld [vmem:[%s5250_s24 + $0x684] ss:$8 sps:$4 sm:$0xff]   ;;  %v4335_v36 = vld [vmem:[%s5250_s24 + $0x680] ss:$8 sps:$4 sm:$0xff]  }
  0x88   : > { %3125 = vmatprep.subr.bf16.mxu0 %v4302_v14  ;;  %v5064_v38 = vmov 1966171168   ;;  %v4336_v40 = vld [vmem:[%s5250_s24 + $0x94] ss:$8 sps:$4 sm:$0xff]   ;;  %v4340_v42 = vld [vmem:[%s5250_s24 + $0x90] ss:$8 sps:$4 sm:$0xff]  }
  0x89   : > { %v726_v39 = vunpack.c.l.s4 %v5064_v38  ;;  %v4338_v41 = vld [vmem:[%s5250_s24 + $0x694] ss:$8 sps:$4 sm:$0xff]   ;;  %v5314_v43 = vshrl.u32 %v710_v37, 7  ;;  %v4341_v45 = vld [vmem:[%s5250_s24 + $0x690] ss:$8 sps:$4 sm:$0xff]   ;;  %v313_v57 = vld [vmem:[%s5845_s0 + $0x8] sm:$0xff] }
  0x8a   : > { %2880 = vmatpush1.bf16.msra.mxu1 %v4304_v15  ;;  %v4342_v46 = vld [vmem:[%s5250_s24 + $0xa4] ss:$8 sps:$4 sm:$0xff]   ;;  %v4346_v48 = vld [vmem:[%s5250_s24 + $0xa0] ss:$8 sps:$4 sm:$0xff]   ;;  %v4348_v51 = vld [vmem:[%s5250_s24 + $0xb4] ss:$8 sps:$4 sm:$0xff]   ;;  %v773_v61 = vcombine.high %v313_v57, %v313_v57 }
  0x8b   : > { %3126 = vmatpush1.bf16.msra.mxu0 %v4305_v16  ;;  %2881 = vmatprep.subr.bf16.mxu1 %v4306_v17  ;;  %v727_v44 = vunpack.c.0.s8 %v726_v39  ;;  %v4344_v47 = vld [vmem:[%s5250_s24 + $0x6a4] ss:$8 sps:$4 sm:$0xff]   ;;  %v4347_v49 = vld [vmem:[%s5250_s24 + $0x6a0] ss:$8 sps:$4 sm:$0xff]   ;;  %v4350_v52 = vld [vmem:[%s5250_s24 + $0x6b4] ss:$8 sps:$4 sm:$0xff]  }
  0x8c   : > { %3127 = vmatprep.subr.bf16.mxu0 %v4308_v18  ;;  %v5329_v53 = vld [vmem:[%s5845_s0] sm:$0xff]  ;;  %v4352_v54 = vld [vmem:[%s5250_s24 + $0xb0] ss:$8 sps:$4 sm:$0xff]   ;;  %vm2869_vm1 = vcmask 523264   ;;  %vm3580_vm2 = vcmask 74752   ;;  %p4134_p5 = scmp.ne.s32.totalorder %s5116_s22, 3 }
  0x8d   : > { %v5322_v50 = vsub.s32 %v727_v44, %v5314_v43  ;;  %v4353_v56 = vld [vmem:[%s5250_s24 + $0x6b0] ss:$8 sps:$4 sm:$0xff]   ;;  %v4354_v58 = vld [vmem:[%s5250_s24 + $0xc4] ss:$8 sps:$4 sm:$0xff]   ;;  %v4358_v0 = vld [vmem:[%s5250_s24 + $0xc0] ss:$8 sps:$4 sm:$0xff]  }
  0x8e   : > { %2882 = vmatpush1.bf16.msra.mxu1 %v4310_v19  ;;  %v4356_v59 = vld [vmem:[%s5250_s24 + $0x6c4] ss:$8 sps:$4 sm:$0xff]   ;;  %v4359_v1 = vld [vmem:[%s5250_s24 + $0x6c0] ss:$8 sps:$4 sm:$0xff]   ;;  %v4360_v2 = vld [vmem:[%s5250_s24 + $0xd4] ss:$8 sps:$4 sm:$0xff]  }
  0x8f   : > { %3128 = vmatpush1.bf16.msra.mxu0 %v4311_v20  ;;  %2883 = vmatprep.subr.bf16.mxu1 %v4312_v21  ;;  %v731_v55 = vrot.slane %v5329_v53, %v5322_v50  ;;  %v787_v63 = vrot.slane %v773_v61, %v5322_v50  ;;  %v4362_v3 = vld [vmem:[%s5250_s24 + $0x6d4] ss:$8 sps:$4 sm:$0xff]   ;;  %v4364_v6 = vld [vmem:[%s5250_s24 + $0xd0] ss:$8 sps:$4 sm:$0xff]   ;;  %v4366_v8 = vld [vmem:[%s5250_s24 + $0xe4] ss:$8 sps:$4 sm:$0xff]  }
  0x90   : > { %3129 = vmatprep.subr.bf16.mxu0 %v4314_v22  ;;  %v4365_v7 = vld [vmem:[%s5250_s24 + $0x6d0] ss:$8 sps:$4 sm:$0xff]   ;;  %v4368_v9 = vld [vmem:[%s5250_s24 + $0x6e4] ss:$8 sps:$4 sm:$0xff]   ;;  %v4370_v10 = vld [vmem:[%s5250_s24 + $0xe0] ss:$8 sps:$4 sm:$0xff]  }
  0x91   : > { %v739_v60 = vcombine.high %v731_v55, %v731_v55  ;;  %v789_v4 = vcombine.high %v787_v63, %v787_v63  ;;  %v4371_v11 = vld [vmem:[%s5250_s24 + $0x6e0] ss:$8 sps:$4 sm:$0xff]   ;;  %v4372_v12 = vld [vmem:[%s5250_s24 + $0xf4] ss:$8 sps:$4 sm:$0xff]   ;;  %v4376_v14 = vld [vmem:[%s5250_s24 + $0xf0] ss:$8 sps:$4 sm:$0xff]   ;;  %v5360_v18 = vrot.slane %v731_v55, %v5322_v50  ;;  %v5363_v19 = vrot.slane %v787_v63, %v5322_v50 }
  0x92   : > { %2884 = vmatpush1.bf16.msra.mxu1 %v4316_v23  ;;  %v4374_v13 = vld [vmem:[%s5250_s24 + $0x6f4] ss:$8 sps:$4 sm:$0xff]   ;;  %v4377_v15 = vld [vmem:[%s5250_s24 + $0x6f0] ss:$8 sps:$4 sm:$0xff]   ;;  %v4381_v16 = vld [vmem:[%s5250_s24 + $0x104] ss:$8 sps:$4 sm:$0xff]  }
  0x93   : > { %3130 = vmatpush1.bf16.msra.mxu0 %v4317_v24  ;;  %2885 = vmatprep.subr.bf16.mxu1 %v4318_v25  ;;  %v761_v62 = vrot.slane %v739_v60, %v5322_v50  ;;  %v817_v5 = vrot.slane %v789_v4, %v5322_v50  ;;  %v4385_v17 = vld [vmem:[%s5250_s24 + $0x704] ss:$8 sps:$4 sm:$0xff]   ;;  %v4379_v20 = vld [vmem:[%s5250_s24 + $0x100] ss:$8 sps:$4 sm:$0xff]   ;;  %v4388_v22 = vld [vmem:[%s5250_s24 + $0x114] ss:$8 sps:$4 sm:$0xff]  }
  0x94   : > { %3131 = vmatprep.subr.bf16.mxu0 %v4320_v26  ;;  %v4383_v21 = vld [vmem:[%s5250_s24 + $0x700] ss:$8 sps:$4 sm:$0xff]   ;;  %v4391_v23 = vld [vmem:[%s5250_s24 + $0x714] ss:$8 sps:$4 sm:$0xff]   ;;  %v4386_v26 = vld [vmem:[%s5250_s24 + $0x110] ss:$8 sps:$4 sm:$0xff]  }
  0x95   : > { %2905 = vmatprep.mubr.bf16.mxu1 %v761_v62  ;;  %3151 = vmatprep.mubr.bf16.mxu0 %v817_v5  ;;  %v771_v24 = vcombine.high %v761_v62, %v761_v62  ;;  %v821_v25 = vcombine.high %v817_v5, %v817_v5  ;;  %v4409_v37 = vld [vmem:[%s5250_s24 + $0x744] ss:$8 sps:$4 sm:$0xff]   ;;  %v4404_v38 = vld [vmem:[%s5250_s24 + $0x140] ss:$8 sps:$4 sm:$0xff]   ;;  %v4413_v44 = vld [vmem:[%s5250_s24 + $0x750] ss:$8 sps:$4 sm:$0xff]  }
  0x96   : > { %2886 = vmatpush1.bf16.msra.mxu1 %v4322_v27  ;;  %v4389_v27 = vld [vmem:[%s5250_s24 + $0x710] ss:$8 sps:$4 sm:$0xff]   ;;  %v4407_v39 = vld [vmem:[%s5250_s24 + $0x740] ss:$8 sps:$4 sm:$0xff]   ;;  %v4430_v55 = vld [vmem:[%s5250_s24 + $0x184] ss:$8 sps:$4 sm:$0xff]  }
  0x97   : > { %3132 = vmatpush1.bf16.msra.mxu0 %v4323_v28  ;;  %2887 = vmatprep.subr.bf16.mxu1 %v4324_v29  ;;  %v4394_v28 = vld [vmem:[%s5250_s24 + $0x124] ss:$8 sps:$4 sm:$0xff]   ;;  %v4428_v57 = vld [vmem:[%s5250_s24 + $0x180] ss:$8 sps:$4 sm:$0xff]   ;;  %v4439_v60 = vld [vmem:[%s5250_s24 + $0x794] ss:$8 sps:$4 sm:$0xff]  }
  0x98   : > { %3133 = vmatprep.subr.bf16.mxu0 %v4326_v30  ;;  %v4397_v29 = vld [vmem:[%s5250_s24 + $0x724] ss:$8 sps:$4 sm:$0xff]   ;;  %v4392_v30 = vld [vmem:[%s5250_s24 + $0x120] ss:$8 sps:$4 sm:$0xff]   ;;  %v4434_v61 = vld [vmem:[%s5250_s24 + $0x190] ss:$8 sps:$4 sm:$0xff]  }
  0x99   : > { %v4437_v62 = vld [vmem:[%s5250_s24 + $0x790] ss:$8 sps:$4 sm:$0xff]   ;;  %v4442_v63 = vld [vmem:[%s5250_s24 + $0x1a4] ss:$8 sps:$4 sm:$0xff]   ;;  %v4451_v4 = vld [vmem:[%s5250_s24 + $0x7b4] ss:$8 sps:$4 sm:$0xff]  }
  0x9a   : > { %2888 = vmatpush1.bf16.msra.mxu1 %v4328_v31  ;;  %v4395_v31 = vld [vmem:[%s5250_s24 + $0x720] ss:$8 sps:$4 sm:$0xff]   ;;  %v4446_v5 = vld [vmem:[%s5250_s24 + $0x1b0] ss:$8 sps:$4 sm:$0xff]  }
  0x9b   : > { %3134 = vmatpush1.bf16.msra.mxu0 %v4329_v32  ;;  %2889 = vmatprep.subr.bf16.mxu1 %v4330_v33  ;;  %v4400_v32 = vld [vmem:[%s5250_s24 + $0x134] ss:$8 sps:$4 sm:$0xff]  }
  0x9c   : > { %3135 = vmatprep.subr.bf16.mxu0 %v4332_v34  ;;  %v4403_v33 = vld [vmem:[%s5250_s24 + $0x734] ss:$8 sps:$4 sm:$0xff]   ;;  %v4398_v34 = vld [vmem:[%s5250_s24 + $0x130] ss:$8 sps:$4 sm:$0xff]  }
  0x9e   : > { %2890 = vmatpush1.bf16.msra.mxu1 %v4334_v35  ;;  %v4401_v35 = vld [vmem:[%s5250_s24 + $0x730] ss:$8 sps:$4 sm:$0xff]  }
  0x9f   : > { %3136 = vmatpush1.bf16.msra.mxu0 %v4335_v36  ;;  %2891 = vmatprep.subr.bf16.mxu1 %v4336_v40  ;;  %v4406_v36 = vld [vmem:[%s5250_s24 + $0x144] ss:$8 sps:$4 sm:$0xff]   ;;  %v4412_v40 = vld [vmem:[%s5250_s24 + $0x154] ss:$8 sps:$4 sm:$0xff]  }
  0xa0   : > { %3137 = vmatprep.subr.bf16.mxu0 %v4338_v41  ;;  %v4415_v41 = vld [vmem:[%s5250_s24 + $0x754] ss:$8 sps:$4 sm:$0xff]  }
  0xa2   : > { %2892 = vmatpush1.bf16.msra.mxu1 %v4340_v42  ;;  %v4410_v42 = vld [vmem:[%s5250_s24 + $0x150] ss:$8 sps:$4 sm:$0xff]  }
  0xa3   : > { %3138 = vmatpush1.bf16.msra.mxu0 %v4341_v45  ;;  %2893 = vmatprep.subr.bf16.mxu1 %v4342_v46  ;;  %v4418_v45 = vld [vmem:[%s5250_s24 + $0x164] ss:$8 sps:$4 sm:$0xff]  }
  0xa4   : > { %3139 = vmatprep.subr.bf16.mxu0 %v4344_v47  ;;  %v4421_v46 = vld [vmem:[%s5250_s24 + $0x764] ss:$8 sps:$4 sm:$0xff]   ;;  %v4416_v47 = vld [vmem:[%s5250_s24 + $0x160] ss:$8 sps:$4 sm:$0xff]  }
  0xa6   : > { %2894 = vmatpush1.bf16.msra.mxu1 %v4346_v48  ;;  %v4419_v48 = vld [vmem:[%s5250_s24 + $0x760] ss:$8 sps:$4 sm:$0xff]  }
  0xa7   : > { %3140 = vmatpush1.bf16.msra.mxu0 %v4347_v49  ;;  %2895 = vmatprep.subr.bf16.mxu1 %v4348_v51  ;;  %v4424_v49 = vld [vmem:[%s5250_s24 + $0x174] ss:$8 sps:$4 sm:$0xff]  }
  0xa8   : > { %3141 = vmatprep.subr.bf16.mxu0 %v4350_v52  ;;  %v4427_v51 = vld [vmem:[%s5250_s24 + $0x774] ss:$8 sps:$4 sm:$0xff]   ;;  %v4422_v52 = vld [vmem:[%s5250_s24 + $0x170] ss:$8 sps:$4 sm:$0xff]  }
  0xaa   : > { %2896 = vmatpush1.bf16.msra.mxu1 %v4352_v54  ;;  %v4425_v54 = vld [vmem:[%s5250_s24 + $0x770] ss:$8 sps:$4 sm:$0xff]  }
  0xab   : > { %3142 = vmatpush1.bf16.msra.mxu0 %v4353_v56  ;;  %2897 = vmatprep.subr.bf16.mxu1 %v4354_v58  ;;  %v4433_v56 = vld [vmem:[%s5250_s24 + $0x784] ss:$8 sps:$4 sm:$0xff]   ;;  %v4431_v58 = vld [vmem:[%s5250_s24 + $0x780] ss:$8 sps:$4 sm:$0xff]  }
  0xac   : > { %3143 = vmatprep.subr.bf16.mxu0 %v4356_v59  ;;  %v4436_v59 = vld [vmem:[%s5250_s24 + $0x194] ss:$8 sps:$4 sm:$0xff]  }
  0xae   : > { %2898 = vmatpush1.bf16.msra.mxu1 %v4358_v0  ;;  %v4445_v0 = vld [vmem:[%s5250_s24 + $0x7a4] ss:$8 sps:$4 sm:$0xff]  }
  0xaf   : > { %3144 = vmatpush1.bf16.msra.mxu0 %v4359_v1  ;;  %2899 = vmatprep.subr.bf16.mxu1 %v4360_v2  ;;  %v4440_v1 = vld [vmem:[%s5250_s24 + $0x1a0] ss:$8 sps:$4 sm:$0xff]  }
  0xb0   : > { %3145 = vmatprep.subr.bf16.mxu0 %v4362_v3  ;;  %v4443_v2 = vld [vmem:[%s5250_s24 + $0x7a0] ss:$8 sps:$4 sm:$0xff]   ;;  %v4448_v3 = vld [vmem:[%s5250_s24 + $0x1b4] ss:$8 sps:$4 sm:$0xff]  }
  0xb2   : > { %2900 = vmatpush1.bf16.msra.mxu1 %v4364_v6  ;;  %v4449_v6 = vld [vmem:[%s5250_s24 + $0x7b0] ss:$8 sps:$4 sm:$0xff]  }
  0xb3   : > { %3146 = vmatpush1.bf16.msra.mxu0 %v4365_v7  ;;  %2901 = vmatprep.subr.bf16.mxu1 %v4366_v8  ;;  %v4454_v7 = vld [vmem:[%s5250_s24 + $0x1c4] ss:$8 sps:$4 sm:$0xff]  }
  0xb4   : > { %3147 = vmatprep.subr.bf16.mxu0 %v4368_v9  ;;  %v4457_v8 = vld [vmem:[%s5250_s24 + $0x7c4] ss:$8 sps:$4 sm:$0xff]   ;;  %v4452_v9 = vld [vmem:[%s5250_s24 + $0x1c0] ss:$8 sps:$4 sm:$0xff]  }
  0xb6   : > { %2902 = vmatpush1.bf16.msra.mxu1 %v4370_v10  ;;  %v4455_v10 = vld [vmem:[%s5250_s24 + $0x7c0] ss:$8 sps:$4 sm:$0xff]  }
  0xb7   : > { %3148 = vmatpush1.bf16.msra.mxu0 %v4371_v11  ;;  %2903 = vmatprep.subr.bf16.mxu1 %v4372_v12  ;;  %v4460_v11 = vld [vmem:[%s5250_s24 + $0x1d4] ss:$8 sps:$4 sm:$0xff]  }
  0xb8   : > { %3149 = vmatprep.subr.bf16.mxu0 %v4374_v13  ;;  %v4463_v12 = vld [vmem:[%s5250_s24 + $0x7d4] ss:$8 sps:$4 sm:$0xff]   ;;  %v4458_v13 = vld [vmem:[%s5250_s24 + $0x1d0] ss:$8 sps:$4 sm:$0xff]  }
  0xba   : > { %2904 = vmatpush1.bf16.msra.mxu1 %v4376_v14  ;;  %v4461_v14 = vld [vmem:[%s5250_s24 + $0x7d0] ss:$8 sps:$4 sm:$0xff]  }
  0xbb   : > { %3150 = vmatpush1.bf16.msra.mxu0 %v4377_v15  ;;  %2914 = vmatprep.subr.bf16.mxu1 %v4381_v16  ;;  %v4466_v15 = vld [vmem:[%s5250_s24 + $0x1e4] ss:$8 sps:$4 sm:$0xff]  }
  0xbc   : > { %3160 = vmatprep.subr.bf16.mxu0 %v4385_v17  ;;  %v4469_v16 = vld [vmem:[%s5250_s24 + $0x7e4] ss:$8 sps:$4 sm:$0xff]   ;;  %v724_v17 = vcombine.high %v5329_v53, %v5329_v53  ;;  %v4473_v53 = vld [vmem:[%s5250_s24 + $0x7f0] ss:$8 sps:$4 sm:$0xff]  }
  0xbd   : > { %2906 = vmatmul.mubr.bf16.vlgmr.msra.gmra.mrb[0].mxu1 %v5360_v18 }
  0xbe   : > { %3152 = vmatmul.mubr.bf16.vlgmr.msra.gmra.mrb[0].mxu0 %v5363_v19  ;;  %2915 = vmatpush1.bf16.msra.mxu1 %v4379_v20  ;;  %v4464_v20 = vld [vmem:[%s5250_s24 + $0x1e0] ss:$8 sps:$4 sm:$0xff]  }
  0xbf   : > { %3161 = vmatpush1.bf16.msra.mxu0 %v4383_v21  ;;  %2916 = vmatprep.subr.bf16.mxu1 %v4388_v22  ;;  %v4467_v21 = vld [vmem:[%s5250_s24 + $0x7e0] ss:$8 sps:$4 sm:$0xff]   ;;  %v4472_v22 = vld [vmem:[%s5250_s24 + $0x1f4] ss:$8 sps:$4 sm:$0xff]  }
  0xc0   : > { %3162 = vmatprep.subr.bf16.mxu0 %v4391_v23  ;;  %2946 = vmatprep.mubr.bf16.mxu1 %v771_v24  ;;  %v4475_v23 = vld [vmem:[%s5250_s24 + $0x7f4] ss:$8 sps:$4 sm:$0xff]   ;;  %v5430_v24 = vrot.slane %v724_v17, %v5322_v50  ;;  %v4542_v17 = vld [vmem:[%s5250_s24 + $0x2b0] ss:$8 sps:$4 sm:$0xff]  }
  0xc1   : > { %3192 = vmatprep.mubr.bf16.mxu0 %v821_v25  ;;  %v4470_v25 = vld [vmem:[%s5250_s24 + $0x1f0] ss:$8 sps:$4 sm:$0xff]  }
  0xc2   : > { %2917 = vmatpush1.bf16.msra.mxu1 %v4386_v26  ;;  %v4478_v26 = vld [vmem:[%s5250_s24 + $0x204] ss:$8 sps:$4 sm:$0xff]  }
  0xc3   : > { %3163 = vmatpush1.bf16.msra.mxu0 %v4389_v27  ;;  %2918 = vmatprep.subr.bf16.mxu1 %v4394_v28  ;;  %v4481_v27 = vld [vmem:[%s5250_s24 + $0x804] ss:$8 sps:$4 sm:$0xff]   ;;  %v740_v28 = vcombine.high %v5430_v24, %v5430_v24 }
  0xc4   : > { %3164 = vmatprep.subr.bf16.mxu0 %v4397_v29  ;;  %v769_v29 = vcombine.high %v5360_v18, %v5360_v18  ;;  %v5452_v18 = vld [vmem:[%s5845_s0 + $0x10] sm:$0xff] }
  0xc6   : > { %2919 = vmatpush1.bf16.msra.mxu1 %v4392_v30  ;;  %v819_v30 = vcombine.high %v5363_v19, %v5363_v19  ;;  %v4482_v19 = vld [vmem:[%s5250_s24 + $0x210] ss:$8 sps:$4 sm:$0xff]  }
  0xc7   : > { %3165 = vmatpush1.bf16.msra.mxu0 %v4395_v31  ;;  %2920 = vmatprep.subr.bf16.mxu1 %v4400_v32  ;;  %v4476_v31 = vld [vmem:[%s5250_s24 + $0x200] ss:$8 sps:$4 sm:$0xff]  }
  0xc8   : > { %3166 = vmatprep.subr.bf16.mxu0 %v4403_v33  ;;  %v4479_v32 = vld [vmem:[%s5250_s24 + $0x800] ss:$8 sps:$4 sm:$0xff]   ;;  %v4484_v33 = vld [vmem:[%s5250_s24 + $0x214] ss:$8 sps:$4 sm:$0xff]  }
  0xca   : > { %2921 = vmatpush1.bf16.msra.mxu1 %v4398_v34  ;;  %v4487_v34 = vld [vmem:[%s5250_s24 + $0x814] ss:$8 sps:$4 sm:$0xff]  }
  0xcb   : > { %3167 = vmatpush1.bf16.msra.mxu0 %v4401_v35  ;;  %2922 = vmatprep.subr.bf16.mxu1 %v4406_v36  ;;  %v5447_v35 = vrot.slane %v740_v28, %v5322_v50  ;;  %v5457_v36 = vrot.slane %v5452_v18, %v5322_v50  ;;  %v4557_v28 = vld [vmem:[%s5250_s24 + $0x8d0] ss:$8 sps:$4 sm:$0xff]  }
  0xcc   : > { %3168 = vmatprep.subr.bf16.mxu0 %v4409_v37  ;;  %v4485_v37 = vld [vmem:[%s5250_s24 + $0x810] ss:$8 sps:$4 sm:$0xff]  }
  0xce   : > { %2923 = vmatpush1.bf16.msra.mxu1 %v4404_v38  ;;  %v4490_v38 = vld [vmem:[%s5250_s24 + $0x224] ss:$8 sps:$4 sm:$0xff]  }
  0xcf   : > { %3169 = vmatpush1.bf16.msra.mxu0 %v4407_v39  ;;  %2924 = vmatprep.subr.bf16.mxu1 %v4412_v40  ;;  %v4493_v39 = vld [vmem:[%s5250_s24 + $0x824] ss:$8 sps:$4 sm:$0xff]   ;;  %v837_v40 = vcombine.high %v5457_v36, %v5457_v36 }
  0xd0   : > { %3170 = vmatprep.subr.bf16.mxu0 %v4415_v41  ;;  %v4488_v41 = vld [vmem:[%s5250_s24 + $0x220] ss:$8 sps:$4 sm:$0xff]  }
  0xd2   : > { %2925 = vmatpush1.bf16.msra.mxu1 %v4410_v42  ;;  %v5467_v42 = vrot.slane %v837_v40, %v5322_v50  ;;  %v4572_v40 = vld [vmem:[%s5250_s24 + $0x300] ss:$8 sps:$4 sm:$0xff]  }
  0xd3   : > { %3171 = vmatpush1.bf16.msra.mxu0 %v4413_v44  ;;  %2926 = vmatprep.subr.bf16.mxu1 %v4418_v45  ;;  %v4491_v44 = vld [vmem:[%s5250_s24 + $0x820] ss:$8 sps:$4 sm:$0xff]   ;;  %v4496_v45 = vld [vmem:[%s5250_s24 + $0x234] ss:$8 sps:$4 sm:$0xff]  }
  0xd4   : > { %3172 = vmatprep.subr.bf16.mxu0 %v4421_v46  ;;  %v4499_v46 = vld [vmem:[%s5250_s24 + $0x834] ss:$8 sps:$4 sm:$0xff]  }
  0xd6   : > { %2927 = vmatpush1.bf16.msra.mxu1 %v4416_v47  ;;  %v4494_v47 = vld [vmem:[%s5250_s24 + $0x230] ss:$8 sps:$4 sm:$0xff]  }
  0xd7   : > { %3173 = vmatpush1.bf16.msra.mxu0 %v4419_v48  ;;  %2928 = vmatprep.subr.bf16.mxu1 %v4424_v49  ;;  %v4497_v48 = vld [vmem:[%s5250_s24 + $0x830] ss:$8 sps:$4 sm:$0xff]   ;;  %v4502_v49 = vld [vmem:[%s5250_s24 + $0x244] ss:$8 sps:$4 sm:$0xff]  }
  0xd8   : > { %3174 = vmatprep.subr.bf16.mxu0 %v4427_v51  ;;  %v4505_v51 = vld [vmem:[%s5250_s24 + $0x844] ss:$8 sps:$4 sm:$0xff]  }
  0xda   : > { %2929 = vmatpush1.bf16.msra.mxu1 %v4422_v52  ;;  %v4500_v52 = vld [vmem:[%s5250_s24 + $0x240] ss:$8 sps:$4 sm:$0xff]  }
  0xdb   : > { %3175 = vmatpush1.bf16.msra.mxu0 %v4425_v54  ;;  %2930 = vmatprep.subr.bf16.mxu1 %v4430_v55  ;;  %v4503_v54 = vld [vmem:[%s5250_s24 + $0x840] ss:$8 sps:$4 sm:$0xff]   ;;  %v4508_v55 = vld [vmem:[%s5250_s24 + $0x254] ss:$8 sps:$4 sm:$0xff]  }
  0xdc   : > { %3176 = vmatprep.subr.bf16.mxu0 %v4433_v56  ;;  %v4511_v56 = vld [vmem:[%s5250_s24 + $0x854] ss:$8 sps:$4 sm:$0xff]  }
  0xde   : > { %2931 = vmatpush1.bf16.msra.mxu1 %v4428_v57  ;;  %v4506_v57 = vld [vmem:[%s5250_s24 + $0x250] ss:$8 sps:$4 sm:$0xff]  }
  0xdf   : > { %3177 = vmatpush1.bf16.msra.mxu0 %v4431_v58  ;;  %2932 = vmatprep.subr.bf16.mxu1 %v4436_v59  ;;  %v4509_v58 = vld [vmem:[%s5250_s24 + $0x850] ss:$8 sps:$4 sm:$0xff]   ;;  %v4514_v59 = vld [vmem:[%s5250_s24 + $0x264] ss:$8 sps:$4 sm:$0xff]  }
  0xe0   : > { %3178 = vmatprep.subr.bf16.mxu0 %v4439_v60  ;;  %v4517_v60 = vld [vmem:[%s5250_s24 + $0x864] ss:$8 sps:$4 sm:$0xff]  }
  0xe2   : > { %2933 = vmatpush1.bf16.msra.mxu1 %v4434_v61  ;;  %v4512_v61 = vld [vmem:[%s5250_s24 + $0x260] ss:$8 sps:$4 sm:$0xff]  }
  0xe3   : > { %3179 = vmatpush1.bf16.msra.mxu0 %v4437_v62  ;;  %2934 = vmatprep.subr.bf16.mxu1 %v4442_v63  ;;  %v4515_v62 = vld [vmem:[%s5250_s24 + $0x860] ss:$8 sps:$4 sm:$0xff]   ;;  %v4520_v63 = vld [vmem:[%s5250_s24 + $0x274] ss:$8 sps:$4 sm:$0xff]  }
  0xe4   : > { %3180 = vmatprep.subr.bf16.mxu0 %v4445_v0  ;;  %v4523_v0 = vld [vmem:[%s5250_s24 + $0x874] ss:$8 sps:$4 sm:$0xff]  }
  0xe6   : > { %2935 = vmatpush1.bf16.msra.mxu1 %v4440_v1  ;;  %v4518_v1 = vld [vmem:[%s5250_s24 + $0x270] ss:$8 sps:$4 sm:$0xff]  }
  0xe7   : > { %3181 = vmatpush1.bf16.msra.mxu0 %v4443_v2  ;;  %2936 = vmatprep.subr.bf16.mxu1 %v4448_v3  ;;  %v4521_v2 = vld [vmem:[%s5250_s24 + $0x870] ss:$8 sps:$4 sm:$0xff]   ;;  %v4526_v3 = vld [vmem:[%s5250_s24 + $0x284] ss:$8 sps:$4 sm:$0xff]  }
  0xe8   : > { %3182 = vmatprep.subr.bf16.mxu0 %v4451_v4  ;;  %v4529_v4 = vld [vmem:[%s5250_s24 + $0x884] ss:$8 sps:$4 sm:$0xff]  }
  0xea   : > { %2937 = vmatpush1.bf16.msra.mxu1 %v4446_v5  ;;  %v4524_v5 = vld [vmem:[%s5250_s24 + $0x280] ss:$8 sps:$4 sm:$0xff]  }
  0xeb   : > { %3183 = vmatpush1.bf16.msra.mxu0 %v4449_v6  ;;  %2938 = vmatprep.subr.bf16.mxu1 %v4454_v7  ;;  %v4527_v6 = vld [vmem:[%s5250_s24 + $0x880] ss:$8 sps:$4 sm:$0xff]   ;;  %v4532_v7 = vld [vmem:[%s5250_s24 + $0x294] ss:$8 sps:$4 sm:$0xff]  }
  0xec   : > { %3184 = vmatprep.subr.bf16.mxu0 %v4457_v8  ;;  %v4535_v8 = vld [vmem:[%s5250_s24 + $0x894] ss:$8 sps:$4 sm:$0xff]  }
  0xee   : > { %2939 = vmatpush1.bf16.msra.mxu1 %v4452_v9  ;;  %v4530_v9 = vld [vmem:[%s5250_s24 + $0x290] ss:$8 sps:$4 sm:$0xff]  }
  0xef   : > { %3185 = vmatpush1.bf16.msra.mxu0 %v4455_v10  ;;  %2940 = vmatprep.subr.bf16.mxu1 %v4460_v11  ;;  %v4533_v10 = vld [vmem:[%s5250_s24 + $0x890] ss:$8 sps:$4 sm:$0xff]   ;;  %v4538_v11 = vld [vmem:[%s5250_s24 + $0x2a4] ss:$8 sps:$4 sm:$0xff]  }
  0xf0   : > { %3186 = vmatprep.subr.bf16.mxu0 %v4463_v12  ;;  %v4541_v12 = vld [vmem:[%s5250_s24 + $0x8a4] ss:$8 sps:$4 sm:$0xff]  }
  0xf2   : > { %2941 = vmatpush1.bf16.msra.mxu1 %v4458_v13  ;;  %v4536_v13 = vld [vmem:[%s5250_s24 + $0x2a0] ss:$8 sps:$4 sm:$0xff]  }
  0xf3   : > { %3187 = vmatpush1.bf16.msra.mxu0 %v4461_v14  ;;  %2942 = vmatprep.subr.bf16.mxu1 %v4466_v15  ;;  %v4539_v14 = vld [vmem:[%s5250_s24 + $0x8a0] ss:$8 sps:$4 sm:$0xff]   ;;  %v4544_v15 = vld [vmem:[%s5250_s24 + $0x2b4] ss:$8 sps:$4 sm:$0xff]  }
  0xf4   : > { %3188 = vmatprep.subr.bf16.mxu0 %v4469_v16  ;;  %v4547_v16 = vld [vmem:[%s5250_s24 + $0x8b4] ss:$8 sps:$4 sm:$0xff]  }
  0xf6   : > { %2943 = vmatpush1.bf16.msra.mxu1 %v4464_v20  ;;  %v4545_v20 = vld [vmem:[%s5250_s24 + $0x8b0] ss:$8 sps:$4 sm:$0xff]  }
  0xf7   : > { %3189 = vmatpush1.bf16.msra.mxu0 %v4467_v21  ;;  %2944 = vmatprep.subr.bf16.mxu1 %v4472_v22  ;;  %v4550_v21 = vld [vmem:[%s5250_s24 + $0x2c4] ss:$8 sps:$4 sm:$0xff]  }
  0xf8   : > { %3190 = vmatprep.subr.bf16.mxu0 %v4475_v23  ;;  %v4553_v22 = vld [vmem:[%s5250_s24 + $0x8c4] ss:$8 sps:$4 sm:$0xff]   ;;  %v4548_v23 = vld [vmem:[%s5250_s24 + $0x2c0] ss:$8 sps:$4 sm:$0xff]  }
  0xfa   : > { %2945 = vmatpush1.bf16.msra.mxu1 %v4470_v25  ;;  %v4551_v25 = vld [vmem:[%s5250_s24 + $0x8c0] ss:$8 sps:$4 sm:$0xff]  }
  0xfb   : > { %3191 = vmatpush1.bf16.msra.mxu0 %v4473_v53  ;;  %2955 = vmatprep.subr.bf16.mxu1 %v4478_v26  ;;  %v4556_v53 = vld [vmem:[%s5250_s24 + $0x2d4] ss:$8 sps:$4 sm:$0xff]  }
  0xfc   : > { %3201 = vmatprep.subr.bf16.mxu0 %v4481_v27  ;;  %v4559_v26 = vld [vmem:[%s5250_s24 + $0x8d4] ss:$8 sps:$4 sm:$0xff]   ;;  %v4554_v27 = vld [vmem:[%s5250_s24 + $0x2d0] ss:$8 sps:$4 sm:$0xff]  }
  0xfd   : > { %2947 = vmatmul.mubr.bf16.vlgmr.msra.gmra.mrb[0].mxu1 %v769_v29  ;;  %v4562_v29 = vld [vmem:[%s5250_s24 + $0x2e4] ss:$8 sps:$4 sm:$0xff]  }
  0xfe   : > { %3193 = vmatmul.mubr.bf16.vlgmr.msra.gmra.mrb[0].mxu0 %v819_v30  ;;  %2956 = vmatpush1.bf16.msra.mxu1 %v4476_v31  ;;  %v4565_v30 = vld [vmem:[%s5250_s24 + $0x8e4] ss:$8 sps:$4 sm:$0xff]   ;;  %v4560_v31 = vld [vmem:[%s5250_s24 + $0x2e0] ss:$8 sps:$4 sm:$0xff]  }
  0xff   : > { %3202 = vmatpush1.bf16.msra.mxu0 %v4479_v32  ;;  %2957 = vmatprep.subr.bf16.mxu1 %v4484_v33  ;;  %v4563_v32 = vld [vmem:[%s5250_s24 + $0x8e0] ss:$8 sps:$4 sm:$0xff]   ;;  %v4568_v33 = vld [vmem:[%s5250_s24 + $0x2f4] ss:$8 sps:$4 sm:$0xff]  }
 0x100   : > { %3203 = vmatprep.subr.bf16.mxu0 %v4487_v34  ;;  %2987 = vmatprep.mubr.bf16.mxu1 %v5447_v35  ;;  %v4571_v34 = vld [vmem:[%s5250_s24 + $0x8f4] ss:$8 sps:$4 sm:$0xff]  }
 0x101   : > { %3233 = vmatprep.mubr.bf16.mxu0 %v5467_v42 }
 0x102   : > { %2958 = vmatpush1.bf16.msra.mxu1 %v4482_v19  ;;  %v4566_v19 = vld [vmem:[%s5250_s24 + $0x2f0] ss:$8 sps:$4 sm:$0xff]  }
 0x103   : > { %3204 = vmatpush1.bf16.msra.mxu0 %v4485_v37  ;;  %2959 = vmatprep.subr.bf16.mxu1 %v4490_v38  ;;  %v4569_v37 = vld [vmem:[%s5250_s24 + $0x8f0] ss:$8 sps:$4 sm:$0xff]   ;;  %v4574_v38 = vld [vmem:[%s5250_s24 + $0x304] ss:$8 sps:$4 sm:$0xff]  }
 0x104   : > { %3205 = vmatprep.subr.bf16.mxu0 %v4493_v39  ;;  %v4577_v39 = vld [vmem:[%s5250_s24 + $0x904] ss:$8 sps:$4 sm:$0xff]  }
 0x106   : > { %2960 = vmatpush1.bf16.msra.mxu1 %v4488_v41  ;;  %v5528_v41 = vrot.slane %v5430_v24, %v5322_v50  ;;  %v869_v24 = vcombine.high %v5467_v42, %v5467_v42  ;;  %v4584_v42 = vld [vmem:[%s5250_s24 + $0x320] ss:$8 sps:$4 sm:$0xff]  }
 0x107   : > { %3206 = vmatpush1.bf16.msra.mxu0 %v4491_v44  ;;  %2961 = vmatprep.subr.bf16.mxu1 %v4496_v45  ;;  %v5532_v44 = vrot.slane %v5457_v36, %v5322_v50  ;;  %v4575_v45 = vld [vmem:[%s5250_s24 + $0x900] ss:$8 sps:$4 sm:$0xff]   ;;  %v4578_v36 = vld [vmem:[%s5250_s24 + $0x310] ss:$8 sps:$4 sm:$0xff]  }
 0x108   : > { %3207 = vmatprep.subr.bf16.mxu0 %v4499_v46  ;;  %v4580_v46 = vld [vmem:[%s5250_s24 + $0x314] ss:$8 sps:$4 sm:$0xff]  }
 0x10a   : > { %2962 = vmatpush1.bf16.msra.mxu1 %v4494_v47  ;;  %v4583_v47 = vld [vmem:[%s5250_s24 + $0x914] ss:$8 sps:$4 sm:$0xff]  }
 0x10b   : > { %3208 = vmatpush1.bf16.msra.mxu0 %v4497_v48  ;;  %2963 = vmatprep.subr.bf16.mxu1 %v4502_v49  ;;  %v772_v48 = vcombine.high %v5447_v35, %v5447_v35  ;;  %v4581_v49 = vld [vmem:[%s5250_s24 + $0x910] ss:$8 sps:$4 sm:$0xff]   ;;  %v4589_v35 = vld [vmem:[%s5250_s24 + $0x924] ss:$8 sps:$4 sm:$0xff]  }
 0x10c   : > { %3209 = vmatprep.subr.bf16.mxu0 %v4505_v51  ;;  %v4586_v51 = vld [vmem:[%s5250_s24 + $0x324] ss:$8 sps:$4 sm:$0xff]  }
 0x10e   : > { %2964 = vmatpush1.bf16.msra.mxu1 %v4500_v52  ;;  %v4587_v52 = vld [vmem:[%s5250_s24 + $0x920] ss:$8 sps:$4 sm:$0xff]  }
 0x10f   : > { %3210 = vmatpush1.bf16.msra.mxu0 %v4503_v54  ;;  %2965 = vmatprep.subr.bf16.mxu1 %v4508_v55  ;;  %v4592_v54 = vld [vmem:[%s5250_s24 + $0x334] ss:$8 sps:$4 sm:$0xff]  }
 0x110   : > { %3211 = vmatprep.subr.bf16.mxu0 %v4511_v56  ;;  %v4595_v55 = vld [vmem:[%s5250_s24 + $0x934] ss:$8 sps:$4 sm:$0xff]   ;;  %v4590_v56 = vld [vmem:[%s5250_s24 + $0x330] ss:$8 sps:$4 sm:$0xff]  }
 0x112   : > { %2966 = vmatpush1.bf16.msra.mxu1 %v4506_v57  ;;  %v4593_v57 = vld [vmem:[%s5250_s24 + $0x930] ss:$8 sps:$4 sm:$0xff]  }
 0x113   : > { %3212 = vmatpush1.bf16.msra.mxu0 %v4509_v58  ;;  %2967 = vmatprep.subr.bf16.mxu1 %v4514_v59  ;;  %v4598_v58 = vld [vmem:[%s5250_s24 + $0x344] ss:$8 sps:$4 sm:$0xff]  }
 0x114   : > { %3213 = vmatprep.subr.bf16.mxu0 %v4517_v60  ;;  %v4601_v59 = vld [vmem:[%s5250_s24 + $0x944] ss:$8 sps:$4 sm:$0xff]   ;;  %v4596_v60 = vld [vmem:[%s5250_s24 + $0x340] ss:$8 sps:$4 sm:$0xff]  }
 0x116   : > { %2968 = vmatpush1.bf16.msra.mxu1 %v4512_v61  ;;  %v4599_v61 = vld [vmem:[%s5250_s24 + $0x940] ss:$8 sps:$4 sm:$0xff]  }
 0x117   : > { %3214 = vmatpush1.bf16.msra.mxu0 %v4515_v62  ;;  %2969 = vmatprep.subr.bf16.mxu1 %v4520_v63  ;;  %v4604_v62 = vld [vmem:[%s5250_s24 + $0x354] ss:$8 sps:$4 sm:$0xff]  }
 0x118   : > { %3215 = vmatprep.subr.bf16.mxu0 %v4523_v0  ;;  %v4607_v63 = vld [vmem:[%s5250_s24 + $0x954] ss:$8 sps:$4 sm:$0xff]   ;;  %v4602_v0 = vld [vmem:[%s5250_s24 + $0x350] ss:$8 sps:$4 sm:$0xff]  }
 0x11a   : > { %2970 = vmatpush1.bf16.msra.mxu1 %v4518_v1  ;;  %v4605_v1 = vld [vmem:[%s5250_s24 + $0x950] ss:$8 sps:$4 sm:$0xff]  }
 0x11b   : > { %3216 = vmatpush1.bf16.msra.mxu0 %v4521_v2  ;;  %2971 = vmatprep.subr.bf16.mxu1 %v4526_v3  ;;  %v4610_v2 = vld [vmem:[%s5250_s24 + $0x364] ss:$8 sps:$4 sm:$0xff]  }
 0x11c   : > { %3217 = vmatprep.subr.bf16.mxu0 %v4529_v4  ;;  %v4613_v3 = vld [vmem:[%s5250_s24 + $0x964] ss:$8 sps:$4 sm:$0xff]   ;;  %v4608_v4 = vld [vmem:[%s5250_s24 + $0x360] ss:$8 sps:$4 sm:$0xff]  }
 0x11e   : > { %2972 = vmatpush1.bf16.msra.mxu1 %v4524_v5  ;;  %v4611_v5 = vld [vmem:[%s5250_s24 + $0x960] ss:$8 sps:$4 sm:$0xff]  }
 0x11f   : > { %3218 = vmatpush1.bf16.msra.mxu0 %v4527_v6  ;;  %2973 = vmatprep.subr.bf16.mxu1 %v4532_v7  ;;  %v4616_v6 = vld [vmem:[%s5250_s24 + $0x374] ss:$8 sps:$4 sm:$0xff]  }
 0x120   : > { %3219 = vmatprep.subr.bf16.mxu0 %v4535_v8  ;;  %v4619_v7 = vld [vmem:[%s5250_s24 + $0x974] ss:$8 sps:$4 sm:$0xff]   ;;  %v4614_v8 = vld [vmem:[%s5250_s24 + $0x370] ss:$8 sps:$4 sm:$0xff]  }
 0x122   : > { %2974 = vmatpush1.bf16.msra.mxu1 %v4530_v9  ;;  %v4617_v9 = vld [vmem:[%s5250_s24 + $0x970] ss:$8 sps:$4 sm:$0xff]  }
 0x123   : > { %3220 = vmatpush1.bf16.msra.mxu0 %v4533_v10  ;;  %2975 = vmatprep.subr.bf16.mxu1 %v4538_v11  ;;  %v4622_v10 = vld [vmem:[%s5250_s24 + $0x384] ss:$8 sps:$4 sm:$0xff]  }
 0x124   : > { %3221 = vmatprep.subr.bf16.mxu0 %v4541_v12  ;;  %v4625_v11 = vld [vmem:[%s5250_s24 + $0x984] ss:$8 sps:$4 sm:$0xff]   ;;  %v4620_v12 = vld [vmem:[%s5250_s24 + $0x380] ss:$8 sps:$4 sm:$0xff]  }
 0x126   : > { %2976 = vmatpush1.bf16.msra.mxu1 %v4536_v13  ;;  %v4623_v13 = vld [vmem:[%s5250_s24 + $0x980] ss:$8 sps:$4 sm:$0xff]  }
 0x127   : > { %3222 = vmatpush1.bf16.msra.mxu0 %v4539_v14  ;;  %2977 = vmatprep.subr.bf16.mxu1 %v4544_v15  ;;  %v4628_v14 = vld [vmem:[%s5250_s24 + $0x394] ss:$8 sps:$4 sm:$0xff]  }
 0x128   : > { %3223 = vmatprep.subr.bf16.mxu0 %v4547_v16  ;;  %v4631_v15 = vld [vmem:[%s5250_s24 + $0x994] ss:$8 sps:$4 sm:$0xff]   ;;  %v4626_v16 = vld [vmem:[%s5250_s24 + $0x390] ss:$8 sps:$4 sm:$0xff]  }
 0x12a   : > { %2978 = vmatpush1.bf16.msra.mxu1 %v4542_v17  ;;  %v4629_v17 = vld [vmem:[%s5250_s24 + $0x990] ss:$8 sps:$4 sm:$0xff]  }
 0x12b   : > { %3224 = vmatpush1.bf16.msra.mxu0 %v4545_v20  ;;  %2979 = vmatprep.subr.bf16.mxu1 %v4550_v21  ;;  %v4634_v20 = vld [vmem:[%s5250_s24 + $0x3a4] ss:$8 sps:$4 sm:$0xff]  }
 0x12c   : > { %3225 = vmatprep.subr.bf16.mxu0 %v4553_v22  ;;  %v4637_v21 = vld [vmem:[%s5250_s24 + $0x9a4] ss:$8 sps:$4 sm:$0xff]   ;;  %v4632_v22 = vld [vmem:[%s5250_s24 + $0x3a0] ss:$8 sps:$4 sm:$0xff]  }
 0x12e   : > { %2980 = vmatpush1.bf16.msra.mxu1 %v4548_v23  ;;  %v4635_v23 = vld [vmem:[%s5250_s24 + $0x9a0] ss:$8 sps:$4 sm:$0xff]  }
 0x12f   : > { %3226 = vmatpush1.bf16.msra.mxu0 %v4551_v25  ;;  %2981 = vmatprep.subr.bf16.mxu1 %v4556_v53  ;;  %v4640_v25 = vld [vmem:[%s5250_s24 + $0x3b4] ss:$8 sps:$4 sm:$0xff]  }
 0x130   : > { %3227 = vmatprep.subr.bf16.mxu0 %v4559_v26  ;;  %v4643_v53 = vld [vmem:[%s5250_s24 + $0x9b4] ss:$8 sps:$4 sm:$0xff]   ;;  %v4638_v26 = vld [vmem:[%s5250_s24 + $0x3b0] ss:$8 sps:$4 sm:$0xff]  }
 0x132   : > { %2982 = vmatpush1.bf16.msra.mxu1 %v4554_v27  ;;  %v4641_v27 = vld [vmem:[%s5250_s24 + $0x9b0] ss:$8 sps:$4 sm:$0xff]  }
 0x133   : > { %3228 = vmatpush1.bf16.msra.mxu0 %v4557_v28  ;;  %2983 = vmatprep.subr.bf16.mxu1 %v4562_v29  ;;  %v4646_v28 = vld [vmem:[%s5250_s24 + $0x3c4] ss:$8 sps:$4 sm:$0xff]  }
 0x134   : > { %3229 = vmatprep.subr.bf16.mxu0 %v4565_v30  ;;  %v4649_v29 = vld [vmem:[%s5250_s24 + $0x9c4] ss:$8 sps:$4 sm:$0xff]   ;;  %v4644_v30 = vld [vmem:[%s5250_s24 + $0x3c0] ss:$8 sps:$4 sm:$0xff]  }
 0x136   : > { %2984 = vmatpush1.bf16.msra.mxu1 %v4560_v31  ;;  %v4647_v31 = vld [vmem:[%s5250_s24 + $0x9c0] ss:$8 sps:$4 sm:$0xff]  }
 0x137   : > { %3230 = vmatpush1.bf16.msra.mxu0 %v4563_v32  ;;  %2985 = vmatprep.subr.bf16.mxu1 %v4568_v33  ;;  %v4652_v32 = vld [vmem:[%s5250_s24 + $0x3d4] ss:$8 sps:$4 sm:$0xff]  }
 0x138   : > { %3231 = vmatprep.subr.bf16.mxu0 %v4571_v34  ;;  %v4655_v33 = vld [vmem:[%s5250_s24 + $0x9d4] ss:$8 sps:$4 sm:$0xff]   ;;  %v4650_v34 = vld [vmem:[%s5250_s24 + $0x3d0] ss:$8 sps:$4 sm:$0xff]  }
 0x13a   : > { %2986 = vmatpush1.bf16.msra.mxu1 %v4566_v19  ;;  %v4653_v19 = vld [vmem:[%s5250_s24 + $0x9d0] ss:$8 sps:$4 sm:$0xff]  }
 0x13b   : > { %3232 = vmatpush1.bf16.msra.mxu0 %v4569_v37  ;;  %2996 = vmatprep.subr.bf16.mxu1 %v4574_v38  ;;  %v4658_v37 = vld [vmem:[%s5250_s24 + $0x3e4] ss:$8 sps:$4 sm:$0xff]  }
 0x13c   : > { %3242 = vmatprep.subr.bf16.mxu0 %v4577_v39  ;;  %v4661_v38 = vld [vmem:[%s5250_s24 + $0x9e4] ss:$8 sps:$4 sm:$0xff]   ;;  %v822_v39 = vcombine.high %v5452_v18, %v5452_v18  ;;  %v4662_v18 = vld [vmem:[%s5250_s24 + $0x3f0] ss:$8 sps:$4 sm:$0xff]  }
 0x13d   : > { %2988 = vmatmul.mubr.bf16.vlgmr.msra.gmra.mrb[0].mxu1 %v5528_v41 }
 0x13e   : > { %3234 = vmatmul.mubr.bf16.vlgmr.msra.gmra.mrb[0].mxu0 %v5532_v44  ;;  %2997 = vmatpush1.bf16.msra.mxu1 %v4572_v40  ;;  %v4656_v40 = vld [vmem:[%s5250_s24 + $0x3e0] ss:$8 sps:$4 sm:$0xff]  }
 0x13f   : > { %3243 = vmatpush1.bf16.msra.mxu0 %v4575_v45  ;;  %2998 = vmatprep.subr.bf16.mxu1 %v4580_v46  ;;  %v4659_v45 = vld [vmem:[%s5250_s24 + $0x9e0] ss:$8 sps:$4 sm:$0xff]   ;;  %v4664_v46 = vld [vmem:[%s5250_s24 + $0x3f4] ss:$8 sps:$4 sm:$0xff]  }
 0x140   : > { %3244 = vmatprep.subr.bf16.mxu0 %v4583_v47  ;;  %3028 = vmatprep.mubr.bf16.mxu1 %v772_v48  ;;  %v4667_v47 = vld [vmem:[%s5250_s24 + $0x9f4] ss:$8 sps:$4 sm:$0xff]   ;;  %v5604_v48 = vld.sshfl [vmem:[%s5845_s0 + $0x8] sm:$0xff pattern:$0x75316420] }
 0x141   : > { %3274 = vmatprep.mubr.bf16.mxu0 %v869_v24  ;;  %v5607_v24 = vrot.slane %v822_v39, %v5322_v50  ;;  %v4737_v39 = vld [vmem:[%s5250_s24 + $0xab0] ss:$8 sps:$4 sm:$0xff]  }
 0x142   : > { %2999 = vmatpush1.bf16.msra.mxu1 %v4578_v36  ;;  %v4665_v36 = vld [vmem:[%s5250_s24 + $0x9f0] ss:$8 sps:$4 sm:$0xff]  }
 0x143   : > { %3245 = vmatpush1.bf16.msra.mxu0 %v4581_v49  ;;  %3000 = vmatprep.subr.bf16.mxu1 %v4586_v51  ;;  %v4670_v49 = vld [vmem:[%s5250_s24 + $0x404] ss:$8 sps:$4 sm:$0xff]  }
 0x144   : > { %3246 = vmatprep.subr.bf16.mxu0 %v4589_v35  ;;  %v4673_v51 = vld [vmem:[%s5250_s24 + $0xa04] ss:$8 sps:$4 sm:$0xff]   ;;  %v788_v35 = vcombine.high %v5604_v48, %v5604_v48 }
 0x146   : > { %3001 = vmatpush1.bf16.msra.mxu1 %v4584_v42  ;;  %v838_v42 = vcombine.high %v5607_v24, %v5607_v24 }
 0x147   : > { %3247 = vmatpush1.bf16.msra.mxu0 %v4587_v52  ;;  %3002 = vmatprep.subr.bf16.mxu1 %v4592_v54  ;;  %v4668_v52 = vld [vmem:[%s5250_s24 + $0x400] ss:$8 sps:$4 sm:$0xff]   ;;  %v770_v54 = vcombine.high %v5528_v41, %v5528_v41 }
 0x148   : > { %3248 = vmatprep.subr.bf16.mxu0 %v4595_v55  ;;  %v867_v55 = vcombine.high %v5532_v44, %v5532_v44  ;;  %v5631_v41 = vrot.slane %v838_v42, %v5322_v50  ;;  %v4682_v44 = vld [vmem:[%s5250_s24 + $0x424] ss:$8 sps:$4 sm:$0xff]  }
 0x149   : > { %v4757_v42 = vld [vmem:[%s5250_s24 + $0xae4] ss:$8 sps:$4 sm:$0xff]  }
 0x14a   : > { %3003 = vmatpush1.bf16.msra.mxu1 %v4590_v56  ;;  %v4671_v56 = vld [vmem:[%s5250_s24 + $0xa00] ss:$8 sps:$4 sm:$0xff]  }
 0x14b   : > { %3249 = vmatpush1.bf16.msra.mxu0 %v4593_v57  ;;  %3004 = vmatprep.subr.bf16.mxu1 %v4598_v58  ;;  %v4676_v57 = vld [vmem:[%s5250_s24 + $0x414] ss:$8 sps:$4 sm:$0xff]  }
 0x14c   : > { %3250 = vmatprep.subr.bf16.mxu0 %v4601_v59  ;;  %v4679_v58 = vld [vmem:[%s5250_s24 + $0xa14] ss:$8 sps:$4 sm:$0xff]   ;;  %v4674_v59 = vld [vmem:[%s5250_s24 + $0x410] ss:$8 sps:$4 sm:$0xff]  }
 0x14e   : > { %3005 = vmatpush1.bf16.msra.mxu1 %v4596_v60  ;;  %v4677_v60 = vld [vmem:[%s5250_s24 + $0xa10] ss:$8 sps:$4 sm:$0xff]  }
 0x14f   : > { %3251 = vmatpush1.bf16.msra.mxu0 %v4599_v61  ;;  %3006 = vmatprep.subr.bf16.mxu1 %v4604_v62  ;;  %v5628_v61 = vrot.slane %v788_v35, %v5322_v50  ;;  %v4685_v62 = vld [vmem:[%s5250_s24 + $0xa24] ss:$8 sps:$4 sm:$0xff]  }
 0x150   : > { %3252 = vmatprep.subr.bf16.mxu0 %v4607_v63  ;;  %v4680_v63 = vld [vmem:[%s5250_s24 + $0x420] ss:$8 sps:$4 sm:$0xff]   ;;  %v4754_v35 = vld [vmem:[%s5250_s24 + $0x4e4] ss:$8 sps:$4 sm:$0xff]  }
 0x152   : > { %3007 = vmatpush1.bf16.msra.mxu1 %v4602_v0  ;;  %v4683_v0 = vld [vmem:[%s5250_s24 + $0xa20] ss:$8 sps:$4 sm:$0xff]  }
 0x153   : > { %3253 = vmatpush1.bf16.msra.mxu0 %v4605_v1  ;;  %3008 = vmatprep.subr.bf16.mxu1 %v4610_v2  ;;  %v4688_v1 = vld [vmem:[%s5250_s24 + $0x434] ss:$8 sps:$4 sm:$0xff]  }
 0x154   : > { %3254 = vmatprep.subr.bf16.mxu0 %v4613_v3  ;;  %v4691_v2 = vld [vmem:[%s5250_s24 + $0xa34] ss:$8 sps:$4 sm:$0xff]   ;;  %v4686_v3 = vld [vmem:[%s5250_s24 + $0x430] ss:$8 sps:$4 sm:$0xff]  }
 0x156   : > { %3009 = vmatpush1.bf16.msra.mxu1 %v4608_v4  ;;  %v4689_v4 = vld [vmem:[%s5250_s24 + $0xa30] ss:$8 sps:$4 sm:$0xff]  }
 0x157   : > { %3255 = vmatpush1.bf16.msra.mxu0 %v4611_v5  ;;  %3010 = vmatprep.subr.bf16.mxu1 %v4616_v6  ;;  %v4694_v5 = vld [vmem:[%s5250_s24 + $0x444] ss:$8 sps:$4 sm:$0xff]  }
 0x158   : > { %3256 = vmatprep.subr.bf16.mxu0 %v4619_v7  ;;  %v4697_v6 = vld [vmem:[%s5250_s24 + $0xa44] ss:$8 sps:$4 sm:$0xff]   ;;  %v4692_v7 = vld [vmem:[%s5250_s24 + $0x440] ss:$8 sps:$4 sm:$0xff]  }
 0x15a   : > { %3011 = vmatpush1.bf16.msra.mxu1 %v4614_v8  ;;  %v4695_v8 = vld [vmem:[%s5250_s24 + $0xa40] ss:$8 sps:$4 sm:$0xff]  }
 0x15b   : > { %3257 = vmatpush1.bf16.msra.mxu0 %v4617_v9  ;;  %3012 = vmatprep.subr.bf16.mxu1 %v4622_v10  ;;  %v4700_v9 = vld [vmem:[%s5250_s24 + $0x454] ss:$8 sps:$4 sm:$0xff]  }
 0x15c   : > { %3258 = vmatprep.subr.bf16.mxu0 %v4625_v11  ;;  %v4703_v10 = vld [vmem:[%s5250_s24 + $0xa54] ss:$8 sps:$4 sm:$0xff]   ;;  %v4698_v11 = vld [vmem:[%s5250_s24 + $0x450] ss:$8 sps:$4 sm:$0xff]  }
 0x15e   : > { %3013 = vmatpush1.bf16.msra.mxu1 %v4620_v12  ;;  %v4701_v12 = vld [vmem:[%s5250_s24 + $0xa50] ss:$8 sps:$4 sm:$0xff]  }
 0x15f   : > { %3259 = vmatpush1.bf16.msra.mxu0 %v4623_v13  ;;  %3014 = vmatprep.subr.bf16.mxu1 %v4628_v14  ;;  %v4706_v13 = vld [vmem:[%s5250_s24 + $0x464] ss:$8 sps:$4 sm:$0xff]  }
 0x160   : > { %3260 = vmatprep.subr.bf16.mxu0 %v4631_v15  ;;  %v4709_v14 = vld [vmem:[%s5250_s24 + $0xa64] ss:$8 sps:$4 sm:$0xff]   ;;  %v4704_v15 = vld [vmem:[%s5250_s24 + $0x460] ss:$8 sps:$4 sm:$0xff]  }
 0x162   : > { %3015 = vmatpush1.bf16.msra.mxu1 %v4626_v16  ;;  %v4707_v16 = vld [vmem:[%s5250_s24 + $0xa60] ss:$8 sps:$4 sm:$0xff]  }
 0x163   : > { %3261 = vmatpush1.bf16.msra.mxu0 %v4629_v17  ;;  %3016 = vmatprep.subr.bf16.mxu1 %v4634_v20  ;;  %v4712_v17 = vld [vmem:[%s5250_s24 + $0x474] ss:$8 sps:$4 sm:$0xff]  }
 0x164   : > { %3262 = vmatprep.subr.bf16.mxu0 %v4637_v21  ;;  %v4715_v20 = vld [vmem:[%s5250_s24 + $0xa74] ss:$8 sps:$4 sm:$0xff]   ;;  %v4710_v21 = vld [vmem:[%s5250_s24 + $0x470] ss:$8 sps:$4 sm:$0xff]  }
 0x166   : > { %3017 = vmatpush1.bf16.msra.mxu1 %v4632_v22  ;;  %v4713_v22 = vld [vmem:[%s5250_s24 + $0xa70] ss:$8 sps:$4 sm:$0xff]  }
 0x167   : > { %3263 = vmatpush1.bf16.msra.mxu0 %v4635_v23  ;;  %3018 = vmatprep.subr.bf16.mxu1 %v4640_v25  ;;  %v4718_v23 = vld [vmem:[%s5250_s24 + $0x484] ss:$8 sps:$4 sm:$0xff]  }
 0x168   : > { %3264 = vmatprep.subr.bf16.mxu0 %v4643_v53  ;;  %v4721_v25 = vld [vmem:[%s5250_s24 + $0xa84] ss:$8 sps:$4 sm:$0xff]   ;;  %v4716_v53 = vld [vmem:[%s5250_s24 + $0x480] ss:$8 sps:$4 sm:$0xff]  }
 0x16a   : > { %3019 = vmatpush1.bf16.msra.mxu1 %v4638_v26  ;;  %v4719_v26 = vld [vmem:[%s5250_s24 + $0xa80] ss:$8 sps:$4 sm:$0xff]  }
 0x16b   : > { %3265 = vmatpush1.bf16.msra.mxu0 %v4641_v27  ;;  %3020 = vmatprep.subr.bf16.mxu1 %v4646_v28  ;;  %v4724_v27 = vld [vmem:[%s5250_s24 + $0x494] ss:$8 sps:$4 sm:$0xff]  }
 0x16c   : > { %3266 = vmatprep.subr.bf16.mxu0 %v4649_v29  ;;  %v4727_v28 = vld [vmem:[%s5250_s24 + $0xa94] ss:$8 sps:$4 sm:$0xff]   ;;  %v4722_v29 = vld [vmem:[%s5250_s24 + $0x490] ss:$8 sps:$4 sm:$0xff]  }
 0x16e   : > { %3021 = vmatpush1.bf16.msra.mxu1 %v4644_v30  ;;  %v4725_v30 = vld [vmem:[%s5250_s24 + $0xa90] ss:$8 sps:$4 sm:$0xff]  }
 0x16f   : > { %3267 = vmatpush1.bf16.msra.mxu0 %v4647_v31  ;;  %3022 = vmatprep.subr.bf16.mxu1 %v4652_v32  ;;  %v4730_v31 = vld [vmem:[%s5250_s24 + $0x4a4] ss:$8 sps:$4 sm:$0xff]  }
 0x170   : > { %3268 = vmatprep.subr.bf16.mxu0 %v4655_v33  ;;  %v4733_v32 = vld [vmem:[%s5250_s24 + $0xaa4] ss:$8 sps:$4 sm:$0xff]   ;;  %v4728_v33 = vld [vmem:[%s5250_s24 + $0x4a0] ss:$8 sps:$4 sm:$0xff]  }
 0x172   : > { %3023 = vmatpush1.bf16.msra.mxu1 %v4650_v34  ;;  %v4731_v34 = vld [vmem:[%s5250_s24 + $0xaa0] ss:$8 sps:$4 sm:$0xff]  }
 0x173   : > { %3269 = vmatpush1.bf16.msra.mxu0 %v4653_v19  ;;  %3024 = vmatprep.subr.bf16.mxu1 %v4658_v37  ;;  %v4736_v19 = vld [vmem:[%s5250_s24 + $0x4b4] ss:$8 sps:$4 sm:$0xff]  }
 0x174   : > { %3270 = vmatprep.subr.bf16.mxu0 %v4661_v38  ;;  %v4739_v37 = vld [vmem:[%s5250_s24 + $0xab4] ss:$8 sps:$4 sm:$0xff]   ;;  %v4734_v38 = vld [vmem:[%s5250_s24 + $0x4b0] ss:$8 sps:$4 sm:$0xff]  }
 0x176   : > { %3025 = vmatpush1.bf16.msra.mxu1 %v4656_v40  ;;  %v4742_v40 = vld [vmem:[%s5250_s24 + $0x4c4] ss:$8 sps:$4 sm:$0xff]  }
 0x177   : > { %3271 = vmatpush1.bf16.msra.mxu0 %v4659_v45  ;;  %3026 = vmatprep.subr.bf16.mxu1 %v4664_v46  ;;  %v4745_v45 = vld [vmem:[%s5250_s24 + $0xac4] ss:$8 sps:$4 sm:$0xff]   ;;  %v4740_v46 = vld [vmem:[%s5250_s24 + $0x4c0] ss:$8 sps:$4 sm:$0xff]  }
 0x178   : > { %3272 = vmatprep.subr.bf16.mxu0 %v4667_v47  ;;  %v4743_v47 = vld [vmem:[%s5250_s24 + $0xac0] ss:$8 sps:$4 sm:$0xff]  }
 0x17a   : > { %3027 = vmatpush1.bf16.msra.mxu1 %v4662_v18  ;;  %v4748_v18 = vld [vmem:[%s5250_s24 + $0x4d4] ss:$8 sps:$4 sm:$0xff]  }
 0x17b   : > { %3273 = vmatpush1.bf16.msra.mxu0 %v4665_v36  ;;  %3037 = vmatprep.subr.bf16.mxu1 %v4670_v49  ;;  %v4751_v36 = vld [vmem:[%s5250_s24 + $0xad4] ss:$8 sps:$4 sm:$0xff]   ;;  %v4746_v49 = vld [vmem:[%s5250_s24 + $0x4d0] ss:$8 sps:$4 sm:$0xff]  }
 0x17c   : > { %3283 = vmatprep.subr.bf16.mxu0 %v4673_v51  ;;  %v4749_v51 = vld [vmem:[%s5250_s24 + $0xad0] ss:$8 sps:$4 sm:$0xff]  }
 0x17d   : > { %3029 = vmatmul.mubr.bf16.vlgmr.msra.gmra.mrb[0].mxu1 %v770_v54  ;;  %v4755_v54 = vld [vmem:[%s5250_s24 + $0xae0] ss:$8 sps:$4 sm:$0xff]  }
 0x17e   : > { %3275 = vmatmul.mubr.bf16.vlgmr.msra.gmra.mrb[0].mxu0 %v867_v55  ;;  %3038 = vmatpush1.bf16.msra.mxu1 %v4668_v52  ;;  %v4752_v52 = vld [vmem:[%s5250_s24 + $0x4e0] ss:$8 sps:$4 sm:$0xff]   ;;  %v4760_v55 = vld [vmem:[%s5250_s24 + $0x4f4] ss:$8 sps:$4 sm:$0xff]  }
 0x17f   : > { %3284 = vmatpush1.bf16.msra.mxu0 %v4671_v56  ;;  %3039 = vmatprep.subr.bf16.mxu1 %v4676_v57  ;;  %v4763_v56 = vld [vmem:[%s5250_s24 + $0xaf4] ss:$8 sps:$4 sm:$0xff]   ;;  %v4758_v57 = vld [vmem:[%s5250_s24 + $0x4f0] ss:$8 sps:$4 sm:$0xff]  }
 0x180   : > { %3285 = vmatprep.subr.bf16.mxu0 %v4679_v58  ;;  %3069 = vmatprep.mubr.bf16.mxu1 %v5628_v61  ;;  %v4761_v58 = vld [vmem:[%s5250_s24 + $0xaf0] ss:$8 sps:$4 sm:$0xff]  }
 0x181   : > { %3315 = vmatprep.mubr.bf16.mxu0 %v5631_v41 }
 0x182   : > { %3040 = vmatpush1.bf16.msra.mxu1 %v4674_v59  ;;  %v4766_v59 = vld [vmem:[%s5250_s24 + $0x504] ss:$8 sps:$4 sm:$0xff]  }
 0x183   : > { %3286 = vmatpush1.bf16.msra.mxu0 %v4677_v60  ;;  %3041 = vmatprep.subr.bf16.mxu1 %v4682_v44  ;;  %v4770_v60 = vld [vmem:[%s5250_s24 + $0xb04] ss:$8 sps:$4 sm:$0xff]   ;;  %v5695_v44 = vrot.slane %v5604_v48, %v5322_v50  ;;  %v820_v48 = vcombine.high %v5628_v61, %v5628_v61 }
 0x184   : > { %3287 = vmatprep.subr.bf16.mxu0 %v4685_v62  ;;  %v5699_v62 = vrot.slane %v5607_v24, %v5322_v50  ;;  %v4771_v24 = vld [vmem:[%s5250_s24 + $0x510] ss:$8 sps:$4 sm:$0xff]   ;;  %v4779_v61 = vld [vmem:[%s5250_s24 + $0x524] ss:$8 sps:$4 sm:$0xff]  }
 0x186   : > { %3042 = vmatpush1.bf16.msra.mxu1 %v4680_v63  ;;  %v4764_v63 = vld [vmem:[%s5250_s24 + $0x500] ss:$8 sps:$4 sm:$0xff]  }
 0x187   : > { %3288 = vmatpush1.bf16.msra.mxu0 %v4683_v0  ;;  %3043 = vmatprep.subr.bf16.mxu1 %v4688_v1  ;;  %v4768_v0 = vld [vmem:[%s5250_s24 + $0xb00] ss:$8 sps:$4 sm:$0xff]   ;;  %v4773_v1 = vld [vmem:[%s5250_s24 + $0x514] ss:$8 sps:$4 sm:$0xff]  }
 0x188   : > { %3289 = vmatprep.subr.bf16.mxu0 %v4691_v2  ;;  %v4776_v2 = vld [vmem:[%s5250_s24 + $0xb14] ss:$8 sps:$4 sm:$0xff]  }
 0x18a   : > { %3044 = vmatpush1.bf16.msra.mxu1 %v4686_v3  ;;  %v870_v3 = vcombine.high %v5631_v41, %v5631_v41  ;;  %v4777_v41 = vld [vmem:[%s5250_s24 + $0x520] ss:$8 sps:$4 sm:$0xff]  }
 0x18b   : > { %3290 = vmatpush1.bf16.msra.mxu0 %v4689_v4  ;;  %3045 = vmatprep.subr.bf16.mxu1 %v4694_v5  ;;  %v4774_v4 = vld [vmem:[%s5250_s24 + $0xb10] ss:$8 sps:$4 sm:$0xff]   ;;  %v4782_v5 = vld [vmem:[%s5250_s24 + $0xb24] ss:$8 sps:$4 sm:$0xff]  }
 0x18c   : > { %3291 = vmatprep.subr.bf16.mxu0 %v4697_v6  ;;  %v4780_v6 = vld [vmem:[%s5250_s24 + $0xb20] ss:$8 sps:$4 sm:$0xff]  }
 0x18e   : > { %3046 = vmatpush1.bf16.msra.mxu1 %v4692_v7  ;;  %v4785_v7 = vld [vmem:[%s5250_s24 + $0x534] ss:$8 sps:$4 sm:$0xff]  }
 0x18f   : > { %3292 = vmatpush1.bf16.msra.mxu0 %v4695_v8  ;;  %3047 = vmatprep.subr.bf16.mxu1 %v4700_v9  ;;  %v4788_v8 = vld [vmem:[%s5250_s24 + $0xb34] ss:$8 sps:$4 sm:$0xff]   ;;  %v4783_v9 = vld [vmem:[%s5250_s24 + $0x530] ss:$8 sps:$4 sm:$0xff]  }
 0x190   : > { %3293 = vmatprep.subr.bf16.mxu0 %v4703_v10  ;;  %v4786_v10 = vld [vmem:[%s5250_s24 + $0xb30] ss:$8 sps:$4 sm:$0xff]  }
 0x192   : > { %3048 = vmatpush1.bf16.msra.mxu1 %v4698_v11  ;;  %v4791_v11 = vld [vmem:[%s5250_s24 + $0x544] ss:$8 sps:$4 sm:$0xff]  }
 0x193   : > { %3294 = vmatpush1.bf16.msra.mxu0 %v4701_v12  ;;  %3049 = vmatprep.subr.bf16.mxu1 %v4706_v13  ;;  %v4794_v12 = vld [vmem:[%s5250_s24 + $0xb44] ss:$8 sps:$4 sm:$0xff]   ;;  %v4789_v13 = vld [vmem:[%s5250_s24 + $0x540] ss:$8 sps:$4 sm:$0xff]  }
 0x194   : > { %3295 = vmatprep.subr.bf16.mxu0 %v4709_v14  ;;  %v4792_v14 = vld [vmem:[%s5250_s24 + $0xb40] ss:$8 sps:$4 sm:$0xff]  }
 0x196   : > { %3050 = vmatpush1.bf16.msra.mxu1 %v4704_v15  ;;  %v4797_v15 = vld [vmem:[%s5250_s24 + $0x554] ss:$8 sps:$4 sm:$0xff]  }
 0x197   : > { %3296 = vmatpush1.bf16.msra.mxu0 %v4707_v16  ;;  %3051 = vmatprep.subr.bf16.mxu1 %v4712_v17  ;;  %v4800_v16 = vld [vmem:[%s5250_s24 + $0xb54] ss:$8 sps:$4 sm:$0xff]   ;;  %v4795_v17 = vld [vmem:[%s5250_s24 + $0x550] ss:$8 sps:$4 sm:$0xff]  }
 0x198   : > { %3297 = vmatprep.subr.bf16.mxu0 %v4715_v20  ;;  %v4798_v20 = vld [vmem:[%s5250_s24 + $0xb50] ss:$8 sps:$4 sm:$0xff]  }
 0x19a   : > { %3052 = vmatpush1.bf16.msra.mxu1 %v4710_v21  ;;  %v4803_v21 = vld [vmem:[%s5250_s24 + $0x564] ss:$8 sps:$4 sm:$0xff]  }
 0x19b   : > { %3298 = vmatpush1.bf16.msra.mxu0 %v4713_v22  ;;  %3053 = vmatprep.subr.bf16.mxu1 %v4718_v23  ;;  %v4806_v22 = vld [vmem:[%s5250_s24 + $0xb64] ss:$8 sps:$4 sm:$0xff]   ;;  %v4801_v23 = vld [vmem:[%s5250_s24 + $0x560] ss:$8 sps:$4 sm:$0xff]  }
 0x19c   : > { %3299 = vmatprep.subr.bf16.mxu0 %v4721_v25  ;;  %v4804_v25 = vld [vmem:[%s5250_s24 + $0xb60] ss:$8 sps:$4 sm:$0xff]  }
 0x19e   : > { %3054 = vmatpush1.bf16.msra.mxu1 %v4716_v53  ;;  %v4809_v53 = vld [vmem:[%s5250_s24 + $0x574] ss:$8 sps:$4 sm:$0xff]  }
 0x19f   : > { %3300 = vmatpush1.bf16.msra.mxu0 %v4719_v26  ;;  %3055 = vmatprep.subr.bf16.mxu1 %v4724_v27  ;;  %v4812_v26 = vld [vmem:[%s5250_s24 + $0xb74] ss:$8 sps:$4 sm:$0xff]   ;;  %v4807_v27 = vld [vmem:[%s5250_s24 + $0x570] ss:$8 sps:$4 sm:$0xff]  }
 0x1a0   : > { %3301 = vmatprep.subr.bf16.mxu0 %v4727_v28  ;;  %v4810_v28 = vld [vmem:[%s5250_s24 + $0xb70] ss:$8 sps:$4 sm:$0xff]  }
 0x1a2   : > { %3056 = vmatpush1.bf16.msra.mxu1 %v4722_v29  ;;  %v4815_v29 = vld [vmem:[%s5250_s24 + $0x584] ss:$8 sps:$4 sm:$0xff]  }
 0x1a3   : > { %3302 = vmatpush1.bf16.msra.mxu0 %v4725_v30  ;;  %3057 = vmatprep.subr.bf16.mxu1 %v4730_v31  ;;  %v4818_v30 = vld [vmem:[%s5250_s24 + $0xb84] ss:$8 sps:$4 sm:$0xff]   ;;  %v4813_v31 = vld [vmem:[%s5250_s24 + $0x580] ss:$8 sps:$4 sm:$0xff]  }
 0x1a4   : > { %3303 = vmatprep.subr.bf16.mxu0 %v4733_v32  ;;  %v4816_v32 = vld [vmem:[%s5250_s24 + $0xb80] ss:$8 sps:$4 sm:$0xff]  }
 0x1a6   : > { %3058 = vmatpush1.bf16.msra.mxu1 %v4728_v33  ;;  %v4821_v33 = vld [vmem:[%s5250_s24 + $0x594] ss:$8 sps:$4 sm:$0xff]  }
 0x1a7   : > { %3304 = vmatpush1.bf16.msra.mxu0 %v4731_v34  ;;  %3059 = vmatprep.subr.bf16.mxu1 %v4736_v19  ;;  %v4824_v34 = vld [vmem:[%s5250_s24 + $0xb94] ss:$8 sps:$4 sm:$0xff]   ;;  %v4819_v19 = vld [vmem:[%s5250_s24 + $0x590] ss:$8 sps:$4 sm:$0xff]  }
 0x1a8   : > { %3305 = vmatprep.subr.bf16.mxu0 %v4739_v37  ;;  %v4822_v37 = vld [vmem:[%s5250_s24 + $0xb90] ss:$8 sps:$4 sm:$0xff]  }
 0x1aa   : > { %3060 = vmatpush1.bf16.msra.mxu1 %v4734_v38  ;;  %v4827_v38 = vld [vmem:[%s5250_s24 + $0x5a4] ss:$8 sps:$4 sm:$0xff]  }
 0x1ab   : > { %3306 = vmatpush1.bf16.msra.mxu0 %v4737_v39  ;;  %3061 = vmatprep.subr.bf16.mxu1 %v4742_v40  ;;  %v4830_v39 = vld [vmem:[%s5250_s24 + $0xba4] ss:$8 sps:$4 sm:$0xff]   ;;  %v4825_v40 = vld [vmem:[%s5250_s24 + $0x5a0] ss:$8 sps:$4 sm:$0xff]  }
 0x1ac   : > { %3307 = vmatprep.subr.bf16.mxu0 %v4745_v45  ;;  %v4828_v45 = vld [vmem:[%s5250_s24 + $0xba0] ss:$8 sps:$4 sm:$0xff]  }
 0x1ae   : > { %3062 = vmatpush1.bf16.msra.mxu1 %v4740_v46  ;;  %v4833_v46 = vld [vmem:[%s5250_s24 + $0x5b4] ss:$8 sps:$4 sm:$0xff]  }
 0x1af   : > { %3308 = vmatpush1.bf16.msra.mxu0 %v4743_v47  ;;  %3063 = vmatprep.subr.bf16.mxu1 %v4748_v18  ;;  %v4836_v47 = vld [vmem:[%s5250_s24 + $0xbb4] ss:$8 sps:$4 sm:$0xff]   ;;  %v4831_v18 = vld [vmem:[%s5250_s24 + $0x5b0] ss:$8 sps:$4 sm:$0xff]  }
 0x1b0   : > { %3309 = vmatprep.subr.bf16.mxu0 %v4751_v36  ;;  %v4834_v36 = vld [vmem:[%s5250_s24 + $0xbb0] ss:$8 sps:$4 sm:$0xff]  }
 0x1b2   : > { %3064 = vmatpush1.bf16.msra.mxu1 %v4746_v49  ;;  %v4839_v49 = vld [vmem:[%s5250_s24 + $0x5c4] ss:$8 sps:$4 sm:$0xff]  }
 0x1b3   : > { %3310 = vmatpush1.bf16.msra.mxu0 %v4749_v51  ;;  %3065 = vmatprep.subr.bf16.mxu1 %v4754_v35  ;;  %v4842_v51 = vld [vmem:[%s5250_s24 + $0xbc4] ss:$8 sps:$4 sm:$0xff]   ;;  %v4837_v35 = vld [vmem:[%s5250_s24 + $0x5c0] ss:$8 sps:$4 sm:$0xff]  }
 0x1b4   : > { %3311 = vmatprep.subr.bf16.mxu0 %v4757_v42  ;;  %v4840_v42 = vld [vmem:[%s5250_s24 + $0xbc0] ss:$8 sps:$4 sm:$0xff]  }
 0x1b6   : > { %3066 = vmatpush1.bf16.msra.mxu1 %v4752_v52  ;;  %v4845_v52 = vld [vmem:[%s5250_s24 + $0x5d4] ss:$8 sps:$4 sm:$0xff]  }
 0x1b7   : > { %3312 = vmatpush1.bf16.msra.mxu0 %v4755_v54  ;;  %3067 = vmatprep.subr.bf16.mxu1 %v4760_v55  ;;  %v4848_v54 = vld [vmem:[%s5250_s24 + $0xbd4] ss:$8 sps:$4 sm:$0xff]   ;;  %v4843_v55 = vld [vmem:[%s5250_s24 + $0x5d0] ss:$8 sps:$4 sm:$0xff]  }
 0x1b8   : > { %3313 = vmatprep.subr.bf16.mxu0 %v4763_v56  ;;  %v4846_v56 = vld [vmem:[%s5250_s24 + $0xbd0] ss:$8 sps:$4 sm:$0xff]  }
 0x1ba   : > { %3068 = vmatpush1.bf16.msra.mxu1 %v4758_v57  ;;  %v4851_v57 = vld [vmem:[%s5250_s24 + $0x5e4] ss:$8 sps:$4 sm:$0xff]  }
 0x1bb   : > { %3314 = vmatpush1.bf16.msra.mxu0 %v4761_v58  ;;  %3078 = vmatprep.subr.bf16.mxu1 %v4766_v59  ;;  %v4854_v58 = vld [vmem:[%s5250_s24 + $0xbe4] ss:$8 sps:$4 sm:$0xff]   ;;  %v4849_v59 = vld [vmem:[%s5250_s24 + $0x5e0] ss:$8 sps:$4 sm:$0xff]  }
 0x1bc   : > { %3324 = vmatprep.subr.bf16.mxu0 %v4770_v60  ;;  %v4852_v60 = vld [vmem:[%s5250_s24 + $0xbe0] ss:$8 sps:$4 sm:$0xff]  }
 0x1bd   : > { %3070 = vmatmul.mubr.bf16.vlgmr.msra.gmra.mrb[0].mxu1 %v5695_v44 }
 0x1be   : > { %3316 = vmatmul.mubr.bf16.vlgmr.msra.gmra.mrb[0].mxu0 %v5699_v62  ;;  %3079 = vmatpush1.bf16.msra.mxu1 %v4764_v63  ;;  %v4857_v63 = vld [vmem:[%s5250_s24 + $0x5f4] ss:$8 sps:$4 sm:$0xff]  }
 0x1bf   : > { %3325 = vmatpush1.bf16.msra.mxu0 %v4768_v0  ;;  %3080 = vmatprep.subr.bf16.mxu1 %v4773_v1  ;;  %v4860_v0 = vld [vmem:[%s5250_s24 + $0xbf4] ss:$8 sps:$4 sm:$0xff]   ;;  %v4855_v1 = vld [vmem:[%s5250_s24 + $0x5f0] ss:$8 sps:$4 sm:$0xff]  }
 0x1c0   : > { %3326 = vmatprep.subr.bf16.mxu0 %v4776_v2  ;;  %3110 = vmatprep.mubr.bf16.mxu1 %v820_v48  ;;  %v4858_v2 = vld [vmem:[%s5250_s24 + $0xbf0] ss:$8 sps:$4 sm:$0xff]   ;;  %v4863_v48 = vld [vmem:[%s5250_s24 + $0xc04] ss:$8 sps:$4 sm:$0xff]  }
 0x1c1   : > { %3356 = vmatprep.mubr.bf16.mxu0 %v870_v3  ;;  %v4873_v3 = vld [vmem:[%s5271_s7 + $0x40] sm:$0xff]  }
 0x1c2   : > { %3081 = vmatpush1.bf16.msra.mxu1 %v4771_v24  ;;  %v818_v24 = vcombine.high %v5695_v44, %v5695_v44  ;;  %v4864_v44 = vld [vmem:[%s5250_s24 + $0xc10] ss:$8 sps:$4 sm:$0xff]  }
 0x1c3   : > { %3327 = vmatpush1.bf16.msra.mxu0 %v4774_v4  ;;  %3082 = vmatprep.subr.bf16.mxu1 %v4779_v61  ;;  %v868_v4 = vcombine.high %v5699_v62, %v5699_v62  ;;  %v4861_v61 = vld [vmem:[%s5250_s24 + $0xc00] ss:$8 sps:$4 sm:$0xff]   ;;  %v4869_v62 = vld [vmem:[%s5250_s24 + $0xc24] ss:$8 sps:$4 sm:$0xff]  }
 0x1c4   : > { %3328 = vmatprep.subr.bf16.mxu0 %v4782_v5  ;;  %v4866_v5 = vld [vmem:[%s5250_s24 + $0xc14] ss:$8 sps:$4 sm:$0xff]  }
 0x1c6   : > { %3083 = vmatpush1.bf16.msra.mxu1 %v4777_v41  ;;  %v4874_v41 = vld [vmem:[%s5271_s7] sm:$0xff]  }
 0x1c7   : > { %3329 = vmatpush1.bf16.msra.mxu0 %v4780_v6  ;;  %3084 = vmatprep.subr.bf16.mxu1 %v4785_v7  ;;  %v4875_v6 = vld [vmem:[%s5271_s7 + $0x48] sm:$0xff]   ;;  %v5065_v7 = vmov 0  }
 0x1c8   : > { %3330 = vmatprep.subr.bf16.mxu0 %v4788_v8  ;;  %v4876_v8 = vld [vmem:[%s5271_s7 + $0x8] sm:$0xff]  }
 0x1ca   : > { %3085 = vmatpush1.bf16.msra.mxu1 %v4783_v9  ;;  %v4867_v9 = vld [vmem:[%s5250_s24 + $0xc20] ss:$8 sps:$4 sm:$0xff]  }
 0x1cb   : > { %3331 = vmatpush1.bf16.msra.mxu0 %v4786_v10  ;;  %3086 = vmatprep.subr.bf16.mxu1 %v4791_v11  ;;  %v4872_v10 = vld [vmem:[%s5250_s24 + $0xc34] ss:$8 sps:$4 sm:$0xff]   ;;  %v4870_v11 = vld [vmem:[%s5250_s24 + $0xc30] ss:$8 sps:$4 sm:$0xff]  }
 0x1cc   : > { %3332 = vmatprep.subr.bf16.mxu0 %v4794_v12  ;;  %v3724_v12 = vld.sshfl [vmem:[%s5845_s0 + $0x18] sm:$0x1 pattern:$0x75316420] }
 0x1ce   : > { %3087 = vmatpush1.bf16.msra.mxu1 %v4789_v13  ;;  %v884_v13 = vrot.slane %v3724_v12, %v5322_v50  ;;  %v4883_v50 = vld [vmem:[%s5271_s7 + $0x68] sm:$0xff]  }
 0x1cf   : > { %3333 = vmatpush1.bf16.msra.mxu0 %v4792_v14  ;;  %3088 = vmatprep.subr.bf16.mxu1 %v4797_v15  ;;  %v4877_v14 = vld [vmem:[%s5271_s7 + $0x50] sm:$0xff]  }
 0x1d0   : > { %3334 = vmatprep.subr.bf16.mxu0 %v4800_v16  ;;  %v4878_v15 = vld [vmem:[%s5271_s7 + $0x10] sm:$0xff]   ;;  %v4879_v16 = vld [vmem:[%s5271_s7 + $0x58] sm:$0xff]  }
 0x1d2   : > { %3089 = vmatpush1.bf16.msra.mxu1 %v4795_v17  ;;  %v4880_v17 = vld [vmem:[%s5271_s7 + $0x18] sm:$0xff]  }
 0x1d3   : > { %3335 = vmatpush1.bf16.msra.mxu0 %v4798_v20  ;;  %3090 = vmatprep.subr.bf16.mxu1 %v4803_v21  ;;  %v4881_v20 = vld [vmem:[%s5271_s7 + $0x60] sm:$0xff]  }
 0x1d4   : > { %3336 = vmatprep.subr.bf16.mxu0 %v4806_v22  ;;  %v4882_v21 = vld [vmem:[%s5271_s7 + $0x20] sm:$0xff]   ;;  %v4884_v22 = vld [vmem:[%s5271_s7 + $0x28] sm:$0xff]  }
 0x1d6   : > { %3091 = vmatpush1.bf16.msra.mxu1 %v4801_v23  ;;  %v4885_v23 = vld [vmem:[%s5271_s7 + $0x70] sm:$0xff]  }
 0x1d7   : > { %3337 = vmatpush1.bf16.msra.mxu0 %v4804_v25  ;;  %3092 = vmatprep.subr.bf16.mxu1 %v4809_v53  ;;  %v4886_v25 = vld [vmem:[%s5271_s7 + $0x30] sm:$0xff]   ;;  %v4887_v53 = vld [vmem:[%s5271_s7 + $0x78] sm:$0xff]  }
 0x1d8   : > { %3338 = vmatprep.subr.bf16.mxu0 %v4812_v26  ;;  %v4888_v26 = vld [vmem:[%s5271_s7 + $0x38] sm:$0xff]  }
 0x1da   : > { %3093 = vmatpush1.bf16.msra.mxu1 %v4807_v27 }
 0x1db   : > { %3339 = vmatpush1.bf16.msra.mxu0 %v4810_v28  ;;  %3094 = vmatprep.subr.bf16.mxu1 %v4815_v29 }
 0x1dc   : > { %3340 = vmatprep.subr.bf16.mxu0 %v4818_v30 }
 0x1de   : > { %3095 = vmatpush1.bf16.msra.mxu1 %v4813_v31  ;;  %v712_v31 = vsub.s32 0, %v5314_v43 }
 0x1df   : > { %3341 = vmatpush1.bf16.msra.mxu0 %v4816_v32  ;;  %3096 = vmatprep.subr.bf16.mxu1 %v4821_v33  ;;  %v708_v32 = vld [vmem:[%s5257_s27] sm:$0x3]  ;;  %v716_v33 = vsub.s32 1, %v5314_v43 }
 0x1e0   : > { %3342 = vmatprep.subr.bf16.mxu0 %v4824_v34  ;;  %v713_v34 = vrot.slane %v708_v32, %v712_v31 }
 0x1e2   : > { %3097 = vmatpush1.bf16.msra.mxu1 %v4819_v19  ;;  %v717_v19 = vrot.slane %v708_v32, %v716_v33 }
 0x1e3   : > { %3343 = vmatpush1.bf16.msra.mxu0 %v4822_v37  ;;  %3098 = vmatprep.subr.bf16.mxu1 %v4827_v38 }
 0x1e4   : > { %3344 = vmatprep.subr.bf16.mxu0 %v4830_v39 }
 0x1e6   : > { %3099 = vmatpush1.bf16.msra.mxu1 %v4825_v40 }
 0x1e7   : > { %3345 = vmatpush1.bf16.msra.mxu0 %v4828_v45  ;;  %3100 = vmatprep.subr.bf16.mxu1 %v4833_v46 }
 0x1e8   : > { %3346 = vmatprep.subr.bf16.mxu0 %v4836_v47 }
 0x1ea   : > { %3101 = vmatpush1.bf16.msra.mxu1 %v4831_v18 }
 0x1eb   : > { %3347 = vmatpush1.bf16.msra.mxu0 %v4834_v36  ;;  %3102 = vmatprep.subr.bf16.mxu1 %v4839_v49 }
 0x1ec   : > { %3348 = vmatprep.subr.bf16.mxu0 %v4842_v51 }
 0x1ee   : > { %3103 = vmatpush1.bf16.msra.mxu1 %v4837_v35 }
 0x1ef   : > { %3349 = vmatpush1.bf16.msra.mxu0 %v4840_v42  ;;  %3104 = vmatprep.subr.bf16.mxu1 %v4845_v52  ;;  %v3408_v52 = vld [vmem:[#allocation2] sm:$0x3] }
 0x1f0   : > { %3350 = vmatprep.subr.bf16.mxu0 %v4848_v54 }
 0x1f2   : > { %3105 = vmatpush1.bf16.msra.mxu1 %v4843_v55 }
 0x1f3   : > { %3351 = vmatpush1.bf16.msra.mxu0 %v4846_v56  ;;  %3106 = vmatprep.subr.bf16.mxu1 %v4851_v57 }
 0x1f4   : > { %3352 = vmatprep.subr.bf16.mxu0 %v4854_v58 }
 0x1f6   : > { %3107 = vmatpush1.bf16.msra.mxu1 %v4849_v59  ;;  %v4135_v59 = vld [vmem:[#allocation8] ss:$0 sm:$0xff] (!%p4134_p5) }
 0x1f7   : > { %3353 = vmatpush1.bf16.msra.mxu0 %v4852_v60  ;;  %3108 = vmatprep.subr.bf16.mxu1 %v4857_v63 }
 0x1f8   : > { %3354 = vmatprep.subr.bf16.mxu0 %v4860_v0 }
 0x1fa   : > { %3109 = vmatpush1.bf16.msra.mxu1 %v4855_v1 }
 0x1fb   : > { %3355 = vmatpush1.bf16.msra.mxu0 %v4858_v2  ;;  %4142 = vmatprep.subr.bf16.mxu1 %v4873_v3 }
 0x1fc   : > { %3365 = vmatprep.subr.bf16.mxu0 %v4863_v48 }
 0x1fd   : > { %3111 = vmatmul.mubr.bf16.vlgmr.msra.gmra.mrb[0].mxu1 %v818_v24 }
 0x1fe   : > { %3357 = vmatmul.mubr.bf16.vlgmr.msra.gmra.mrb[0].mxu0 %v868_v4  ;;  %4143 = vmatpush3.bf16.msra.mxu1 %v4874_v41 }
 0x1ff   : > { %3366 = vmatpush1.bf16.msra.mxu0 %v4861_v61  ;;  %3397 = vmatprep.mubr.bf16.mxu0 %v5065_v7 }
 0x200   : > { %3367 = vmatprep.subr.bf16.mxu0 %v4866_v5  ;;  %4144 = vmatprep.subr.bf16.mxu1 %v4875_v6 }
 0x202   : > { %4145 = vmatpush3.bf16.msra.mxu1 %v4876_v8 }
 0x203   : > { %3368 = vmatpush1.bf16.msra.mxu0 %v4864_v44  ;;  %4146 = vmatprep.subr.bf16.mxu1 %v4877_v14 }
 0x204   : > { %3369 = vmatprep.subr.bf16.mxu0 %v4869_v62 }
 0x206   : > { %4147 = vmatpush3.bf16.msra.mxu1 %v4878_v15 }
 0x207   : > { %3370 = vmatpush1.bf16.msra.mxu0 %v4867_v9  ;;  %4148 = vmatprep.subr.bf16.mxu1 %v4879_v16 }
 0x208   : > { %3371 = vmatprep.subr.bf16.mxu0 %v4872_v10 }
 0x20a   : > { %4149 = vmatpush3.bf16.msra.mxu1 %v4880_v17 }
 0x20b   : > { %3372 = vmatpush1.bf16.msra.mxu0 %v4870_v11  ;;  %4150 = vmatprep.subr.bf16.mxu1 %v4881_v20 }
 0x20e   : > { %4117 = vmatmul.mubr.msk.bf16.vlgmr.msra.gmra.mrb[0].mxu0 %vm2869_vm1, %v884_v13  ;;  %4151 = vmatpush3.bf16.msra.mxu1 %v4882_v21 }
 0x20f   : > { %4152 = vmatprep.subr.bf16.mxu1 %v4883_v50 }
 0x212   : > { %4153 = vmatpush3.bf16.msra.mxu1 %v4884_v22 }
 0x213   : > { %4154 = vmatprep.subr.bf16.mxu1 %v4885_v23 }
 0x216   : > { %4155 = vmatpush3.bf16.msra.mxu1 %v4886_v25 }
 0x217   : > { %4156 = vmatprep.subr.bf16.mxu1 %v4887_v53 }
 0x21a   : > { %4157 = vmatpush3.bf16.msra.mxu1 %v4888_v26 }
 0x2d0   : > { %v3112_v27 = vpop.f32.mrb[0].mxu1 }
 0x2d1   : > { %v3114_v28 = vpop.f32.mrb[1].mxu1  ;;  %v4164_v37 = vadd.f32 %v3112_v27, %v713_v34 }
 0x2d2   : > { %v3116_v29 = vpop.f32.mrb[2].mxu1  ;;  %v4166_v38 = vadd.f32 %v3114_v28, %v717_v19 }
 0x2d3   : > { %v3117_v30 = vpop.f32.mrb[3].mxu1 }
 0x2e1   : > { %v3399_v39 = vpop.f32.mrb[0].mxu0 }
 0x2e2   : > { %v4165_v40 = vadd.f32 %v4164_v37, %v3399_v39  ;;  %v3401_v45 = vpop.f32.mrb[1].mxu0 }
 0x2e3   : > { %v4167_v46 = vadd.f32 %v4166_v38, %v3401_v45  ;;  %v3403_v47 = vpop.f32.mrb[2].mxu0 }
 0x2e4   : > { %v3406_v18 = vmax.f32 %v4165_v40, 0.0  ;;  %v3404_v36 = vpop.f32.mrb[3].mxu0 }
 0x2e5   : > { %v3407_v49 = vmax.f32 %v4167_v46, 0.0 }
 0x2e6   : > { %v3409_v35 = vpack.c.bf16 %v3406_v18, %v3406_v18 }
 0x2e7   : > { %v3410_v51 = vpack.c.bf16 %v3407_v49, %v3407_v49 }
 0x2e9   : > { %3571 = vmatprep.mubr.bf16.mxu1 %v3410_v51 }
 0x2ea   : > { %3572 = vmatmul.mubr.bf16.vlgmr.msra.gmra.mrb[4].mxu1 %v3409_v35 }
 0x3bd   : > { %v4158_v42 = vpop.f32.mrb[4].mxu1  ;;  %3585 = sbr.rel (%p4134_p5) target bundleno = 1290 (0x50a), region = 60 }
 0x3be   : > { %v4159_v54 = vpop.f32.mrb[5].mxu1 }
 0x3bf   : > { %v4160_v43 = vadd.f32 %v4159_v54, %v4158_v42  ;;  %v4161_v55 = vpop.f32.mrb[6].mxu1 }
 0x3c0   : > { %v4162_v56 = vpop.f32.mrb[7].mxu1 }
 0x3c1   : > { %v3579_v57 = vadd.f32 %v4160_v43, %v3408_v52 }
 0x3c3   : > { %3581 = vst.msk [vmem:[#allocation2] sm:$0x3] %vm3580_vm2, %v3579_v57 }
 0x3ca   : > { %v3586_v58 = vld [vmem:[#allocation2] sm:$0x3] }
 0x3cb   : > { %v3594_v60 = vadd.f32 %v4135_v59, %v3586_v58 }
 0x3cd   : > { %v3595_v63 = vsel %vm3580_vm2, %v3594_v60, -inf }
 0x3ce   : > { %3596 = vmax.xlane.f32.xlu0 %v3595_v63 }
 0x45b   : > { %v3597_v0 = vpop.xlane.xlu0 %3596 }
 0x45c   : > { %v3598_v1 = vsub.f32 %v3594_v60, %v3597_v0 }
 0x45e   : > { %v3599_v2 = vmul.f32 1.442695, %v3598_v1 }
 0x460   : > { %4890 = vpow2.f32 %v3599_v2 }
 0x46a   : > { %v4891_v48 = vpop.eup %4890 }
 0x46b   : > { %v3601_v3 = vsel %vm3580_vm2, %v4891_v48, 0.0 }
 0x46c   : > { %3602 = vadd.xlane.f32.xlu0 %v3601_v3 }
 0x4f9   : > { %v3603_v24 = vpop.xlane.xlu0 %3602 }
 0x4fa   : > { %4892 = vlog2.f32 %v3603_v24 }
 0x504   : > { %v4893_v4 = vpop.eup %4892 }
 0x505   : > { %v3605_v61 = vmul.f32 0.6931472, %v4893_v4 }
 0x507   : > { %v3606_v5 = vsub.f32 %v3598_v1, %v3605_v61 }
 0x509   : > { %3607 = vst.msk [vmem:[#allocation9] sm:$0x3] %vm3580_vm2, %v3606_v5 }
 0x50a PF: > { %p4240_p10 = scmp.eq.s32.totalorder %s5116_s22, 3  ;;  %s5066_s18 = smov [#allocation9]  }
 0x50b   : > { %s3615_s24 = sshll.u32 %s5066_s18, 4  ;;  %s3616_s24 = int_to_ptr.vmem [resolvable:$true] %s3615_s24 }
 0x50c   : > { %s4983_s9 = scalar_lea.vmem %s3616_s24, 32  ;;  %p4990_p2 = scmp.lt.s32.totalorder %s3616_s24, %s3616_s24 }
 0x50d   : > { %p4984_p0 = scmp.ne.s32.totalorder %s3616_s24, %s4983_s9  ;;  %p4991_p4 = scmp.lt.s32.totalorder %s4983_s9, %s4983_s9 }
 0x50f   : > { %p4985_p1 = pnand %p4984_p0, %p4240_p10  ;;  %p4992_p6 = por %p4991_p4, %p4990_p2 }
 0x511   : > { %p4986_p13 = pneg %p4985_p1 }
 0x513   : > { %p4993_p3 = pnand %p4992_p6, %p4986_p13 }
 0x515   : > { %4996 = shalt.err (!%p4993_p3)
}
 0x516   : > { %s4997_s27 = scalar_lea.hbm %s5850_s5, 32 }
 0x517   : > { %p4998_p9 = scmp.ne.s32.totalorder %s5850_s5, %s4997_s27  ;;  %p5003_p11 = scmp.lt.u32.totalorder %s4997_s27, %s5850_s5 }
 0x519   : > { %p4999_p8 = pnand %p4998_p9, %p4240_p10 }
 0x51b   : > { %p5000_p7 = pneg %p4999_p8 }
 0x51d   : > { %p5005_p12 = pnand %p5003_p11, %p5000_p7 }
 0x51f   : > { %5008 = shalt.err (!%p5005_p12)
}
 0x520   : > { %4223 = dma.vmem_to_hbm [thread:$0]  (%p4240_p10), %s3616_s24, 32, %s5850_s5, [#allocation5]  }
 0x521   : > { %5038 = dma.done.wait (%p4240_p10), [#allocation5], 32  }
 0x522   : > { %5040 = vsyncadd (%p4240_p10), [#allocation5], 4294967264 }
 0x523 PF: > { %p19_p5 = scmp.ge.s32.totalorder %s5119_s23, 6   ;;  %s5868_s18 = smov %s5047_s19 }
 0x524   : > { %s5869_s19 = smov %s5051_s20  ;;  %s5870_s20 = smov %s5129_s26 }
 0x525   : > { %s5871_s21 = smov %s5119_s23  ;;  %21 = sbr.rel (!%p19_p5) target bundleno = 8 (0x8), region = 105 }
 0x52c   :  { %3628 = vsyncpa [#allocation4], 1 }
 0x52d   :  { %3630 = vsyncpa [#allocation4 + $0x1], 1 }
 0x52e   :  { %3631 = vsyncpa [#allocation7], 1 }
 0x52f   :  { %3633 = vsyncpa [#allocation7 + $0x1], 1 }
 0x530   :  { %3634 = vsyncpa [#allocation5], 1 }
 0x531   :  { %3636 = vsyncpa [#allocation5 + $0x1], 1 }

</bundles_post_ra>
